<compile_context>
chip_gen: v7x
topology: tpu7x:2x2x1
jax: 0.10.0
libtpu: 0.0.40
codegen_flags: <defaults>
</compile_context>

<pallas_src>
import functools

import jax
import jax.numpy as jnp
from jax import lax
from jax.experimental import pallas as pl
from jax.experimental.pallas import tpu as pltpu


# --------------------------------------------------------------------------
# helpers
# --------------------------------------------------------------------------
def _elu(v):
    # ELU(alpha=1)
    return jnp.where(v > 0.0, v, jnp.exp(jnp.minimum(v, 0.0)) - 1.0)


def _pool_select_matrix(n, k):
    """(n, n//k) 0/1 matrix selecting non-overlapping windows of size k (floor).

    The 1/k averaging factor is folded into a downstream linear op so this
    matrix is exact in bfloat16."""
    m = n // k
    rows = jnp.arange(n)[:, None]
    cols = jnp.arange(m)[None, :]
    return jnp.where((rows >= cols * k) & (rows < (cols + 1) * k),
                     1.0, 0.0).astype(jnp.float32)


def _pick_batch_block(S):
    """Largest per-step sample count B (<= 8, i.e. <= 128 rows) dividing S
    while keeping >= 2 grid steps so v7x's two TensorCores both get work."""
    for b in (8, 4, 2, 1):
        if S % b == 0 and S // b >= 2:
            return b
    return S


# --------------------------------------------------------------------------
# Kernel 1: whole branch, B samples per grid step (grid = 4N/B, "parallel")
# --------------------------------------------------------------------------
def _branch_kernel(x_ref, wall_ref, ball_ref, p1_ref, wt2_ref, dt2_ref,
                   p2t_ref, mask_ref, rsel_ref, o_ref, y1_ref,
                   *, B, W1, W2, KT1, KT2):
    ball = ball_ref[...]                               # (16, 1) f32, hoisted

    # --- folded T1+E1+E2 (pre-ELU): 25-tap MXU accumulate chain per sample ---
    def sample_body(b, carry):
        xb = x_ref[b]                                  # (55, 344) bf16
        acc = jnp.zeros((16, W1), jnp.float32)
        for k in range(KT1):                           # static lane offsets
            acc = acc + jnp.dot(wall_ref[k], xb[:, k:k + W1],
                                preferred_element_type=jnp.float32)
        y = _elu(acc + ball)                           # (16, 320) f32
        row = pl.multiple_of(b * 16, 16)
        y1_ref[pl.ds(row, 16), :] = y.astype(jnp.bfloat16)
        return carry

    lax.fori_loop(0, B, sample_body, 0)

    # --- AvgPool(1,5) #1: one batched matmul over all B samples --------------
    # (1/5 factor is folded into the T2 weights host-side.)
    yp = jnp.dot(y1_ref[...], p1_ref[...],
                 preferred_element_type=jnp.float32)   # (B*16, 64)
    yp = yp.astype(jnp.bfloat16)

    # --- TEMP_Sequence2 (1,10) conv + BN: block-diag weights, 1 matmul / tap -
    acc2 = jnp.zeros((B * 16, W2), jnp.float32)
    for k in range(KT2):                               # static lane offsets
        acc2 = acc2 + jnp.dot(wt2_ref[k], yp[:, k:k + W2],
                              preferred_element_type=jnp.float32)
    e2 = _elu(acc2 + dt2_ref[...])                     # (B*16, 55) f32

    # --- AvgPool(1,5) #2 fused with the PyTorch flatten (c*11+p lanes) -------
    # z[r, 11c+p] = sum_t e2[r,t] * P2[t,p]; mask keeps c == (r mod 16);
    # rsel sums each sample's 16 rows (and carries the pool-2 1/5 factor).
    z = jnp.dot(e2.astype(jnp.bfloat16), p2t_ref[...],
                preferred_element_type=jnp.float32)    # (B*16, 176)
    z = z * mask_ref[...]
    o_ref[0] = jnp.dot(rsel_ref[...], z,
                       preferred_element_type=jnp.float32)   # (B, 176)


def _branch_call(prep, X, B):
    S, H, W = X.shape
    W1, W2, T1p, T2p = prep["W1"], prep["W2"], prep["T1p"], prep["T2p"]
    KT1, KT2 = prep["KT1"], prep["KT2"]
    BC = B * 16
    G = S // B
    FD = 16 * T2p                                      # 176 flattened lanes

    # ---- B-dependent constants (tiny, built once per trace) -----------------
    eyeB = jnp.eye(B, dtype=jnp.float32)
    wt2blk = (eyeB[None, :, None, :, None]
              * prep["wt2f"][:, None, :, None, :]).reshape(KT2, BC, BC)
    wt2blk = wt2blk.astype(jnp.bfloat16)               # block-diag T2 weights
    dt2b = jnp.tile(prep["dt2"], (B, 1))               # (B*16, 1)
    maskb = jnp.tile(prep["mask16"], (B, 1))           # (B*16, 176)
    rsel = (1.0 / 5.0) * jnp.repeat(eyeB, 16, axis=1)  # (B, B*16), pool-2 1/5

    flops = int(S * 2 * KT1 * 16 * H * W1
                + G * 2 * BC * W1 * T1p
                + G * KT2 * 2 * BC * BC * W2
                + G * 2 * BC * W2 * FD
                + G * 2 * B * BC * FD)
    transcendentals = int(S * 16 * (W1 + W2))
    bytes_accessed = int(S * H * W * 2 + S * FD * 4
                         + prep["wall_t"].size * 2 + prep["p1"].size * 2
                         + KT2 * BC * BC * 2 + prep["p2t"].size * 2
                         + BC * FD * 4)

    kernel = functools.partial(_branch_kernel, B=B, W1=W1, W2=W2,
                               KT1=KT1, KT2=KT2)
    out = pl.pallas_call(
        kernel,
        out_shape=jax.ShapeDtypeStruct((G, B, FD), jnp.float32),
        grid=(G,),
        in_specs=[
            pl.BlockSpec((B, H, W), lambda s: (s, 0, 0)),          # x (bf16)
            pl.BlockSpec((KT1, 16, H), lambda s: (0, 0, 0)),       # wall (bf16)
            pl.BlockSpec((16, 1), lambda s: (0, 0)),               # ball (f32)
            pl.BlockSpec((W1, T1p), lambda s: (0, 0)),             # pool1 (bf16)
            pl.BlockSpec((KT2, BC, BC), lambda s: (0, 0, 0)),      # T2 blk (bf16)
            pl.BlockSpec((BC, 1), lambda s: (0, 0)),               # dt2 (f32)
            pl.BlockSpec((W2, FD), lambda s: (0, 0)),              # pool2-tiled
            pl.BlockSpec((BC, FD), lambda s: (0, 0)),              # channel mask
            pl.BlockSpec((B, BC), lambda s: (0, 0)),               # row-sum sel
        ],
        out_specs=pl.BlockSpec((1, B, FD), lambda s: (s, 0, 0)),
        scratch_shapes=[pltpu.VMEM((BC, W1), jnp.bfloat16)],
        compiler_params=pltpu.CompilerParams(
            dimension_semantics=("parallel",)),
        # Per-step VMEM is ~1.5 MB at B=8, far below default scoped limits on
        # every generation, so no explicit vmem_limit_bytes is needed.
        cost_estimate=pl.CostEstimate(flops=flops,
                                      transcendentals=transcendentals,
                                      bytes_accessed=bytes_accessed),
    )(X, prep["wall_t"], prep["ball"], prep["p1"], wt2blk, dt2b,
      prep["p2t"], maskb, rsel)
    return out.reshape(S, FD)


# --------------------------------------------------------------------------
# Kernel 2: PSD ratio + ELE_Sequence3 (kron form) + FC stack, fully vectorized
# --------------------------------------------------------------------------
def _head_kernel(y_ref, kl_ref, kr_ref, de3_ref, wfc1_ref, dfc1_ref,
                 wfc2_ref, dfc2_ref, wfc3_ref, dfc3_ref, o_ref, *, n):
    Y = y_ref[...]                                     # (4n, 176) f32
    sL, sR = Y[0:n], Y[n:2 * n]
    tL, tR = Y[2 * n:3 * n], Y[3 * n:4 * n]

    # compute_region_psd ratio: Parseval => sum|FFT|^2 = len * sum(x^2);
    # the length factor cancels in psd_T / psd_S (batch-global scalars,
    # matching the PyTorch .item() semantics).
    r_l = jnp.sum(tL * tL, keepdims=True) / jnp.sum(sL * sL, keepdims=True)
    r_r = jnp.sum(tR * tR, keepdims=True) / jnp.sum(sR * sR, keepdims=True)

    a = (r_l * sL).astype(jnp.bfloat16)
    b = (r_r * sR).astype(jnp.bfloat16)
    # ELE_Sequence3 on flattened rows via kron(W^T, I_11) weights.
    e3 = (jnp.dot(a, kl_ref[...], preferred_element_type=jnp.float32)
          + jnp.dot(b, kr_ref[...], preferred_element_type=jnp.float32)
          + de3_ref[...])
    e3 = _elu(e3)                                      # (n, 176)

    h = jnp.dot(e3.astype(jnp.bfloat16), wfc1_ref[...],
                preferred_element_type=jnp.float32) + dfc1_ref[...]   # (n, 256)
    h = jnp.dot(h.astype(jnp.bfloat16), wfc2_ref[...],
                preferred_element_type=jnp.float32) + dfc2_ref[...]   # (n, 64)
    o_ref[...] = (jnp.dot(h.astype(jnp.bfloat16), wfc3_ref[...],
                          preferred_element_type=jnp.float32)
                  + dfc3_ref[...])                                    # (n, 2)


def _head_call(prep, Y, n):
    kernel = functools.partial(_head_kernel, n=n)
    return pl.pallas_call(
        kernel,
        out_shape=jax.ShapeDtypeStruct((n, 2), jnp.float32),
        in_specs=[pl.BlockSpec(memory_space=pltpu.MemorySpace.VMEM)] * 10,
        out_specs=pl.BlockSpec(memory_space=pltpu.MemorySpace.VMEM),
    )(Y, prep["kl"], prep["kr"], prep["de3"],
      prep["wfc1"], prep["dfc1"], prep["wfc2"], prep["dfc2"],
      prep["wfc3"], prep["dfc3"])


# --------------------------------------------------------------------------
# Deterministic synthetic parameters (eval-mode BN folded to scale/shift:
#   y = conv_or_linear(x) * scale + shift)
# --------------------------------------------------------------------------
def make_params(key):
    ks = iter(jax.random.split(key, 64))

    def nrm(shape, s=0.1):
        return s * jax.random.normal(next(ks), shape, dtype=jnp.float32)

    p = {}

    def conv_or_lin_bn(name, w_shape, c_out, eps):
        w = nrm(w_shape)
        b = nrm((c_out,), 0.02)
        gamma = 1.0 + nrm((c_out,), 0.1)
        beta = nrm((c_out,), 0.02)
        mean = nrm((c_out,), 0.05)
        var = 1.0 + 0.2 * jnp.abs(jax.random.normal(next(ks), (c_out,),
                                                    dtype=jnp.float32))
        scale = gamma / jnp.sqrt(var + eps)
        shift = (b - mean) * scale + beta
        p[name] = dict(w=w, scale=scale, shift=shift)

    # Conv BatchNorm2d layers use eps=0 (nn.BatchNorm2d(F, False) -> eps=False)
    conv_or_lin_bn("T1", (8, 1, 1, 25), 8, 0.0)
    conv_or_lin_bn("E1", (16, 8, 15, 1), 16, 0.0)
    conv_or_lin_bn("E2", (16, 16, 5, 1), 16, 0.0)
    conv_or_lin_bn("T2", (16, 16, 1, 10), 16, 0.0)
    conv_or_lin_bn("E3", (16, 16, 2, 1), 16, 0.0)
    # FC BatchNorm1d layers use default eps=1e-5
    conv_or_lin_bn("FC1", (256, 176), 256, 1e-5)
    conv_or_lin_bn("F_FC1", (64, 256), 64, 1e-5)
    # Final Linear(64, 2) without BN
    w = nrm((2, 64))
    b = nrm((2,), 0.02)
    p["F_FC2"] = dict(w=w, scale=jnp.ones((2,), jnp.float32), shift=b)
    return p


# --------------------------------------------------------------------------
# Host-side folding of the affine layers into kernel-ready constants
# --------------------------------------------------------------------------
def prepare_constants(params, H, W):
    f32, bf16 = jnp.float32, jnp.bfloat16

    # ---- fold T1 -> E1 -> E2 (everything before the first ELU is affine) ----
    WT1 = params["T1"]["w"][:, 0, 0, :].astype(f32)          # (8, 25)
    sT1, dT1 = params["T1"]["scale"], params["T1"]["shift"]
    WE1 = params["E1"]["w"][:, :, :, 0].astype(f32)          # (16, 8, 15)
    sE1, dE1 = params["E1"]["scale"], params["E1"]["shift"]
    WE2 = params["E2"]["w"][:, :, :, 0].astype(f32)          # (16, 16, 5)
    sE2, dE2 = params["E2"]["scale"], params["E2"]["shift"]

    KT1 = WT1.shape[1]              # 25
    KE1, SE1 = WE1.shape[2], 10     # 15, stride 10
    NE2 = WE2.shape[2]              # 5
    assert (H - KE1) // SE1 + 1 == NE2 and SE1 * (NE2 - 1) + KE1 == H, \
        "electrode geometry must collapse H exactly (H == 55)"

    WE2s = WE2 * sE2[:, None, None]
    WE1s = WE1 * sE1[:, None, None]
    WT1s = WT1 * sT1[:, None]

    A = jnp.einsum("ome,mcj->ocej", WE2s, WE1s)              # (16, 8, 5, 15)
    W_och = jnp.zeros((16, 8, H), f32)
    for e in range(NE2):                                     # scatter h = 10e + j
        W_och = W_och.at[:, :, SE1 * e:SE1 * e + KE1].add(A[:, :, e, :])
    wall_t = jnp.einsum("och,ck->koh", W_och, WT1s)          # (25, 16, 55)
    ball = (jnp.einsum("och,c->o", W_och, dT1)
            + jnp.einsum("ome,m->o", WE2s, dE1)
            + dE2).reshape(16, 1)

    # ---- time geometry and pooling matrices (floor semantics, 0/1 entries) --
    W1 = W - KT1 + 1                          # 320
    T1p = W1 // 5                             # 64
    KT2 = params["T2"]["w"].shape[3]          # 10
    W2 = T1p - KT2 + 1                        # 55
    T2p = W2 // 5                             # 11
    p1 = _pool_select_matrix(W1, 5).astype(bf16)             # (320, 64)
    P2 = _pool_select_matrix(W2, 5)                          # (55, 11)
    p2t = jnp.tile(P2, (1, 16)).astype(bf16)                 # (55, 176)
    mask16 = jnp.kron(jnp.eye(16, dtype=f32),
                      jnp.ones((1, T2p), f32))               # (16, 176)

    # ---- TEMP_Sequence2 conv (1,10) + BN; pool-1's 1/5 folded into weights --
    WT2 = params["T2"]["w"][:, :, 0, :].astype(f32)          # (16, 16, 10)
    sT2, dT2 = params["T2"]["scale"], params["T2"]["shift"]
    wt2f = jnp.transpose(WT2 * sT2[:, None, None], (2, 0, 1)) * (1.0 / 5.0)
    dt2 = dT2.reshape(16, 1)

    # ---- head: ELE_Sequence3 as kron(W^T, I_11) on flattened (c*11+p) rows --
    WE3 = params["E3"]["w"][:, :, :, 0].astype(f32)          # (16, 16, 2)
    sE3, dE3s = params["E3"]["scale"], params["E3"]["shift"]
    we3l = WE3[:, :, 0] * sE3[:, None]
    we3r = WE3[:, :, 1] * sE3[:, None]
    I11 = jnp.eye(T2p, dtype=f32)
    kl = jnp.kron(we3l.T, I11).astype(bf16)                  # (176, 176)
    kr = jnp.kron(we3r.T, I11).astype(bf16)
    de3 = jnp.repeat(dE3s, T2p).reshape(1, 16 * T2p)         # (1, 176)

    assert 16 * T2p == params["FC1"]["w"].shape[1], "flattened width must be 176"
    wfc1 = (params["FC1"]["w"] * params["FC1"]["scale"][:, None]).T.astype(bf16)
    dfc1 = params["FC1"]["shift"].reshape(1, 256)
    wfc2 = (params["F_FC1"]["w"] * params["F_FC1"]["scale"][:, None]).T.astype(bf16)
    dfc2 = params["F_FC1"]["shift"].reshape(1, 64)
    wfc3 = (params["F_FC2"]["w"] * params["F_FC2"]["scale"][:, None]).T.astype(bf16)
    dfc3 = params["F_FC2"]["shift"].reshape(1, 2)

    return dict(wall_t=wall_t.astype(bf16), ball=ball, p1=p1,
                wt2f=wt2f, dt2=dt2, p2t=p2t, mask16=mask16,
                kl=kl, kr=kr, de3=de3,
                wfc1=wfc1, dfc1=dfc1, wfc2=wfc2, dfc2=dfc2,
                wfc3=wfc3, dfc3=dfc3,
                W1=W1, T1p=T1p, W2=W2, T2p=T2p, KT1=KT1, KT2=KT2)


# --------------------------------------------------------------------------
# Forward pass (2 pallas_calls total)
# --------------------------------------------------------------------------
def eeg_progress_forward(prep, source_L, target_L, source_R, target_R):
    N, _, H, W = source_L.shape
    # batch the four hemisphere inputs: [sL, sR, tL, tR] along the sample axis
    X = jnp.concatenate([source_L, source_R, target_L, target_R], axis=0)
    X = X.reshape(4 * N, H, W).astype(jnp.bfloat16)
    S = 4 * N
    B = _pick_batch_block(S)

    Y = _branch_call(prep, X, B)       # (4N, 176) f32, flattened c*11+p rows
    out = _head_call(prep, Y, N)       # (N, 2)

    zero = jnp.array(0, jnp.int32)
    # (output, inter_hemisphere_loss, inter_location_loss_LR,
    #  inter_location_loss_ST, inter_glob_loss)
    return out, zero, zero, zero, zero


# --------------------------------------------------------------------------
if __name__ == "__main__":
    key = jax.random.PRNGKey(0)
    pkey, dkey = jax.random.split(key)
    params = make_params(pkey)

    # Smallest shapes consistent with the architecture (FC expects 16*11 = 176):
    # H=55 electrodes, W=344 time samples per hemisphere.
    N, H, W = 2, 55, 344
    prep = prepare_constants(params, H, W)

    k1, k2, k3, k4 = jax.random.split(dkey, 4)
    source_L = jax.random.normal(k1, (N, 1, H, W), dtype=jnp.float32)
    target_L = jax.random.normal(k2, (N, 1, H, W), dtype=jnp.float32)
    source_R = jax.random.normal(k3, (N, 1, H, W), dtype=jnp.float32)
    target_R = jax.random.normal(k4, (N, 1, H, W), dtype=jnp.float32)

    fwd = jax.jit(functools.partial(eeg_progress_forward, prep))
    outs = fwd(source_L, target_L, source_R, target_R)
    jax.block_until_ready(outs)

    assert outs[0].shape == (N, 2), outs[0].shape
    assert all(int(o) == 0 for o in outs[1:])
    assert bool(jnp.all(jnp.isfinite(outs[0])))
    print("KERNEL_OK")
</pallas_src>

<mosaic_0001>
module attributes {stable_mosaic.version = 11 : i64} {
  func.func @_branch_kernel(%arg0: i32, %arg1: memref<4x55x344xbf16, #tpu.memory_space<vmem>>, %arg2: memref<25x16x55xbf16, #tpu.memory_space<vmem>>, %arg3: memref<16x1xf32, #tpu.memory_space<vmem>>, %arg4: memref<320x64xbf16, #tpu.memory_space<vmem>>, %arg5: memref<10x64x64xbf16, #tpu.memory_space<vmem>>, %arg6: memref<64x1xf32, #tpu.memory_space<vmem>>, %arg7: memref<55x176xbf16, #tpu.memory_space<vmem>>, %arg8: memref<64x176xf32, #tpu.memory_space<vmem>>, %arg9: memref<4x64xf32, #tpu.memory_space<vmem>>, %arg10: memref<1x4x176xf32, #tpu.memory_space<vmem>>, %arg11: memref<64x320xbf16, #tpu.memory_space<vmem>>) attributes {dimension_semantics = [#tpu.dimension_semantics<parallel>], iteration_bounds = array<i64: 2>, scalar_prefetch = 0 : i64, scratch_operands = 1 : i64, tpu.core_type = #tpu.core_type<tc>, window_params = [{transform_indices = @transform_0, window_bounds = array<i64: 4, 55, 344>}, {pipeline_mode = #tpu.pipeline_mode<synchronous>, transform_indices = @transform_1, window_bounds = array<i64: 25, 16, 55>}, {pipeline_mode = #tpu.pipeline_mode<synchronous>, transform_indices = @transform_2, window_bounds = array<i64: 16, 1>}, {pipeline_mode = #tpu.pipeline_mode<synchronous>, transform_indices = @transform_3, window_bounds = array<i64: 320, 64>}, {pipeline_mode = #tpu.pipeline_mode<synchronous>, transform_indices = @transform_4, window_bounds = array<i64: 10, 64, 64>}, {pipeline_mode = #tpu.pipeline_mode<synchronous>, transform_indices = @transform_5, window_bounds = array<i64: 64, 1>}, {pipeline_mode = #tpu.pipeline_mode<synchronous>, transform_indices = @transform_6, window_bounds = array<i64: 55, 176>}, {pipeline_mode = #tpu.pipeline_mode<synchronous>, transform_indices = @transform_7, window_bounds = array<i64: 64, 176>}, {pipeline_mode = #tpu.pipeline_mode<synchronous>, transform_indices = @transform_8, window_bounds = array<i64: 4, 64>}, {transform_indices = @transform_9, window_bounds = array<i64: 1, 4, 176>}]} {
    %c0 = arith.constant 0 : index
    %c0_0 = arith.constant 0 : index
    %0 = vector.load %arg3[%c0, %c0_0] : memref<16x1xf32, #tpu.memory_space<vmem>>, vector<16x1xf32>
    %c0_i32 = arith.constant 0 : i32
    %c4_i32 = arith.constant 4 : i32
    %1 = arith.addi %c0_i32, %c4_i32 : i32
    %c1_i32 = arith.constant 1 : i32
    scf.for %arg12 = %c0_i32 to %1 step %c1_i32  : i32 {
      %78 = arith.index_cast %arg12 : i32 to index
      %c0_54 = arith.constant 0 : index
      %c0_55 = arith.constant 0 : index
      %79 = vector.load %arg1[%78, %c0_54, %c0_55] : memref<4x55x344xbf16, #tpu.memory_space<vmem>>, vector<1x55x344xbf16>
      %80 = vector.shape_cast %79 : vector<1x55x344xbf16> to vector<55x344xbf16>
      %cst_56 = arith.constant 0.000000e+00 : f32
      %81 = vector.broadcast %cst_56 : f32 to vector<16x320xf32>
      %c0_57 = arith.constant 0 : index
      %c0_58 = arith.constant 0 : index
      %c0_59 = arith.constant 0 : index
      %82 = vector.load %arg2[%c0_57, %c0_58, %c0_59] : memref<25x16x55xbf16, #tpu.memory_space<vmem>>, vector<1x16x55xbf16>
      %83 = vector.shape_cast %82 : vector<1x16x55xbf16> to vector<16x55xbf16>
      %84 = vector.extract_strided_slice %80 {offsets = [0, 0], sizes = [55, 320], strides = [1, 1]} : vector<55x344xbf16> to vector<55x320xbf16>
      %cst_60 = arith.constant dense<0.000000e+00> : vector<16x320xf32>
      %85 = tpu.matmul %83, %84, %cst_60 {dimension_numbers = #tpu.dot_dimension_numbers<[1], [0], [0], [1], [0, 0, 1, 1], [], []>} : vector<16x55xbf16>, vector<55x320xbf16>, vector<16x320xf32> -> vector<16x320xf32>
      %86 = arith.addf %81, %85 : vector<16x320xf32>
      %c1_61 = arith.constant 1 : index
      %c0_62 = arith.constant 0 : index
      %c0_63 = arith.constant 0 : index
      %87 = vector.load %arg2[%c1_61, %c0_62, %c0_63] : memref<25x16x55xbf16, #tpu.memory_space<vmem>>, vector<1x16x55xbf16>
      %88 = vector.shape_cast %87 : vector<1x16x55xbf16> to vector<16x55xbf16>
      %89 = vector.extract_strided_slice %80 {offsets = [0, 1], sizes = [55, 320], strides = [1, 1]} : vector<55x344xbf16> to vector<55x320xbf16>
      %cst_64 = arith.constant dense<0.000000e+00> : vector<16x320xf32>
      %90 = tpu.matmul %88, %89, %cst_64 {dimension_numbers = #tpu.dot_dimension_numbers<[1], [0], [0], [1], [0, 0, 1, 1], [], []>} : vector<16x55xbf16>, vector<55x320xbf16>, vector<16x320xf32> -> vector<16x320xf32>
      %91 = arith.addf %86, %90 : vector<16x320xf32>
      %c2_65 = arith.constant 2 : index
      %c0_66 = arith.constant 0 : index
      %c0_67 = arith.constant 0 : index
      %92 = vector.load %arg2[%c2_65, %c0_66, %c0_67] : memref<25x16x55xbf16, #tpu.memory_space<vmem>>, vector<1x16x55xbf16>
      %93 = vector.shape_cast %92 : vector<1x16x55xbf16> to vector<16x55xbf16>
      %94 = vector.extract_strided_slice %80 {offsets = [0, 2], sizes = [55, 320], strides = [1, 1]} : vector<55x344xbf16> to vector<55x320xbf16>
      %cst_68 = arith.constant dense<0.000000e+00> : vector<16x320xf32>
      %95 = tpu.matmul %93, %94, %cst_68 {dimension_numbers = #tpu.dot_dimension_numbers<[1], [0], [0], [1], [0, 0, 1, 1], [], []>} : vector<16x55xbf16>, vector<55x320xbf16>, vector<16x320xf32> -> vector<16x320xf32>
      %96 = arith.addf %91, %95 : vector<16x320xf32>
      %c3_69 = arith.constant 3 : index
      %c0_70 = arith.constant 0 : index
      %c0_71 = arith.constant 0 : index
      %97 = vector.load %arg2[%c3_69, %c0_70, %c0_71] : memref<25x16x55xbf16, #tpu.memory_space<vmem>>, vector<1x16x55xbf16>
      %98 = vector.shape_cast %97 : vector<1x16x55xbf16> to vector<16x55xbf16>
      %99 = vector.extract_strided_slice %80 {offsets = [0, 3], sizes = [55, 320], strides = [1, 1]} : vector<55x344xbf16> to vector<55x320xbf16>
      %cst_72 = arith.constant dense<0.000000e+00> : vector<16x320xf32>
      %100 = tpu.matmul %98, %99, %cst_72 {dimension_numbers = #tpu.dot_dimension_numbers<[1], [0], [0], [1], [0, 0, 1, 1], [], []>} : vector<16x55xbf16>, vector<55x320xbf16>, vector<16x320xf32> -> vector<16x320xf32>
      %101 = arith.addf %96, %100 : vector<16x320xf32>
      %c4_73 = arith.constant 4 : index
      %c0_74 = arith.constant 0 : index
      %c0_75 = arith.constant 0 : index
      %102 = vector.load %arg2[%c4_73, %c0_74, %c0_75] : memref<25x16x55xbf16, #tpu.memory_space<vmem>>, vector<1x16x55xbf16>
      %103 = vector.shape_cast %102 : vector<1x16x55xbf16> to vector<16x55xbf16>
      %104 = vector.extract_strided_slice %80 {offsets = [0, 4], sizes = [55, 320], strides = [1, 1]} : vector<55x344xbf16> to vector<55x320xbf16>
      %cst_76 = arith.constant dense<0.000000e+00> : vector<16x320xf32>
      %105 = tpu.matmul %103, %104, %cst_76 {dimension_numbers = #tpu.dot_dimension_numbers<[1], [0], [0], [1], [0, 0, 1, 1], [], []>} : vector<16x55xbf16>, vector<55x320xbf16>, vector<16x320xf32> -> vector<16x320xf32>
      %106 = arith.addf %101, %105 : vector<16x320xf32>
      %c5_77 = arith.constant 5 : index
      %c0_78 = arith.constant 0 : index
      %c0_79 = arith.constant 0 : index
      %107 = vector.load %arg2[%c5_77, %c0_78, %c0_79] : memref<25x16x55xbf16, #tpu.memory_space<vmem>>, vector<1x16x55xbf16>
      %108 = vector.shape_cast %107 : vector<1x16x55xbf16> to vector<16x55xbf16>
      %109 = vector.extract_strided_slice %80 {offsets = [0, 5], sizes = [55, 320], strides = [1, 1]} : vector<55x344xbf16> to vector<55x320xbf16>
      %cst_80 = arith.constant dense<0.000000e+00> : vector<16x320xf32>
      %110 = tpu.matmul %108, %109, %cst_80 {dimension_numbers = #tpu.dot_dimension_numbers<[1], [0], [0], [1], [0, 0, 1, 1], [], []>} : vector<16x55xbf16>, vector<55x320xbf16>, vector<16x320xf32> -> vector<16x320xf32>
      %111 = arith.addf %106, %110 : vector<16x320xf32>
      %c6_81 = arith.constant 6 : index
      %c0_82 = arith.constant 0 : index
      %c0_83 = arith.constant 0 : index
      %112 = vector.load %arg2[%c6_81, %c0_82, %c0_83] : memref<25x16x55xbf16, #tpu.memory_space<vmem>>, vector<1x16x55xbf16>
      %113 = vector.shape_cast %112 : vector<1x16x55xbf16> to vector<16x55xbf16>
      %114 = vector.extract_strided_slice %80 {offsets = [0, 6], sizes = [55, 320], strides = [1, 1]} : vector<55x344xbf16> to vector<55x320xbf16>
      %cst_84 = arith.constant dense<0.000000e+00> : vector<16x320xf32>
      %115 = tpu.matmul %113, %114, %cst_84 {dimension_numbers = #tpu.dot_dimension_numbers<[1], [0], [0], [1], [0, 0, 1, 1], [], []>} : vector<16x55xbf16>, vector<55x320xbf16>, vector<16x320xf32> -> vector<16x320xf32>
      %116 = arith.addf %111, %115 : vector<16x320xf32>
      %c7_85 = arith.constant 7 : index
      %c0_86 = arith.constant 0 : index
      %c0_87 = arith.constant 0 : index
      %117 = vector.load %arg2[%c7_85, %c0_86, %c0_87] : memref<25x16x55xbf16, #tpu.memory_space<vmem>>, vector<1x16x55xbf16>
      %118 = vector.shape_cast %117 : vector<1x16x55xbf16> to vector<16x55xbf16>
      %119 = vector.extract_strided_slice %80 {offsets = [0, 7], sizes = [55, 320], strides = [1, 1]} : vector<55x344xbf16> to vector<55x320xbf16>
      %cst_88 = arith.constant dense<0.000000e+00> : vector<16x320xf32>
      %120 = tpu.matmul %118, %119, %cst_88 {dimension_numbers = #tpu.dot_dimension_numbers<[1], [0], [0], [1], [0, 0, 1, 1], [], []>} : vector<16x55xbf16>, vector<55x320xbf16>, vector<16x320xf32> -> vector<16x320xf32>
      %121 = arith.addf %116, %120 : vector<16x320xf32>
      %c8_89 = arith.constant 8 : index
      %c0_90 = arith.constant 0 : index
      %c0_91 = arith.constant 0 : index
      %122 = vector.load %arg2[%c8_89, %c0_90, %c0_91] : memref<25x16x55xbf16, #tpu.memory_space<vmem>>, vector<1x16x55xbf16>
      %123 = vector.shape_cast %122 : vector<1x16x55xbf16> to vector<16x55xbf16>
      %124 = vector.extract_strided_slice %80 {offsets = [0, 8], sizes = [55, 320], strides = [1, 1]} : vector<55x344xbf16> to vector<55x320xbf16>
      %cst_92 = arith.constant dense<0.000000e+00> : vector<16x320xf32>
      %125 = tpu.matmul %123, %124, %cst_92 {dimension_numbers = #tpu.dot_dimension_numbers<[1], [0], [0], [1], [0, 0, 1, 1], [], []>} : vector<16x55xbf16>, vector<55x320xbf16>, vector<16x320xf32> -> vector<16x320xf32>
      %126 = arith.addf %121, %125 : vector<16x320xf32>
      %c9_93 = arith.constant 9 : index
      %c0_94 = arith.constant 0 : index
      %c0_95 = arith.constant 0 : index
      %127 = vector.load %arg2[%c9_93, %c0_94, %c0_95] : memref<25x16x55xbf16, #tpu.memory_space<vmem>>, vector<1x16x55xbf16>
      %128 = vector.shape_cast %127 : vector<1x16x55xbf16> to vector<16x55xbf16>
      %129 = vector.extract_strided_slice %80 {offsets = [0, 9], sizes = [55, 320], strides = [1, 1]} : vector<55x344xbf16> to vector<55x320xbf16>
      %cst_96 = arith.constant dense<0.000000e+00> : vector<16x320xf32>
      %130 = tpu.matmul %128, %129, %cst_96 {dimension_numbers = #tpu.dot_dimension_numbers<[1], [0], [0], [1], [0, 0, 1, 1], [], []>} : vector<16x55xbf16>, vector<55x320xbf16>, vector<16x320xf32> -> vector<16x320xf32>
      %131 = arith.addf %126, %130 : vector<16x320xf32>
      %c10 = arith.constant 10 : index
      %c0_97 = arith.constant 0 : index
      %c0_98 = arith.constant 0 : index
      %132 = vector.load %arg2[%c10, %c0_97, %c0_98] : memref<25x16x55xbf16, #tpu.memory_space<vmem>>, vector<1x16x55xbf16>
      %133 = vector.shape_cast %132 : vector<1x16x55xbf16> to vector<16x55xbf16>
      %134 = vector.extract_strided_slice %80 {offsets = [0, 10], sizes = [55, 320], strides = [1, 1]} : vector<55x344xbf16> to vector<55x320xbf16>
      %cst_99 = arith.constant dense<0.000000e+00> : vector<16x320xf32>
      %135 = tpu.matmul %133, %134, %cst_99 {dimension_numbers = #tpu.dot_dimension_numbers<[1], [0], [0], [1], [0, 0, 1, 1], [], []>} : vector<16x55xbf16>, vector<55x320xbf16>, vector<16x320xf32> -> vector<16x320xf32>
      %136 = arith.addf %131, %135 : vector<16x320xf32>
      %c11 = arith.constant 11 : index
      %c0_100 = arith.constant 0 : index
      %c0_101 = arith.constant 0 : index
      %137 = vector.load %arg2[%c11, %c0_100, %c0_101] : memref<25x16x55xbf16, #tpu.memory_space<vmem>>, vector<1x16x55xbf16>
      %138 = vector.shape_cast %137 : vector<1x16x55xbf16> to vector<16x55xbf16>
      %139 = vector.extract_strided_slice %80 {offsets = [0, 11], sizes = [55, 320], strides = [1, 1]} : vector<55x344xbf16> to vector<55x320xbf16>
      %cst_102 = arith.constant dense<0.000000e+00> : vector<16x320xf32>
      %140 = tpu.matmul %138, %139, %cst_102 {dimension_numbers = #tpu.dot_dimension_numbers<[1], [0], [0], [1], [0, 0, 1, 1], [], []>} : vector<16x55xbf16>, vector<55x320xbf16>, vector<16x320xf32> -> vector<16x320xf32>
      %141 = arith.addf %136, %140 : vector<16x320xf32>
      %c12 = arith.constant 12 : index
      %c0_103 = arith.constant 0 : index
      %c0_104 = arith.constant 0 : index
      %142 = vector.load %arg2[%c12, %c0_103, %c0_104] : memref<25x16x55xbf16, #tpu.memory_space<vmem>>, vector<1x16x55xbf16>
      %143 = vector.shape_cast %142 : vector<1x16x55xbf16> to vector<16x55xbf16>
      %144 = vector.extract_strided_slice %80 {offsets = [0, 12], sizes = [55, 320], strides = [1, 1]} : vector<55x344xbf16> to vector<55x320xbf16>
      %cst_105 = arith.constant dense<0.000000e+00> : vector<16x320xf32>
      %145 = tpu.matmul %143, %144, %cst_105 {dimension_numbers = #tpu.dot_dimension_numbers<[1], [0], [0], [1], [0, 0, 1, 1], [], []>} : vector<16x55xbf16>, vector<55x320xbf16>, vector<16x320xf32> -> vector<16x320xf32>
      %146 = arith.addf %141, %145 : vector<16x320xf32>
      %c13 = arith.constant 13 : index
      %c0_106 = arith.constant 0 : index
      %c0_107 = arith.constant 0 : index
      %147 = vector.load %arg2[%c13, %c0_106, %c0_107] : memref<25x16x55xbf16, #tpu.memory_space<vmem>>, vector<1x16x55xbf16>
      %148 = vector.shape_cast %147 : vector<1x16x55xbf16> to vector<16x55xbf16>
      %149 = vector.extract_strided_slice %80 {offsets = [0, 13], sizes = [55, 320], strides = [1, 1]} : vector<55x344xbf16> to vector<55x320xbf16>
      %cst_108 = arith.constant dense<0.000000e+00> : vector<16x320xf32>
      %150 = tpu.matmul %148, %149, %cst_108 {dimension_numbers = #tpu.dot_dimension_numbers<[1], [0], [0], [1], [0, 0, 1, 1], [], []>} : vector<16x55xbf16>, vector<55x320xbf16>, vector<16x320xf32> -> vector<16x320xf32>
      %151 = arith.addf %146, %150 : vector<16x320xf32>
      %c14 = arith.constant 14 : index
      %c0_109 = arith.constant 0 : index
      %c0_110 = arith.constant 0 : index
      %152 = vector.load %arg2[%c14, %c0_109, %c0_110] : memref<25x16x55xbf16, #tpu.memory_space<vmem>>, vector<1x16x55xbf16>
      %153 = vector.shape_cast %152 : vector<1x16x55xbf16> to vector<16x55xbf16>
      %154 = vector.extract_strided_slice %80 {offsets = [0, 14], sizes = [55, 320], strides = [1, 1]} : vector<55x344xbf16> to vector<55x320xbf16>
      %cst_111 = arith.constant dense<0.000000e+00> : vector<16x320xf32>
      %155 = tpu.matmul %153, %154, %cst_111 {dimension_numbers = #tpu.dot_dimension_numbers<[1], [0], [0], [1], [0, 0, 1, 1], [], []>} : vector<16x55xbf16>, vector<55x320xbf16>, vector<16x320xf32> -> vector<16x320xf32>
      %156 = arith.addf %151, %155 : vector<16x320xf32>
      %c15 = arith.constant 15 : index
      %c0_112 = arith.constant 0 : index
      %c0_113 = arith.constant 0 : index
      %157 = vector.load %arg2[%c15, %c0_112, %c0_113] : memref<25x16x55xbf16, #tpu.memory_space<vmem>>, vector<1x16x55xbf16>
      %158 = vector.shape_cast %157 : vector<1x16x55xbf16> to vector<16x55xbf16>
      %159 = vector.extract_strided_slice %80 {offsets = [0, 15], sizes = [55, 320], strides = [1, 1]} : vector<55x344xbf16> to vector<55x320xbf16>
      %cst_114 = arith.constant dense<0.000000e+00> : vector<16x320xf32>
      %160 = tpu.matmul %158, %159, %cst_114 {dimension_numbers = #tpu.dot_dimension_numbers<[1], [0], [0], [1], [0, 0, 1, 1], [], []>} : vector<16x55xbf16>, vector<55x320xbf16>, vector<16x320xf32> -> vector<16x320xf32>
      %161 = arith.addf %156, %160 : vector<16x320xf32>
      %c16 = arith.constant 16 : index
      %c0_115 = arith.constant 0 : index
      %c0_116 = arith.constant 0 : index
      %162 = vector.load %arg2[%c16, %c0_115, %c0_116] : memref<25x16x55xbf16, #tpu.memory_space<vmem>>, vector<1x16x55xbf16>
      %163 = vector.shape_cast %162 : vector<1x16x55xbf16> to vector<16x55xbf16>
      %164 = vector.extract_strided_slice %80 {offsets = [0, 16], sizes = [55, 320], strides = [1, 1]} : vector<55x344xbf16> to vector<55x320xbf16>
      %cst_117 = arith.constant dense<0.000000e+00> : vector<16x320xf32>
      %165 = tpu.matmul %163, %164, %cst_117 {dimension_numbers = #tpu.dot_dimension_numbers<[1], [0], [0], [1], [0, 0, 1, 1], [], []>} : vector<16x55xbf16>, vector<55x320xbf16>, vector<16x320xf32> -> vector<16x320xf32>
      %166 = arith.addf %161, %165 : vector<16x320xf32>
      %c17 = arith.constant 17 : index
      %c0_118 = arith.constant 0 : index
      %c0_119 = arith.constant 0 : index
      %167 = vector.load %arg2[%c17, %c0_118, %c0_119] : memref<25x16x55xbf16, #tpu.memory_space<vmem>>, vector<1x16x55xbf16>
      %168 = vector.shape_cast %167 : vector<1x16x55xbf16> to vector<16x55xbf16>
      %169 = vector.extract_strided_slice %80 {offsets = [0, 17], sizes = [55, 320], strides = [1, 1]} : vector<55x344xbf16> to vector<55x320xbf16>
      %cst_120 = arith.constant dense<0.000000e+00> : vector<16x320xf32>
      %170 = tpu.matmul %168, %169, %cst_120 {dimension_numbers = #tpu.dot_dimension_numbers<[1], [0], [0], [1], [0, 0, 1, 1], [], []>} : vector<16x55xbf16>, vector<55x320xbf16>, vector<16x320xf32> -> vector<16x320xf32>
      %171 = arith.addf %166, %170 : vector<16x320xf32>
      %c18 = arith.constant 18 : index
      %c0_121 = arith.constant 0 : index
      %c0_122 = arith.constant 0 : index
      %172 = vector.load %arg2[%c18, %c0_121, %c0_122] : memref<25x16x55xbf16, #tpu.memory_space<vmem>>, vector<1x16x55xbf16>
      %173 = vector.shape_cast %172 : vector<1x16x55xbf16> to vector<16x55xbf16>
      %174 = vector.extract_strided_slice %80 {offsets = [0, 18], sizes = [55, 320], strides = [1, 1]} : vector<55x344xbf16> to vector<55x320xbf16>
      %cst_123 = arith.constant dense<0.000000e+00> : vector<16x320xf32>
      %175 = tpu.matmul %173, %174, %cst_123 {dimension_numbers = #tpu.dot_dimension_numbers<[1], [0], [0], [1], [0, 0, 1, 1], [], []>} : vector<16x55xbf16>, vector<55x320xbf16>, vector<16x320xf32> -> vector<16x320xf32>
      %176 = arith.addf %171, %175 : vector<16x320xf32>
      %c19 = arith.constant 19 : index
      %c0_124 = arith.constant 0 : index
      %c0_125 = arith.constant 0 : index
      %177 = vector.load %arg2[%c19, %c0_124, %c0_125] : memref<25x16x55xbf16, #tpu.memory_space<vmem>>, vector<1x16x55xbf16>
      %178 = vector.shape_cast %177 : vector<1x16x55xbf16> to vector<16x55xbf16>
      %179 = vector.extract_strided_slice %80 {offsets = [0, 19], sizes = [55, 320], strides = [1, 1]} : vector<55x344xbf16> to vector<55x320xbf16>
      %cst_126 = arith.constant dense<0.000000e+00> : vector<16x320xf32>
      %180 = tpu.matmul %178, %179, %cst_126 {dimension_numbers = #tpu.dot_dimension_numbers<[1], [0], [0], [1], [0, 0, 1, 1], [], []>} : vector<16x55xbf16>, vector<55x320xbf16>, vector<16x320xf32> -> vector<16x320xf32>
      %181 = arith.addf %176, %180 : vector<16x320xf32>
      %c20 = arith.constant 20 : index
      %c0_127 = arith.constant 0 : index
      %c0_128 = arith.constant 0 : index
      %182 = vector.load %arg2[%c20, %c0_127, %c0_128] : memref<25x16x55xbf16, #tpu.memory_space<vmem>>, vector<1x16x55xbf16>
      %183 = vector.shape_cast %182 : vector<1x16x55xbf16> to vector<16x55xbf16>
      %184 = vector.extract_strided_slice %80 {offsets = [0, 20], sizes = [55, 320], strides = [1, 1]} : vector<55x344xbf16> to vector<55x320xbf16>
      %cst_129 = arith.constant dense<0.000000e+00> : vector<16x320xf32>
      %185 = tpu.matmul %183, %184, %cst_129 {dimension_numbers = #tpu.dot_dimension_numbers<[1], [0], [0], [1], [0, 0, 1, 1], [], []>} : vector<16x55xbf16>, vector<55x320xbf16>, vector<16x320xf32> -> vector<16x320xf32>
      %186 = arith.addf %181, %185 : vector<16x320xf32>
      %c21 = arith.constant 21 : index
      %c0_130 = arith.constant 0 : index
      %c0_131 = arith.constant 0 : index
      %187 = vector.load %arg2[%c21, %c0_130, %c0_131] : memref<25x16x55xbf16, #tpu.memory_space<vmem>>, vector<1x16x55xbf16>
      %188 = vector.shape_cast %187 : vector<1x16x55xbf16> to vector<16x55xbf16>
      %189 = vector.extract_strided_slice %80 {offsets = [0, 21], sizes = [55, 320], strides = [1, 1]} : vector<55x344xbf16> to vector<55x320xbf16>
      %cst_132 = arith.constant dense<0.000000e+00> : vector<16x320xf32>
      %190 = tpu.matmul %188, %189, %cst_132 {dimension_numbers = #tpu.dot_dimension_numbers<[1], [0], [0], [1], [0, 0, 1, 1], [], []>} : vector<16x55xbf16>, vector<55x320xbf16>, vector<16x320xf32> -> vector<16x320xf32>
      %191 = arith.addf %186, %190 : vector<16x320xf32>
      %c22 = arith.constant 22 : index
      %c0_133 = arith.constant 0 : index
      %c0_134 = arith.constant 0 : index
      %192 = vector.load %arg2[%c22, %c0_133, %c0_134] : memref<25x16x55xbf16, #tpu.memory_space<vmem>>, vector<1x16x55xbf16>
      %193 = vector.shape_cast %192 : vector<1x16x55xbf16> to vector<16x55xbf16>
      %194 = vector.extract_strided_slice %80 {offsets = [0, 22], sizes = [55, 320], strides = [1, 1]} : vector<55x344xbf16> to vector<55x320xbf16>
      %cst_135 = arith.constant dense<0.000000e+00> : vector<16x320xf32>
      %195 = tpu.matmul %193, %194, %cst_135 {dimension_numbers = #tpu.dot_dimension_numbers<[1], [0], [0], [1], [0, 0, 1, 1], [], []>} : vector<16x55xbf16>, vector<55x320xbf16>, vector<16x320xf32> -> vector<16x320xf32>
      %196 = arith.addf %191, %195 : vector<16x320xf32>
      %c23 = arith.constant 23 : index
      %c0_136 = arith.constant 0 : index
      %c0_137 = arith.constant 0 : index
      %197 = vector.load %arg2[%c23, %c0_136, %c0_137] : memref<25x16x55xbf16, #tpu.memory_space<vmem>>, vector<1x16x55xbf16>
      %198 = vector.shape_cast %197 : vector<1x16x55xbf16> to vector<16x55xbf16>
      %199 = vector.extract_strided_slice %80 {offsets = [0, 23], sizes = [55, 320], strides = [1, 1]} : vector<55x344xbf16> to vector<55x320xbf16>
      %cst_138 = arith.constant dense<0.000000e+00> : vector<16x320xf32>
      %200 = tpu.matmul %198, %199, %cst_138 {dimension_numbers = #tpu.dot_dimension_numbers<[1], [0], [0], [1], [0, 0, 1, 1], [], []>} : vector<16x55xbf16>, vector<55x320xbf16>, vector<16x320xf32> -> vector<16x320xf32>
      %201 = arith.addf %196, %200 : vector<16x320xf32>
      %c24 = arith.constant 24 : index
      %c0_139 = arith.constant 0 : index
      %c0_140 = arith.constant 0 : index
      %202 = vector.load %arg2[%c24, %c0_139, %c0_140] : memref<25x16x55xbf16, #tpu.memory_space<vmem>>, vector<1x16x55xbf16>
      %203 = vector.shape_cast %202 : vector<1x16x55xbf16> to vector<16x55xbf16>
      %204 = vector.extract_strided_slice %80 {offsets = [0, 24], sizes = [55, 320], strides = [1, 1]} : vector<55x344xbf16> to vector<55x320xbf16>
      %cst_141 = arith.constant dense<0.000000e+00> : vector<16x320xf32>
      %205 = tpu.matmul %203, %204, %cst_141 {dimension_numbers = #tpu.dot_dimension_numbers<[1], [0], [0], [1], [0, 0, 1, 1], [], []>} : vector<16x55xbf16>, vector<55x320xbf16>, vector<16x320xf32> -> vector<16x320xf32>
      %206 = arith.addf %201, %205 : vector<16x320xf32>
      %207 = vector.broadcast %0 : vector<16x1xf32> to vector<16x320xf32>
      %208 = arith.addf %206, %207 : vector<16x320xf32>
      %cst_142 = arith.constant 0.000000e+00 : f32
      %209 = vector.broadcast %cst_142 : f32 to vector<16x320xf32>
      %210 = arith.cmpf ogt, %208, %209 : vector<16x320xf32>
      %cst_143 = arith.constant 0.000000e+00 : f32
      %211 = vector.broadcast %cst_143 : f32 to vector<16x320xf32>
      %212 = arith.minimumf %208, %211 : vector<16x320xf32>
      %213 = math.exp %212 : vector<16x320xf32>
      %cst_144 = arith.constant 1.000000e+00 : f32
      %214 = vector.broadcast %cst_144 : f32 to vector<16x320xf32>
      %215 = arith.subf %213, %214 : vector<16x320xf32>
      %216 = arith.select %210, %208, %215 : vector<16x320xi1>, vector<16x320xf32>
      %c16_i32 = arith.constant 16 : i32
      %217 = arith.muli %arg12, %c16_i32 : i32
      %218 = tpu.assume_multiple %217, 16 : i32
      %219 = arith.truncf %216 : vector<16x320xf32> to vector<16x320xbf16>
      %220 = arith.index_cast %218 : i32 to index
      %c0_145 = arith.constant 0 : index
      %221 = vector.load %arg11[%220, %c0_145] : memref<64x320xbf16, #tpu.memory_space<vmem>>, vector<16x320xbf16>
      tpu.vector_store %arg11[%220, %c0_145], %219 {strides = array<i32>} : memref<64x320xbf16, #tpu.memory_space<vmem>>, vector<16x320xbf16>,
    }
    %c4_i32_1 = arith.constant 4 : i32
    %c0_2 = arith.constant 0 : index
    %c0_3 = arith.constant 0 : index
    %2 = vector.load %arg11[%c0_2, %c0_3] : memref<64x320xbf16, #tpu.memory_space<vmem>>, vector<64x320xbf16>
    %c0_4 = arith.constant 0 : index
    %c0_5 = arith.constant 0 : index
    %3 = vector.load %arg4[%c0_4, %c0_5] : memref<320x64xbf16, #tpu.memory_space<vmem>>, vector<320x64xbf16>
    %cst = arith.constant dense<0.000000e+00> : vector<64x64xf32>
    %4 = tpu.matmul %2, %3, %cst {dimension_numbers = #tpu.dot_dimension_numbers<[1], [0], [0], [1], [0, 0, 1, 1], [], []>} : vector<64x320xbf16>, vector<320x64xbf16>, vector<64x64xf32> -> vector<64x64xf32>
    %5 = arith.truncf %4 : vector<64x64xf32> to vector<64x64xbf16>
    %cst_6 = arith.constant 0.000000e+00 : f32
    %6 = vector.broadcast %cst_6 : f32 to vector<64x55xf32>
    %c0_7 = arith.constant 0 : index
    %c0_8 = arith.constant 0 : index
    %c0_9 = arith.constant 0 : index
    %7 = vector.load %arg5[%c0_7, %c0_8, %c0_9] : memref<10x64x64xbf16, #tpu.memory_space<vmem>>, vector<1x64x64xbf16>
    %8 = vector.shape_cast %7 : vector<1x64x64xbf16> to vector<64x64xbf16>
    %9 = vector.extract_strided_slice %5 {offsets = [0, 0], sizes = [64, 55], strides = [1, 1]} : vector<64x64xbf16> to vector<64x55xbf16>
    %cst_10 = arith.constant dense<0.000000e+00> : vector<64x55xf32>
    %10 = tpu.matmul %8, %9, %cst_10 {dimension_numbers = #tpu.dot_dimension_numbers<[1], [0], [0], [1], [0, 0, 1, 1], [], []>} : vector<64x64xbf16>, vector<64x55xbf16>, vector<64x55xf32> -> vector<64x55xf32>
    %11 = arith.addf %6, %10 : vector<64x55xf32>
    %c1 = arith.constant 1 : index
    %c0_11 = arith.constant 0 : index
    %c0_12 = arith.constant 0 : index
    %12 = vector.load %arg5[%c1, %c0_11, %c0_12] : memref<10x64x64xbf16, #tpu.memory_space<vmem>>, vector<1x64x64xbf16>
    %13 = vector.shape_cast %12 : vector<1x64x64xbf16> to vector<64x64xbf16>
    %14 = vector.extract_strided_slice %5 {offsets = [0, 1], sizes = [64, 55], strides = [1, 1]} : vector<64x64xbf16> to vector<64x55xbf16>
    %cst_13 = arith.constant dense<0.000000e+00> : vector<64x55xf32>
    %15 = tpu.matmul %13, %14, %cst_13 {dimension_numbers = #tpu.dot_dimension_numbers<[1], [0], [0], [1], [0, 0, 1, 1], [], []>} : vector<64x64xbf16>, vector<64x55xbf16>, vector<64x55xf32> -> vector<64x55xf32>
    %16 = arith.addf %11, %15 : vector<64x55xf32>
    %c2 = arith.constant 2 : index
    %c0_14 = arith.constant 0 : index
    %c0_15 = arith.constant 0 : index
    %17 = vector.load %arg5[%c2, %c0_14, %c0_15] : memref<10x64x64xbf16, #tpu.memory_space<vmem>>, vector<1x64x64xbf16>
    %18 = vector.shape_cast %17 : vector<1x64x64xbf16> to vector<64x64xbf16>
    %19 = vector.extract_strided_slice %5 {offsets = [0, 2], sizes = [64, 55], strides = [1, 1]} : vector<64x64xbf16> to vector<64x55xbf16>
    %cst_16 = arith.constant dense<0.000000e+00> : vector<64x55xf32>
    %20 = tpu.matmul %18, %19, %cst_16 {dimension_numbers = #tpu.dot_dimension_numbers<[1], [0], [0], [1], [0, 0, 1, 1], [], []>} : vector<64x64xbf16>, vector<64x55xbf16>, vector<64x55xf32> -> vector<64x55xf32>
    %21 = arith.addf %16, %20 : vector<64x55xf32>
    %c3 = arith.constant 3 : index
    %c0_17 = arith.constant 0 : index
    %c0_18 = arith.constant 0 : index
    %22 = vector.load %arg5[%c3, %c0_17, %c0_18] : memref<10x64x64xbf16, #tpu.memory_space<vmem>>, vector<1x64x64xbf16>
    %23 = vector.shape_cast %22 : vector<1x64x64xbf16> to vector<64x64xbf16>
    %24 = vector.extract_strided_slice %5 {offsets = [0, 3], sizes = [64, 55], strides = [1, 1]} : vector<64x64xbf16> to vector<64x55xbf16>
    %cst_19 = arith.constant dense<0.000000e+00> : vector<64x55xf32>
    %25 = tpu.matmul %23, %24, %cst_19 {dimension_numbers = #tpu.dot_dimension_numbers<[1], [0], [0], [1], [0, 0, 1, 1], [], []>} : vector<64x64xbf16>, vector<64x55xbf16>, vector<64x55xf32> -> vector<64x55xf32>
    %26 = arith.addf %21, %25 : vector<64x55xf32>
    %c4 = arith.constant 4 : index
    %c0_20 = arith.constant 0 : index
    %c0_21 = arith.constant 0 : index
    %27 = vector.load %arg5[%c4, %c0_20, %c0_21] : memref<10x64x64xbf16, #tpu.memory_space<vmem>>, vector<1x64x64xbf16>
    %28 = vector.shape_cast %27 : vector<1x64x64xbf16> to vector<64x64xbf16>
    %29 = vector.extract_strided_slice %5 {offsets = [0, 4], sizes = [64, 55], strides = [1, 1]} : vector<64x64xbf16> to vector<64x55xbf16>
    %cst_22 = arith.constant dense<0.000000e+00> : vector<64x55xf32>
    %30 = tpu.matmul %28, %29, %cst_22 {dimension_numbers = #tpu.dot_dimension_numbers<[1], [0], [0], [1], [0, 0, 1, 1], [], []>} : vector<64x64xbf16>, vector<64x55xbf16>, vector<64x55xf32> -> vector<64x55xf32>
    %31 = arith.addf %26, %30 : vector<64x55xf32>
    %c5 = arith.constant 5 : index
    %c0_23 = arith.constant 0 : index
    %c0_24 = arith.constant 0 : index
    %32 = vector.load %arg5[%c5, %c0_23, %c0_24] : memref<10x64x64xbf16, #tpu.memory_space<vmem>>, vector<1x64x64xbf16>
    %33 = vector.shape_cast %32 : vector<1x64x64xbf16> to vector<64x64xbf16>
    %34 = vector.extract_strided_slice %5 {offsets = [0, 5], sizes = [64, 55], strides = [1, 1]} : vector<64x64xbf16> to vector<64x55xbf16>
    %cst_25 = arith.constant dense<0.000000e+00> : vector<64x55xf32>
    %35 = tpu.matmul %33, %34, %cst_25 {dimension_numbers = #tpu.dot_dimension_numbers<[1], [0], [0], [1], [0, 0, 1, 1], [], []>} : vector<64x64xbf16>, vector<64x55xbf16>, vector<64x55xf32> -> vector<64x55xf32>
    %36 = arith.addf %31, %35 : vector<64x55xf32>
    %c6 = arith.constant 6 : index
    %c0_26 = arith.constant 0 : index
    %c0_27 = arith.constant 0 : index
    %37 = vector.load %arg5[%c6, %c0_26, %c0_27] : memref<10x64x64xbf16, #tpu.memory_space<vmem>>, vector<1x64x64xbf16>
    %38 = vector.shape_cast %37 : vector<1x64x64xbf16> to vector<64x64xbf16>
    %39 = vector.extract_strided_slice %5 {offsets = [0, 6], sizes = [64, 55], strides = [1, 1]} : vector<64x64xbf16> to vector<64x55xbf16>
    %cst_28 = arith.constant dense<0.000000e+00> : vector<64x55xf32>
    %40 = tpu.matmul %38, %39, %cst_28 {dimension_numbers = #tpu.dot_dimension_numbers<[1], [0], [0], [1], [0, 0, 1, 1], [], []>} : vector<64x64xbf16>, vector<64x55xbf16>, vector<64x55xf32> -> vector<64x55xf32>
    %41 = arith.addf %36, %40 : vector<64x55xf32>
    %c7 = arith.constant 7 : index
    %c0_29 = arith.constant 0 : index
    %c0_30 = arith.constant 0 : index
    %42 = vector.load %arg5[%c7, %c0_29, %c0_30] : memref<10x64x64xbf16, #tpu.memory_space<vmem>>, vector<1x64x64xbf16>
    %43 = vector.shape_cast %42 : vector<1x64x64xbf16> to vector<64x64xbf16>
    %44 = vector.extract_strided_slice %5 {offsets = [0, 7], sizes = [64, 55], strides = [1, 1]} : vector<64x64xbf16> to vector<64x55xbf16>
    %cst_31 = arith.constant dense<0.000000e+00> : vector<64x55xf32>
    %45 = tpu.matmul %43, %44, %cst_31 {dimension_numbers = #tpu.dot_dimension_numbers<[1], [0], [0], [1], [0, 0, 1, 1], [], []>} : vector<64x64xbf16>, vector<64x55xbf16>, vector<64x55xf32> -> vector<64x55xf32>
    %46 = arith.addf %41, %45 : vector<64x55xf32>
    %c8 = arith.constant 8 : index
    %c0_32 = arith.constant 0 : index
    %c0_33 = arith.constant 0 : index
    %47 = vector.load %arg5[%c8, %c0_32, %c0_33] : memref<10x64x64xbf16, #tpu.memory_space<vmem>>, vector<1x64x64xbf16>
    %48 = vector.shape_cast %47 : vector<1x64x64xbf16> to vector<64x64xbf16>
    %49 = vector.extract_strided_slice %5 {offsets = [0, 8], sizes = [64, 55], strides = [1, 1]} : vector<64x64xbf16> to vector<64x55xbf16>
    %cst_34 = arith.constant dense<0.000000e+00> : vector<64x55xf32>
    %50 = tpu.matmul %48, %49, %cst_34 {dimension_numbers = #tpu.dot_dimension_numbers<[1], [0], [0], [1], [0, 0, 1, 1], [], []>} : vector<64x64xbf16>, vector<64x55xbf16>, vector<64x55xf32> -> vector<64x55xf32>
    %51 = arith.addf %46, %50 : vector<64x55xf32>
    %c9 = arith.constant 9 : index
    %c0_35 = arith.constant 0 : index
    %c0_36 = arith.constant 0 : index
    %52 = vector.load %arg5[%c9, %c0_35, %c0_36] : memref<10x64x64xbf16, #tpu.memory_space<vmem>>, vector<1x64x64xbf16>
    %53 = vector.shape_cast %52 : vector<1x64x64xbf16> to vector<64x64xbf16>
    %54 = vector.extract_strided_slice %5 {offsets = [0, 9], sizes = [64, 55], strides = [1, 1]} : vector<64x64xbf16> to vector<64x55xbf16>
    %cst_37 = arith.constant dense<0.000000e+00> : vector<64x55xf32>
    %55 = tpu.matmul %53, %54, %cst_37 {dimension_numbers = #tpu.dot_dimension_numbers<[1], [0], [0], [1], [0, 0, 1, 1], [], []>} : vector<64x64xbf16>, vector<64x55xbf16>, vector<64x55xf32> -> vector<64x55xf32>
    %56 = arith.addf %51, %55 : vector<64x55xf32>
    %c0_38 = arith.constant 0 : index
    %c0_39 = arith.constant 0 : index
    %57 = vector.load %arg6[%c0_38, %c0_39] : memref<64x1xf32, #tpu.memory_space<vmem>>, vector<64x1xf32>
    %58 = vector.broadcast %57 : vector<64x1xf32> to vector<64x55xf32>
    %59 = arith.addf %56, %58 : vector<64x55xf32>
    %cst_40 = arith.constant 0.000000e+00 : f32
    %60 = vector.broadcast %cst_40 : f32 to vector<64x55xf32>
    %61 = arith.cmpf ogt, %59, %60 : vector<64x55xf32>
    %cst_41 = arith.constant 0.000000e+00 : f32
    %62 = vector.broadcast %cst_41 : f32 to vector<64x55xf32>
    %63 = arith.minimumf %59, %62 : vector<64x55xf32>
    %64 = math.exp %63 : vector<64x55xf32>
    %cst_42 = arith.constant 1.000000e+00 : f32
    %65 = vector.broadcast %cst_42 : f32 to vector<64x55xf32>
    %66 = arith.subf %64, %65 : vector<64x55xf32>
    %67 = arith.select %61, %59, %66 : vector<64x55xi1>, vector<64x55xf32>
    %68 = arith.truncf %67 : vector<64x55xf32> to vector<64x55xbf16>
    %c0_43 = arith.constant 0 : index
    %c0_44 = arith.constant 0 : index
    %69 = vector.load %arg7[%c0_43, %c0_44] : memref<55x176xbf16, #tpu.memory_space<vmem>>, vector<55x176xbf16>
    %cst_45 = arith.constant dense<0.000000e+00> : vector<64x176xf32>
    %70 = tpu.matmul %68, %69, %cst_45 {dimension_numbers = #tpu.dot_dimension_numbers<[1], [0], [0], [1], [0, 0, 1, 1], [], []>} : vector<64x55xbf16>, vector<55x176xbf16>, vector<64x176xf32> -> vector<64x176xf32>
    %c0_46 = arith.constant 0 : index
    %c0_47 = arith.constant 0 : index
    %71 = vector.load %arg8[%c0_46, %c0_47] : memref<64x176xf32, #tpu.memory_space<vmem>>, vector<64x176xf32>
    %72 = arith.mulf %70, %71 : vector<64x176xf32>
    %c0_48 = arith.constant 0 : index
    %c0_49 = arith.constant 0 : index
    %73 = vector.load %arg9[%c0_48, %c0_49] : memref<4x64xf32, #tpu.memory_space<vmem>>, vector<4x64xf32>
    %cst_50 = arith.constant dense<0.000000e+00> : vector<4x176xf32>
    %74 = tpu.matmul %73, %72, %cst_50 {dimension_numbers = #tpu.dot_dimension_numbers<[1], [0], [0], [1], [0, 0, 1, 1], [], []>} : vector<4x64xf32>, vector<64x176xf32>, vector<4x176xf32> -> vector<4x176xf32>
    %c0_51 = arith.constant 0 : index
    %c0_52 = arith.constant 0 : index
    %c0_53 = arith.constant 0 : index
    %75 = vector.load %arg10[%c0_51, %c0_52, %c0_53] : memref<1x4x176xf32, #tpu.memory_space<vmem>>, vector<1x4x176xf32>
    %76 = vector.shape_cast %75 : vector<1x4x176xf32> to vector<4x176xf32>
    %77 = vector.shape_cast %74 : vector<4x176xf32> to vector<1x4x176xf32>
    tpu.vector_store %arg10[%c0_51, %c0_52, %c0_53], %77 {strides = array<i32>} : memref<1x4x176xf32, #tpu.memory_space<vmem>>, vector<1x4x176xf32>,
    return
  }
  func.func @transform_0(%arg0: i32) -> (i32, i32, i32) {
    %c0_i32 = arith.constant 0 : i32
    %c0_i32_0 = arith.constant 0 : i32
    %c0_i32_1 = arith.constant 0 : i32
    return %arg0, %c0_i32, %c0_i32_0 : i32, i32, i32
  }
  func.func @transform_1(%arg0: i32) -> (i32, i32, i32) {
    %c0_i32 = arith.constant 0 : i32
    %c0_i32_0 = arith.constant 0 : i32
    %c0_i32_1 = arith.constant 0 : i32
    %c0_i32_2 = arith.constant 0 : i32
    return %c0_i32, %c0_i32_0, %c0_i32_1 : i32, i32, i32
  }
  func.func @transform_2(%arg0: i32) -> (i32, i32) {
    %c0_i32 = arith.constant 0 : i32
    %c0_i32_0 = arith.constant 0 : i32
    %c0_i32_1 = arith.constant 0 : i32
    return %c0_i32, %c0_i32_0 : i32, i32
  }
  func.func @transform_3(%arg0: i32) -> (i32, i32) {
    %c0_i32 = arith.constant 0 : i32
    %c0_i32_0 = arith.constant 0 : i32
    %c0_i32_1 = arith.constant 0 : i32
    return %c0_i32, %c0_i32_0 : i32, i32
  }
  func.func @transform_4(%arg0: i32) -> (i32, i32, i32) {
    %c0_i32 = arith.constant 0 : i32
    %c0_i32_0 = arith.constant 0 : i32
    %c0_i32_1 = arith.constant 0 : i32
    %c0_i32_2 = arith.constant 0 : i32
    return %c0_i32, %c0_i32_0, %c0_i32_1 : i32, i32, i32
  }
  func.func @transform_5(%arg0: i32) -> (i32, i32) {
    %c0_i32 = arith.constant 0 : i32
    %c0_i32_0 = arith.constant 0 : i32
    %c0_i32_1 = arith.constant 0 : i32
    return %c0_i32, %c0_i32_0 : i32, i32
  }
  func.func @transform_6(%arg0: i32) -> (i32, i32) {
    %c0_i32 = arith.constant 0 : i32
    %c0_i32_0 = arith.constant 0 : i32
    %c0_i32_1 = arith.constant 0 : i32
    return %c0_i32, %c0_i32_0 : i32, i32
  }
  func.func @transform_7(%arg0: i32) -> (i32, i32) {
    %c0_i32 = arith.constant 0 : i32
    %c0_i32_0 = arith.constant 0 : i32
    %c0_i32_1 = arith.constant 0 : i32
    return %c0_i32, %c0_i32_0 : i32, i32
  }
  func.func @transform_8(%arg0: i32) -> (i32, i32) {
    %c0_i32 = arith.constant 0 : i32
    %c0_i32_0 = arith.constant 0 : i32
    %c0_i32_1 = arith.constant 0 : i32
    return %c0_i32, %c0_i32_0 : i32, i32
  }
  func.func @transform_9(%arg0: i32) -> (i32, i32, i32) {
    %c0_i32 = arith.constant 0 : i32
    %c0_i32_0 = arith.constant 0 : i32
    %c0_i32_1 = arith.constant 0 : i32
    return %arg0, %c0_i32, %c0_i32_0 : i32, i32, i32
  }
}

module attributes {stable_mosaic.version = 11 : i64} {
  func.func @_head_kernel(%arg0: memref<8x176xf32, #tpu.memory_space<vmem>>, %arg1: memref<176x176xbf16, #tpu.memory_space<vmem>>, %arg2: memref<176x176xbf16, #tpu.memory_space<vmem>>, %arg3: memref<1x176xf32, #tpu.memory_space<vmem>>, %arg4: memref<176x256xbf16, #tpu.memory_space<vmem>>, %arg5: memref<1x256xf32, #tpu.memory_space<vmem>>, %arg6: memref<256x64xbf16, #tpu.memory_space<vmem>>, %arg7: memref<1x64xf32, #tpu.memory_space<vmem>>, %arg8: memref<64x2xbf16, #tpu.memory_space<vmem>>, %arg9: memref<1x2xf32, #tpu.memory_space<vmem>>, %arg10: memref<2x2xf32, #tpu.memory_space<vmem>>) attributes {dimension_semantics = [], scalar_prefetch = 0 : i64, scratch_operands = 0 : i64, tpu.core_type = #tpu.core_type<tc>} {
    %c0 = arith.constant 0 : index
    %c0_0 = arith.constant 0 : index
    %0 = vector.load %arg0[%c0, %c0_0] : memref<8x176xf32, #tpu.memory_space<vmem>>, vector<8x176xf32>
    %1 = vector.extract_strided_slice %0 {offsets = [0, 0], sizes = [2, 176], strides = [1, 1]} : vector<8x176xf32> to vector<2x176xf32>
    %2 = vector.extract_strided_slice %0 {offsets = [2, 0], sizes = [2, 176], strides = [1, 1]} : vector<8x176xf32> to vector<2x176xf32>
    %3 = vector.extract_strided_slice %0 {offsets = [4, 0], sizes = [2, 176], strides = [1, 1]} : vector<8x176xf32> to vector<2x176xf32>
    %4 = vector.extract_strided_slice %0 {offsets = [6, 0], sizes = [2, 176], strides = [1, 1]} : vector<8x176xf32> to vector<2x176xf32>
    %5 = arith.mulf %3, %3 : vector<2x176xf32>
    %6 = vector.shape_cast %5 : vector<2x176xf32> to vector<1x2x176xf32>
    %cst = arith.constant dense<0.000000e+00> : vector<1xf32>
    %7 = vector.multi_reduction <add>, %6, %cst [1, 2] : vector<1x2x176xf32> to vector<1xf32>
    %8 = vector.shape_cast %7 : vector<1xf32> to vector<1x1x1xf32>
    %9 = vector.extract %8[0, 0, 0] : f32 from vector<1x1x1xf32>
    %10 = vector.broadcast %9 : f32 to vector<1x1xf32>
    %11 = arith.mulf %1, %1 : vector<2x176xf32>
    %12 = vector.shape_cast %11 : vector<2x176xf32> to vector<1x2x176xf32>
    %cst_1 = arith.constant dense<0.000000e+00> : vector<1xf32>
    %13 = vector.multi_reduction <add>, %12, %cst_1 [1, 2] : vector<1x2x176xf32> to vector<1xf32>
    %14 = vector.shape_cast %13 : vector<1xf32> to vector<1x1x1xf32>
    %15 = vector.extract %14[0, 0, 0] : f32 from vector<1x1x1xf32>
    %16 = vector.broadcast %15 : f32 to vector<1x1xf32>
    %17 = arith.divf %10, %16 : vector<1x1xf32>
    %18 = arith.mulf %4, %4 : vector<2x176xf32>
    %19 = vector.shape_cast %18 : vector<2x176xf32> to vector<1x2x176xf32>
    %cst_2 = arith.constant dense<0.000000e+00> : vector<1xf32>
    %20 = vector.multi_reduction <add>, %19, %cst_2 [1, 2] : vector<1x2x176xf32> to vector<1xf32>
    %21 = vector.shape_cast %20 : vector<1xf32> to vector<1x1x1xf32>
    %22 = vector.extract %21[0, 0, 0] : f32 from vector<1x1x1xf32>
    %23 = vector.broadcast %22 : f32 to vector<1x1xf32>
    %24 = arith.mulf %2, %2 : vector<2x176xf32>
    %25 = vector.shape_cast %24 : vector<2x176xf32> to vector<1x2x176xf32>
    %cst_3 = arith.constant dense<0.000000e+00> : vector<1xf32>
    %26 = vector.multi_reduction <add>, %25, %cst_3 [1, 2] : vector<1x2x176xf32> to vector<1xf32>
    %27 = vector.shape_cast %26 : vector<1xf32> to vector<1x1x1xf32>
    %28 = vector.extract %27[0, 0, 0] : f32 from vector<1x1x1xf32>
    %29 = vector.broadcast %28 : f32 to vector<1x1xf32>
    %30 = arith.divf %23, %29 : vector<1x1xf32>
    %31 = vector.broadcast %17 : vector<1x1xf32> to vector<2x176xf32>
    %32 = arith.mulf %31, %1 : vector<2x176xf32>
    %33 = arith.truncf %32 : vector<2x176xf32> to vector<2x176xbf16>
    %34 = vector.broadcast %30 : vector<1x1xf32> to vector<2x176xf32>
    %35 = arith.mulf %34, %2 : vector<2x176xf32>
    %36 = arith.truncf %35 : vector<2x176xf32> to vector<2x176xbf16>
    %c0_4 = arith.constant 0 : index
    %c0_5 = arith.constant 0 : index
    %37 = vector.load %arg1[%c0_4, %c0_5] : memref<176x176xbf16, #tpu.memory_space<vmem>>, vector<176x176xbf16>
    %cst_6 = arith.constant dense<0.000000e+00> : vector<2x176xf32>
    %38 = tpu.matmul %33, %37, %cst_6 {dimension_numbers = #tpu.dot_dimension_numbers<[1], [0], [0], [1], [0, 0, 1, 1], [], []>} : vector<2x176xbf16>, vector<176x176xbf16>, vector<2x176xf32> -> vector<2x176xf32>
    %c0_7 = arith.constant 0 : index
    %c0_8 = arith.constant 0 : index
    %39 = vector.load %arg2[%c0_7, %c0_8] : memref<176x176xbf16, #tpu.memory_space<vmem>>, vector<176x176xbf16>
    %cst_9 = arith.constant dense<0.000000e+00> : vector<2x176xf32>
    %40 = tpu.matmul %36, %39, %cst_9 {dimension_numbers = #tpu.dot_dimension_numbers<[1], [0], [0], [1], [0, 0, 1, 1], [], []>} : vector<2x176xbf16>, vector<176x176xbf16>, vector<2x176xf32> -> vector<2x176xf32>
    %41 = arith.addf %38, %40 : vector<2x176xf32>
    %c0_10 = arith.constant 0 : index
    %c0_11 = arith.constant 0 : index
    %42 = vector.load %arg3[%c0_10, %c0_11] : memref<1x176xf32, #tpu.memory_space<vmem>>, vector<1x176xf32>
    %43 = vector.broadcast %42 : vector<1x176xf32> to vector<2x176xf32>
    %44 = arith.addf %41, %43 : vector<2x176xf32>
    %cst_12 = arith.constant 0.000000e+00 : f32
    %45 = vector.broadcast %cst_12 : f32 to vector<2x176xf32>
    %46 = arith.cmpf ogt, %44, %45 : vector<2x176xf32>
    %cst_13 = arith.constant 0.000000e+00 : f32
    %47 = vector.broadcast %cst_13 : f32 to vector<2x176xf32>
    %48 = arith.minimumf %44, %47 : vector<2x176xf32>
    %49 = math.exp %48 : vector<2x176xf32>
    %cst_14 = arith.constant 1.000000e+00 : f32
    %50 = vector.broadcast %cst_14 : f32 to vector<2x176xf32>
    %51 = arith.subf %49, %50 : vector<2x176xf32>
    %52 = arith.select %46, %44, %51 : vector<2x176xi1>, vector<2x176xf32>
    %53 = arith.truncf %52 : vector<2x176xf32> to vector<2x176xbf16>
    %c0_15 = arith.constant 0 : index
    %c0_16 = arith.constant 0 : index
    %54 = vector.load %arg4[%c0_15, %c0_16] : memref<176x256xbf16, #tpu.memory_space<vmem>>, vector<176x256xbf16>
    %cst_17 = arith.constant dense<0.000000e+00> : vector<2x256xf32>
    %55 = tpu.matmul %53, %54, %cst_17 {dimension_numbers = #tpu.dot_dimension_numbers<[1], [0], [0], [1], [0, 0, 1, 1], [], []>} : vector<2x176xbf16>, vector<176x256xbf16>, vector<2x256xf32> -> vector<2x256xf32>
    %c0_18 = arith.constant 0 : index
    %c0_19 = arith.constant 0 : index
    %56 = vector.load %arg5[%c0_18, %c0_19] : memref<1x256xf32, #tpu.memory_space<vmem>>, vector<1x256xf32>
    %57 = vector.broadcast %56 : vector<1x256xf32> to vector<2x256xf32>
    %58 = arith.addf %55, %57 : vector<2x256xf32>
    %59 = arith.truncf %58 : vector<2x256xf32> to vector<2x256xbf16>
    %c0_20 = arith.constant 0 : index
    %c0_21 = arith.constant 0 : index
    %60 = vector.load %arg6[%c0_20, %c0_21] : memref<256x64xbf16, #tpu.memory_space<vmem>>, vector<256x64xbf16>
    %cst_22 = arith.constant dense<0.000000e+00> : vector<2x64xf32>
    %61 = tpu.matmul %59, %60, %cst_22 {dimension_numbers = #tpu.dot_dimension_numbers<[1], [0], [0], [1], [0, 0, 1, 1], [], []>} : vector<2x256xbf16>, vector<256x64xbf16>, vector<2x64xf32> -> vector<2x64xf32>
    %c0_23 = arith.constant 0 : index
    %c0_24 = arith.constant 0 : index
    %62 = vector.load %arg7[%c0_23, %c0_24] : memref<1x64xf32, #tpu.memory_space<vmem>>, vector<1x64xf32>
    %63 = vector.broadcast %62 : vector<1x64xf32> to vector<2x64xf32>
    %64 = arith.addf %61, %63 : vector<2x64xf32>
    %65 = arith.truncf %64 : vector<2x64xf32> to vector<2x64xbf16>
    %c0_25 = arith.constant 0 : index
    %c0_26 = arith.constant 0 : index
    %66 = vector.load %arg8[%c0_25, %c0_26] : memref<64x2xbf16, #tpu.memory_space<vmem>>, vector<64x2xbf16>
    %cst_27 = arith.constant dense<0.000000e+00> : vector<2x2xf32>
    %67 = tpu.matmul %65, %66, %cst_27 {dimension_numbers = #tpu.dot_dimension_numbers<[1], [0], [0], [1], [0, 0, 1, 1], [], []>} : vector<2x64xbf16>, vector<64x2xbf16>, vector<2x2xf32> -> vector<2x2xf32>
    %c0_28 = arith.constant 0 : index
    %c0_29 = arith.constant 0 : index
    %68 = vector.load %arg9[%c0_28, %c0_29] : memref<1x2xf32, #tpu.memory_space<vmem>>, vector<1x2xf32>
    %69 = vector.broadcast %68 : vector<1x2xf32> to vector<2x2xf32>
    %70 = arith.addf %67, %69 : vector<2x2xf32>
    %c0_30 = arith.constant 0 : index
    %c0_31 = arith.constant 0 : index
    %71 = vector.load %arg10[%c0_30, %c0_31] : memref<2x2xf32, #tpu.memory_space<vmem>>, vector<2x2xf32>
    tpu.vector_store %arg10[%c0_30, %c0_31], %70 {strides = array<i32>} : memref<2x2xf32, #tpu.memory_space<vmem>>, vector<2x2xf32>,
    return
  }
}

</mosaic_0001>

<bundles_post_ra>
// kernel: eeg_progress_forward.3
= control target key start
LH: loop header
LB: loop body
LE: loop exit
PB: predicated region body
PF: predicated region fallthrough
CT: control target
= control target key end

     0   :  { %vm47_vm0 = vcmask 1041408   ;;  %vm49_vm1 = vcmask 386048   ;;  %s1636_s0 = inlined_call_operand.vmem [shape: f32[8,176], index: 0, kind: input, shape index: {}]   ;;  %s1637_s1 = inlined_call_operand.vmem [shape: bf16[176,176], index: 1, kind: input, shape index: {}]   ;;  %s1638_s2 = inlined_call_operand.vmem [shape: bf16[176,176], index: 2, kind: input, shape index: {}]   ;;  %s1639_s3 = inlined_call_operand.vmem [shape: f32[1,176], index: 3, kind: input, shape index: {}]   ;;  %s1640_s4 = inlined_call_operand.vmem [shape: bf16[176,256], index: 4, kind: input, shape index: {}]   ;;  %s1641_s5 = inlined_call_operand.vmem [shape: f32[1,256], index: 5, kind: input, shape index: {}]   ;;  %s1642_s6 = inlined_call_operand.vmem [shape: bf16[256,64], index: 6, kind: input, shape index: {}]   ;;  %s1643_s7 = inlined_call_operand.vmem [shape: f32[1,64], index: 7, kind: input, shape index: {}]   ;;  %s1644_s8 = inlined_call_operand.vmem [shape: bf16[64,2], index: 8, kind: input, shape index: {}]   ;;  %s1645_s9 = inlined_call_operand.vmem [shape: f32[1,2], index: 9, kind: input, shape index: {}]   ;;  %s1646_s10 = inlined_call_operand.hbm [shape: f32[2,2], index: 10, kind: output, shape index: {}]  }
   0x1   :  { %v1328_v0 = vld [vmem:[%s1636_s0] sm:$0xff]  ;;  %v1333_v1 = vld [vmem:[%s1636_s0 + $0x8] sm:$0xff] }
   0x2   :  { %v39_v2 = vmul.f32 %v1328_v0, %v1328_v0  ;;  %v40_v3 = vmul.f32 %v1333_v1, %v1333_v1 }
   0x4   :  { %v77_v4 = vrot.slane %v39_v2, 6  ;;  %v78_v5 = vrot.slane %v40_v3, 6  ;;  %v43_v6 = vrot.slane %v39_v2, 4  ;;  %v44_v7 = vrot.slane %v40_v3, 4 }
   0x5   :  { %v94_v8 = vrot.slane %v39_v2, 2  ;;  %v95_v9 = vrot.slane %v40_v3, 2  ;;  %v62_v10 = vsel %vm47_vm0, %v39_v2, 0.0  ;;  %v63_v11 = vsel %vm49_vm1, %v40_v3, 0.0 }
   0x6   :  { %v81_v12 = vsel %vm47_vm0, %v77_v4, 0.0  ;;  %v82_v13 = vsel %vm49_vm1, %v78_v5, 0.0  ;;  %v48_v14 = vsel %vm47_vm0, %v43_v6, 0.0  ;;  %v50_v15 = vsel %vm49_vm1, %v44_v7, 0.0 }
   0x7   :  { %v83_v16 = vadd.f32 %v82_v13, %v81_v12  ;;  %v51_v17 = vadd.f32 %v50_v15, %v48_v14  ;;  %v98_v18 = vsel %vm47_vm0, %v94_v8, 0.0  ;;  %v99_v19 = vsel %vm49_vm1, %v95_v9, 0.0 }
   0x8   :  { %v100_v20 = vadd.f32 %v99_v19, %v98_v18  ;;  %v64_v21 = vadd.f32 %v63_v11, %v62_v10 }
   0x9   :  { %84 = vadd.xlane.f32.xlu1 %v83_v16  ;;  %52 = vadd.xlane.f32.xlu0 %v51_v17 }
   0xd   :  { %101 = vadd.xlane.f32.xlu1 %v100_v20  ;;  %65 = vadd.xlane.f32.xlu0 %v64_v21 }
   0xe   :  { %15 = vsyncpa [#allocation3], 0  ;;  %v1116_v22 = vld [vmem:[%s1637_s1 + $0x4] ss:$8 sps:$4 sm:$0xff]   ;;  %v1118_v23 = vld [vmem:[%s1637_s1] ss:$8 sps:$4 sm:$0xff]  }
   0xf   :  { %v1119_v24 = vld [vmem:[%s1638_s2 + $0x4] ss:$8 sps:$4 sm:$0xff]   ;;  %v1121_v25 = vld [vmem:[%s1638_s2] ss:$8 sps:$4 sm:$0xff]   ;;  %v1122_v26 = vld [vmem:[%s1637_s1 + $0x14] ss:$8 sps:$4 sm:$0xff]   ;;  %438 = vmatprep.subr.bf16.mxu1 %v1116_v22 }
  0x10   :  { %284 = vmatprep.subr.bf16.mxu0 %v1119_v24  ;;  %v1125_v27 = vld [vmem:[%s1638_s2 + $0x14] ss:$8 sps:$4 sm:$0xff]   ;;  %439 = vmatpush1.bf16.msra.mxu1 %v1118_v23  ;;  %v1124_v28 = vld [vmem:[%s1637_s1 + $0x10] ss:$8 sps:$4 sm:$0xff]   ;;  %v1128_v30 = vld [vmem:[%s1637_s1 + $0x24] ss:$8 sps:$4 sm:$0xff]  }
  0x11   :  { %285 = vmatpush1.bf16.msra.mxu0 %v1121_v25  ;;  %v1127_v29 = vld [vmem:[%s1638_s2 + $0x10] ss:$8 sps:$4 sm:$0xff]   ;;  %440 = vmatprep.subr.bf16.mxu1 %v1122_v26  ;;  %v1131_v31 = vld [vmem:[%s1638_s2 + $0x24] ss:$8 sps:$4 sm:$0xff]   ;;  %v1130_v32 = vld [vmem:[%s1637_s1 + $0x20] ss:$8 sps:$4 sm:$0xff]  }
  0x12   :  { %286 = vmatprep.subr.bf16.mxu0 %v1125_v27  ;;  %v1133_v33 = vld [vmem:[%s1638_s2 + $0x20] ss:$8 sps:$4 sm:$0xff]   ;;  %v1134_v34 = vld [vmem:[%s1637_s1 + $0x34] ss:$8 sps:$4 sm:$0xff]   ;;  %v1136_v36 = vld [vmem:[%s1637_s1 + $0x30] ss:$8 sps:$4 sm:$0xff]  }
  0x13   :  { %v1137_v35 = vld [vmem:[%s1638_s2 + $0x34] ss:$8 sps:$4 sm:$0xff]   ;;  %v1139_v37 = vld [vmem:[%s1638_s2 + $0x30] ss:$8 sps:$4 sm:$0xff]   ;;  %v1140_v38 = vld [vmem:[%s1637_s1 + $0x44] ss:$8 sps:$4 sm:$0xff]  }
  0x14   :  { %441 = vmatpush1.bf16.msra.mxu1 %v1124_v28  ;;  %v1143_v39 = vld [vmem:[%s1638_s2 + $0x44] ss:$8 sps:$4 sm:$0xff]   ;;  %v1142_v40 = vld [vmem:[%s1637_s1 + $0x40] ss:$8 sps:$4 sm:$0xff]   ;;  %v1146_v42 = vld [vmem:[%s1637_s1 + $0x54] ss:$8 sps:$4 sm:$0xff]  }
  0x15   :  { %287 = vmatpush1.bf16.msra.mxu0 %v1127_v29  ;;  %442 = vmatprep.subr.bf16.mxu1 %v1128_v30  ;;  %v1145_v41 = vld [vmem:[%s1638_s2 + $0x40] ss:$8 sps:$4 sm:$0xff]   ;;  %v1148_v43 = vld [vmem:[%s1637_s1 + $0x50] ss:$8 sps:$4 sm:$0xff]   ;;  %v1149_v44 = vld [vmem:[%s1638_s2 + $0x54] ss:$8 sps:$4 sm:$0xff]  }
  0x16   :  { %288 = vmatprep.subr.bf16.mxu0 %v1131_v31  ;;  %v1151_v45 = vld [vmem:[%s1638_s2 + $0x50] ss:$8 sps:$4 sm:$0xff]   ;;  %v1152_v46 = vld [vmem:[%s1637_s1 + $0x64] ss:$8 sps:$4 sm:$0xff]   ;;  %v1154_v47 = vld [vmem:[%s1637_s1 + $0x60] ss:$8 sps:$4 sm:$0xff]  }
  0x17   :  { %v1155_v48 = vld [vmem:[%s1638_s2 + $0x64] ss:$8 sps:$4 sm:$0xff]   ;;  %v1157_v49 = vld [vmem:[%s1638_s2 + $0x60] ss:$8 sps:$4 sm:$0xff]   ;;  %v1158_v50 = vld [vmem:[%s1637_s1 + $0x74] ss:$8 sps:$4 sm:$0xff]  }
  0x18   :  { %443 = vmatpush1.bf16.msra.mxu1 %v1130_v32  ;;  %v1160_v51 = vld [vmem:[%s1637_s1 + $0x70] ss:$8 sps:$4 sm:$0xff]   ;;  %v1161_v52 = vld [vmem:[%s1638_s2 + $0x74] ss:$8 sps:$4 sm:$0xff]   ;;  %v1164_v54 = vld [vmem:[%s1637_s1 + $0x84] ss:$8 sps:$4 sm:$0xff]  }
  0x19   :  { %289 = vmatpush1.bf16.msra.mxu0 %v1133_v33  ;;  %444 = vmatprep.subr.bf16.mxu1 %v1134_v34  ;;  %v1163_v53 = vld [vmem:[%s1638_s2 + $0x70] ss:$8 sps:$4 sm:$0xff]   ;;  %v1167_v55 = vld [vmem:[%s1638_s2 + $0x84] ss:$8 sps:$4 sm:$0xff]   ;;  %v1166_v56 = vld [vmem:[%s1637_s1 + $0x80] ss:$8 sps:$4 sm:$0xff]  }
  0x1a   :  { %290 = vmatprep.subr.bf16.mxu0 %v1137_v35  ;;  %v1170_v57 = vld [vmem:[%s1637_s1 + $0x94] ss:$8 sps:$4 sm:$0xff]   ;;  %v1169_v58 = vld [vmem:[%s1638_s2 + $0x80] ss:$8 sps:$4 sm:$0xff]   ;;  %v1172_v60 = vld [vmem:[%s1637_s1 + $0x90] ss:$8 sps:$4 sm:$0xff]  }
  0x1b   :  { %v1173_v59 = vld [vmem:[%s1638_s2 + $0x94] ss:$8 sps:$4 sm:$0xff]   ;;  %v1176_v61 = vld [vmem:[%s1637_s1 + $0xa4] ss:$8 sps:$4 sm:$0xff]   ;;  %v1175_v62 = vld [vmem:[%s1638_s2 + $0x90] ss:$8 sps:$4 sm:$0xff]  }
  0x1c   :  { %445 = vmatpush1.bf16.msra.mxu1 %v1136_v36  ;;  %v1179_v63 = vld [vmem:[%s1638_s2 + $0xa4] ss:$8 sps:$4 sm:$0xff]   ;;  %v1178_v2 = vld [vmem:[%s1637_s1 + $0xa0] ss:$8 sps:$4 sm:$0xff]   ;;  %vm280_vm2 = vcmask 392192   ;;  %vm1268_vm5 = vmmov 0  }
  0x1d   :  { %291 = vmatpush1.bf16.msra.mxu0 %v1139_v37  ;;  %446 = vmatprep.subr.bf16.mxu1 %v1140_v38  ;;  %v1181_v3 = vld [vmem:[%s1638_s2 + $0xa0] ss:$8 sps:$4 sm:$0xff]   ;;  %v1184_v4 = vld [vmem:[%s1640_s4 + $0x4] ss:$8 sps:$4 sm:$0xff]   ;;  %vm912_vm6 = vcmask 523264   ;;  %vm956_vm7 = vcmask 9216  }
  0x1e   :  { %292 = vmatprep.subr.bf16.mxu0 %v1143_v39 }
  0x20   :  { %447 = vmatpush1.bf16.msra.mxu1 %v1142_v40 }
  0x21   :  { %293 = vmatpush1.bf16.msra.mxu0 %v1145_v41  ;;  %448 = vmatprep.subr.bf16.mxu1 %v1146_v42 }
  0x22   :  { %294 = vmatprep.subr.bf16.mxu0 %v1149_v44 }
  0x24   :  { %449 = vmatpush1.bf16.msra.mxu1 %v1148_v43 }
  0x25   :  { %295 = vmatpush1.bf16.msra.mxu0 %v1151_v45  ;;  %450 = vmatprep.subr.bf16.mxu1 %v1152_v46 }
  0x26   :  { %296 = vmatprep.subr.bf16.mxu0 %v1155_v48 }
  0x28   :  { %451 = vmatpush1.bf16.msra.mxu1 %v1154_v47 }
  0x29   :  { %297 = vmatpush1.bf16.msra.mxu0 %v1157_v49  ;;  %452 = vmatprep.subr.bf16.mxu1 %v1158_v50 }
  0x2a   :  { %298 = vmatprep.subr.bf16.mxu0 %v1161_v52  ;;  %v1187_v52 = vld [vmem:[%s1640_s4 + $0x14] ss:$8 sps:$4 sm:$0xff]  }
  0x2c   :  { %453 = vmatpush1.bf16.msra.mxu1 %v1160_v51  ;;  %v1182_v51 = vld [vmem:[%s1640_s4] ss:$8 sps:$4 sm:$0xff]  }
  0x2d   :  { %454 = vmatprep.subr.bf16.mxu1 %v1164_v54  ;;  %299 = vmatpush1.bf16.msra.mxu0 %v1163_v53  ;;  %v1188_v53 = vld [vmem:[%s1640_s4 + $0x20] ss:$8 sps:$4 sm:$0xff]   ;;  %v1193_v54 = vld [vmem:[%s1640_s4 + $0x34] ss:$8 sps:$4 sm:$0xff]  }
  0x2e   :  { %300 = vmatprep.subr.bf16.mxu0 %v1167_v55  ;;  %v1191_v55 = vld [vmem:[%s1640_s4 + $0x30] ss:$8 sps:$4 sm:$0xff]  }
  0x30   :  { %455 = vmatpush1.bf16.msra.mxu1 %v1166_v56  ;;  %v1194_v56 = vld [vmem:[%s1640_s4 + $0x40] ss:$8 sps:$4 sm:$0xff]  }
  0x31   :  { %456 = vmatprep.subr.bf16.mxu1 %v1170_v57  ;;  %301 = vmatpush1.bf16.msra.mxu0 %v1169_v58  ;;  %v1196_v57 = vld [vmem:[%s1640_s4 + $0x44] ss:$8 sps:$4 sm:$0xff]   ;;  %v1199_v58 = vld [vmem:[%s1640_s4 + $0x54] ss:$8 sps:$4 sm:$0xff]  }
  0x32   :  { %302 = vmatprep.subr.bf16.mxu0 %v1173_v59  ;;  %v1197_v59 = vld [vmem:[%s1640_s4 + $0x50] ss:$8 sps:$4 sm:$0xff]  }
  0x34   :  { %457 = vmatpush1.bf16.msra.mxu1 %v1172_v60  ;;  %v1202_v60 = vld [vmem:[%s1640_s4 + $0x64] ss:$8 sps:$4 sm:$0xff]  }
  0x35   :  { %458 = vmatprep.subr.bf16.mxu1 %v1176_v61  ;;  %303 = vmatpush1.bf16.msra.mxu0 %v1175_v62  ;;  %v1200_v61 = vld [vmem:[%s1640_s4 + $0x60] ss:$8 sps:$4 sm:$0xff]   ;;  %v1205_v62 = vld [vmem:[%s1640_s4 + $0x74] ss:$8 sps:$4 sm:$0xff]  }
  0x36   :  { %304 = vmatprep.subr.bf16.mxu0 %v1179_v63  ;;  %v1203_v63 = vld [vmem:[%s1640_s4 + $0x70] ss:$8 sps:$4 sm:$0xff]  }
  0x38   :  { %459 = vmatpush1.bf16.msra.mxu1 %v1178_v2  ;;  %v1208_v2 = vld [vmem:[%s1640_s4 + $0x84] ss:$8 sps:$4 sm:$0xff]  }
  0x39   :  { %305 = vmatpush1.bf16.msra.mxu0 %v1181_v3  ;;  %v1206_v3 = vld [vmem:[%s1640_s4 + $0x80] ss:$8 sps:$4 sm:$0xff]  }
  0x3a   :  { %654 = vmatprep.subr.bf16.mxu0 %v1184_v4  ;;  %v1211_v4 = vld [vmem:[%s1640_s4 + $0x94] ss:$8 sps:$4 sm:$0xff]  }
  0x96   :  { %v85_v5 = vpop.xlane.xlu1 %84  ;;  %v53_v6 = vpop.xlane.xlu0 %52 }
  0x97   :  { %v86_v7 = vrot.slane %v85_v5, 4  ;;  %v54_v8 = vrot.slane %v53_v6, 4 }
  0x99   :  { %v87_v9 = vadd.f32 %v86_v7, %v85_v5  ;;  %v55_v10 = vadd.f32 %v54_v8, %v53_v6  ;;  %v1209_v5 = vld [vmem:[%s1640_s4 + $0x90] ss:$8 sps:$4 sm:$0xff]   ;;  %v1214_v6 = vld [vmem:[%s1640_s4 + $0xa4] ss:$8 sps:$4 sm:$0xff]   ;;  %v1212_v7 = vld [vmem:[%s1640_s4 + $0xa0] ss:$8 sps:$4 sm:$0xff]  }
  0x9a   :  { %v102_v11 = vpop.xlane.xlu1 %101  ;;  %v66_v12 = vpop.xlane.xlu0 %65  ;;  %v1215_v8 = vld [vmem:[%s1642_s6 + $0x40] sm:$0xff]  }
  0x9b   :  { %v88_v13 = vrot.slane %v87_v9, 2  ;;  %v56_v14 = vrot.slane %v55_v10, 2  ;;  %v103_v15 = vrot.slane %v102_v11, 4  ;;  %v67_v16 = vrot.slane %v66_v12, 4  ;;  %1066 = vmatprep.subr.bf16.mxu1 %v1215_v8  ;;  %v1043_v8 = vld [vmem:[%s1643_s7] ss:$0 sm:$0xff] }
  0x9d   :  { %v104_v17 = vadd.f32 %v103_v15, %v102_v11  ;;  %v68_v18 = vadd.f32 %v67_v16, %v66_v12  ;;  %v57_v19 = vadd.f32 %v56_v14, %v55_v10  ;;  %v89_v20 = vadd.f32 %v88_v13, %v87_v9  ;;  %v1216_v9 = vld [vmem:[%s1642_s6] sm:$0xff]   ;;  %v1217_v10 = vld [vmem:[%s1642_s6 + $0x48] sm:$0xff]   ;;  %v1219_v12 = vld [vmem:[%s1642_s6 + $0x50] sm:$0xff]  }
  0x9e   :  { %v1218_v11 = vld [vmem:[%s1642_s6 + $0x8] sm:$0xff]   ;;  %v1220_v13 = vld [vmem:[%s1642_s6 + $0x10] sm:$0xff]   ;;  %v1221_v14 = vld [vmem:[%s1642_s6 + $0x58] sm:$0xff]  }
  0x9f   :  { %v105_v21 = vrot.slane %v104_v17, 2  ;;  %v69_v22 = vrot.slane %v68_v18, 2  ;;  %v58_v23 = vrot.slane %v57_v19, 1  ;;  %v90_v27 = vrot.slane %v89_v20, 1  ;;  %v1222_v15 = vld [vmem:[%s1642_s6 + $0x18] sm:$0xff]   ;;  %v1223_v16 = vld [vmem:[%s1642_s6 + $0x60] sm:$0xff]  }
  0xa1   :  { %v106_v24 = vadd.f32 %v105_v21, %v104_v17  ;;  %v70_v25 = vadd.f32 %v69_v22, %v68_v18  ;;  %v59_v26 = vadd.f32 %v58_v23, %v57_v19  ;;  %v91_v32 = vadd.f32 %v90_v27, %v89_v20  ;;  %v1224_v17 = vld [vmem:[%s1642_s6 + $0x20] sm:$0xff]   ;;  %v1225_v18 = vld [vmem:[%s1642_s6 + $0x68] sm:$0xff]   ;;  %v1227_v20 = vld [vmem:[%s1642_s6 + $0x70] sm:$0xff]  }
  0xa2   :  { %v1226_v19 = vld [vmem:[%s1642_s6 + $0x28] sm:$0xff]   ;;  %v481_v21 = vlaneseq }
  0xa3   :  { %1105 = vpush %v59_v26  ;;  %v71_v28 = vrot.slane %v70_v25, 1  ;;  %v107_v29 = vrot.slane %v106_v24, 1 }
  0xa4   :  { %v482_v22 = vshrl.u32 %v481_v21, 7 }
  0xa5   :  { %v72_v30 = vadd.f32 %v71_v28, %v70_v25  ;;  %v108_v31 = vadd.f32 %v107_v29, %v106_v24  ;;  %v479_v25 = vld [vmem:[%s1639_s3] sm:$0x3] }
  0xa6   :  { %v483_v23 = vsub.s32 0, %v482_v22  ;;  %v487_v26 = vsub.s32 1, %v482_v22 }
  0xa7   :  { %1107 = vpush %v72_v30 }
  0xa8   :  { %1109 = vpush %v91_v32  ;;  %v484_v29 = vrot.slane %v479_v25, %v483_v23  ;;  %v488_v32 = vrot.slane %v479_v25, %v487_v26 }
  0xa9   :  { %1111 = vpush %v108_v31 }
  0xd4   :  { %s1106_s1 = spop %1105 }
  0xd5   :  { %v61_v36 = vstv %s1106_s1 }
  0xd8   :  { %s1108_s2 = spop %1107 }
  0xd9   :  { %v74_v33 = vstv %s1108_s2  ;;  %s1110_s22 = spop %1109 }
  0xda   :  { %1235 = vrcp.f32 %v74_v33  ;;  %s1112_s23 = spop %1111  ;;  %v93_v39 = vstv %s1110_s22 }
  0xdb   :  { %v110_v34 = vstv %s1112_s23 }
  0xdc   :  { %1237 = vrcp.f32 %v110_v34 }
  0xe4   :  { %v1236_v35 = vpop.eup %1235 }
  0xe5   :  { %v76_v37 = vmul.f32 %v1236_v35, %v61_v36 }
  0xe6   :  { %v1238_v38 = vpop.eup %1237 }
  0xe7   :  { %v114_v40 = vmul.f32 %v76_v37, %v1333_v1  ;;  %v113_v41 = vmul.f32 %v76_v37, %v1328_v0  ;;  %v112_v42 = vmul.f32 %v1238_v38, %v93_v39 }
  0xe9   :  { %v116_v43 = vpack.c.bf16 %v114_v40, %v114_v40  ;;  %v115_v44 = vpack.c.bf16 %v113_v41, %v113_v41  ;;  %v118_v45 = vmul.f32 %v112_v42, %v1333_v1  ;;  %v117_v46 = vmul.f32 %v112_v42, %v1328_v0  ;;  %v1185_v0 = vld [vmem:[%s1640_s4 + $0x10] ss:$8 sps:$4 sm:$0xff]   ;;  %v1190_v1 = vld [vmem:[%s1640_s4 + $0x24] ss:$8 sps:$4 sm:$0xff]  }
  0xeb   :  { %1017 = vmatprep.mubr.msk.bf16.mxu1 %vm280_vm2, %v116_v43  ;;  %v120_v47 = vpack.c.bf16 %v118_v45, %v118_v45  ;;  %v119_v48 = vpack.c.bf16 %v117_v46, %v117_v46 }
  0xec   :  { %471 = vmatmul.mubr.bf16.vlgmr.msra.gmra.mrb[0].mxu1 %v115_v44 }
  0xed   :  { %v168_v49 = vrot.slane %v120_v47, 1  ;;  %v167_v50 = vrot.slane %v119_v48, 1  ;;  %1067 = vmatpush3.bf16.msra.mxu1 %v1216_v9 }
  0xee   :  { %1068 = vmatprep.subr.bf16.mxu1 %v1217_v10 }
  0xef   :  { %994 = vmatprep.mubr.msk.bf16.mxu0 %vm280_vm2, %v168_v49 }
  0xf0   :  { %317 = vmatmul.mubr.bf16.vlgmr.msra.gmra.mrb[0].mxu0 %v167_v50 }
  0xf1   :  { %655 = vmatpush1.bf16.msra.mxu0 %v1182_v51  ;;  %1069 = vmatpush3.bf16.msra.mxu1 %v1218_v11 }
  0xf2   :  { %656 = vmatprep.subr.bf16.mxu0 %v1187_v52  ;;  %1070 = vmatprep.subr.bf16.mxu1 %v1219_v12  ;;  %v1228_v52 = vld [vmem:[%s1642_s6 + $0x30] sm:$0xff]  }
  0xf5   :  { %657 = vmatpush1.bf16.msra.mxu0 %v1185_v0  ;;  %1071 = vmatpush3.bf16.msra.mxu1 %v1220_v13  ;;  %v1229_v0 = vld [vmem:[%s1642_s6 + $0x78] sm:$0xff]  }
  0xf6   :  { %658 = vmatprep.subr.bf16.mxu0 %v1190_v1  ;;  %1072 = vmatprep.subr.bf16.mxu1 %v1221_v14  ;;  %v1230_v1 = vld [vmem:[%s1642_s6 + $0x38] sm:$0xff]  }
  0xf9   :  { %659 = vmatpush1.bf16.msra.mxu0 %v1188_v53  ;;  %1073 = vmatpush3.bf16.msra.mxu1 %v1222_v15  ;;  %v1267_v53 = vmov 0.0   ;;  %v1060_v15 = vld [vmem:[%s1645_s9] ss:$0 sm:$0xff] }
  0xfa   :  { %660 = vmatprep.subr.bf16.mxu0 %v1193_v54  ;;  %1074 = vmatprep.subr.bf16.mxu1 %v1223_v16  ;;  %v529_v54 = vld [vmem:[%s1641_s5] sm:$0x3] }
  0xfd   :  { %661 = vmatpush1.bf16.msra.mxu0 %v1191_v55  ;;  %1075 = vmatpush3.bf16.msra.mxu1 %v1224_v17  ;;  %v534_v55 = vrot.slane %v529_v54, %v483_v23 }
  0xfe   :  { %662 = vmatprep.subr.bf16.mxu0 %v1196_v57  ;;  %1076 = vmatprep.subr.bf16.mxu1 %v1225_v18 }
 0x101   :  { %663 = vmatpush1.bf16.msra.mxu0 %v1194_v56  ;;  %1077 = vmatpush3.bf16.msra.mxu1 %v1226_v19  ;;  %v538_v56 = vrot.slane %v529_v54, %v487_v26 }
 0x102   :  { %664 = vmatprep.subr.bf16.mxu0 %v1199_v58  ;;  %1078 = vmatprep.subr.bf16.mxu1 %v1227_v20 }
 0x105   :  { %665 = vmatpush1.bf16.msra.mxu0 %v1197_v59  ;;  %1079 = vmatpush3.bf16.msra.mxu1 %v1228_v52 }
 0x106   :  { %666 = vmatprep.subr.bf16.mxu0 %v1202_v60  ;;  %1080 = vmatprep.subr.bf16.mxu1 %v1229_v0 }
 0x109   :  { %667 = vmatpush1.bf16.msra.mxu0 %v1200_v61  ;;  %1081 = vmatpush3.bf16.msra.mxu1 %v1230_v1 }
 0x10a   :  { %668 = vmatprep.subr.bf16.mxu0 %v1205_v62  ;;  %1093 = vmatprep.subr.bf16.mxu1 %v1267_v53 }
 0x10d   :  { %669 = vmatpush1.bf16.msra.mxu0 %v1203_v63 }
 0x10e   :  { %670 = vmatprep.subr.bf16.mxu0 %v1208_v2  ;;  %v1231_v2 = vld [vmem:[%s1644_s8] sm:$0xff]  }
 0x111   :  { %671 = vmatpush1.bf16.msra.mxu0 %v1206_v3 }
 0x112   :  { %672 = vmatprep.subr.bf16.mxu0 %v1211_v4  ;;  %v1232_v4 = vld [vmem:[%s1644_s8 + $0x8] sm:$0xff]  }
 0x115   :  { %673 = vmatpush1.bf16.msra.mxu0 %v1209_v5  ;;  %v1233_v5 = vld [vmem:[%s1644_s8 + $0x10] sm:$0xff]  }
 0x116   :  { %674 = vmatprep.subr.bf16.mxu0 %v1214_v6  ;;  %v1234_v6 = vld [vmem:[%s1644_s8 + $0x18] sm:$0xff]   ;;  %s1269_s8 = smov [#allocation2]  }
 0x117   :  { %s964_s19 = sshll.u32 %s1269_s8, 4  ;;  %s965_s19 = int_to_ptr.vmem [resolvable:$true] %s964_s19 }
 0x118   :  { %s1243_s7 = scalar_lea.vmem %s965_s19, 32  ;;  %p1248_p1 = scmp.lt.s32.totalorder %s965_s19, %s965_s19 }
 0x119   :  { %675 = vmatpush1.bf16.msra.mxu0 %v1212_v7  ;;  %p1244_p0 = scmp.ne.s32.totalorder %s965_s19, %s1243_s7  ;;  %p1249_p2 = scmp.lt.s32.totalorder %s1243_s7, %s1243_s7 }
 0x11b   :  { %p1250_p3 = por %p1249_p2, %p1248_p1 }
 0x11d   :  { %p1251_p4 = pnand %p1250_p3, %p1244_p0 }
 0x1bf   :  { %v472_v24 = vpop.f32.mrb[0].mxu1 }
 0x1c0   :  { %v474_v27 = vpop.f32.mrb[1].mxu1 }
 0x1c1   :  { %v476_v28 = vpop.f32.mrb[2].mxu1 }
 0x1c2   :  { %v477_v30 = vpop.f32.mrb[3].mxu1 }
 0x1c3   :  { %v318_v31 = vpop.f32.mrb[0].mxu0 }
 0x1c4   :  { %v473_v33 = vadd.f32 %v472_v24, %v318_v31  ;;  %v320_v34 = vpop.f32.mrb[1].mxu0 }
 0x1c5   :  { %v475_v35 = vadd.f32 %v474_v27, %v320_v34  ;;  %v322_v36 = vpop.f32.mrb[2].mxu0 }
 0x1c6   :  { %v491_v37 = vadd.f32 %v484_v29, %v473_v33  ;;  %v323_v38 = vpop.f32.mrb[3].mxu0 }
 0x1c7   :  { %v492_v39 = vadd.f32 %v488_v32, %v475_v35 }
 0x1c8   :  { %v495_v40 = vmin.f32 %v491_v37, 0.0  ;;  %vm493_vm3 = vcmp.gt.f32.partialorder %v491_v37, 0.0 }
 0x1c9   :  { %v496_v41 = vmin.f32 %v492_v39, 0.0  ;;  %vm494_vm4 = vcmp.gt.f32.partialorder %v492_v39, 0.0 }
 0x1ca   :  { %v497_v42 = vmul.f32 1.442695, %v495_v40 }
 0x1cb   :  { %v499_v43 = vmul.f32 1.442695, %v496_v41 }
 0x1cc   :  { %1239 = vpow2.f32 %v497_v42 }
 0x1cd   :  { %1241 = vpow2.f32 %v499_v43 }
 0x1d6   :  { %v1240_v44 = vpop.eup %1239 }
 0x1d7   :  { %v1242_v45 = vpop.eup %1241  ;;  %v1018_v46 = vadd.f32 -1.0, %v1240_v44 }
 0x1d8   :  { %v1019_v47 = vadd.f32 -1.0, %v1242_v45 }
 0x1d9   :  { %v503_v48 = vsel %vm493_vm3, %v491_v37, %v1018_v46 }
 0x1da   :  { %v504_v49 = vsel %vm494_vm4, %v492_v39, %v1019_v47  ;;  %v505_v51 = vpack.c.bf16 %v503_v48, %v503_v48 }
 0x1db   :  { %v506_v50 = vpack.c.bf16 %v504_v49, %v504_v49 }
 0x1dd   :  { %1042 = vmatprep.mubr.msk.bf16.mxu0 %vm280_vm2, %v506_v50 }
 0x1de   :  { %687 = vmatmul.mubr.bf16.vlgmr.msra.gmra.mrb[4].mxu0 %v505_v51 }
 0x2b1   :  { %v688_v57 = vpop.f32.mrb[4].mxu0 }
 0x2b2   :  { %v689_v58 = vadd.f32 %v688_v57, %v534_v55  ;;  %v690_v59 = vpop.f32.mrb[5].mxu0 }
 0x2b3   :  { %v691_v60 = vadd.f32 %v690_v59, %v538_v56  ;;  %v692_v61 = vpop.f32.mrb[6].mxu0 }
 0x2b4   :  { %v693_v62 = vpop.f32.mrb[7].mxu0  ;;  %v695_v3 = vpack.c.bf16 %v689_v58, %v689_v58 }
 0x2b5   :  { %v696_v63 = vpack.c.bf16 %v691_v60, %v691_v60 }
 0x2b7   :  { %864 = vmatprep.mubr.bf16.mxu1 %v696_v63 }
 0x2b8   :  { %865 = vmatmul.mubr.bf16.vlgmr.msra.gmra.mrb[4].mxu1 %v695_v3 }
 0x2b9   :  { %1094 = vmatpush3.bf16.msra.mxu1 %v1231_v2  ;;  %1101 = vmatprep.mubr.msk.bf16.mxu1 %vm1268_vm5, %v1267_v53 }
 0x2ba   :  { %1095 = vmatprep.subr.bf16.mxu1 %v1267_v53 }
 0x2bd   :  { %1096 = vmatpush3.bf16.msra.mxu1 %v1232_v4 }
 0x2be   :  { %1097 = vmatprep.subr.bf16.mxu1 %v1267_v53 }
 0x2c1   :  { %1098 = vmatpush3.bf16.msra.mxu1 %v1233_v5 }
 0x2c2   :  { %1099 = vmatprep.subr.bf16.mxu1 %v1267_v53 }
 0x2c5   :  { %1100 = vmatpush3.bf16.msra.mxu1 %v1234_v6 }
 0x38b   :  { %v1082_v7 = vpop.f32.mrb[4].mxu1 }
 0x38c   :  { %v1083_v9 = vpop.f32.mrb[5].mxu1 }
 0x38d   :  { %v1084_v10 = vadd.f32 %v1083_v9, %v1082_v7  ;;  %v1085_v11 = vpop.f32.mrb[6].mxu1 }
 0x38e   :  { %v1086_v12 = vpop.f32.mrb[7].mxu1 }
 0x38f   :  { %v867_v13 = vadd.f32 %v1084_v10, %v1043_v8 }
 0x391   :  { %v872_v14 = vpack.c.bf16 %v867_v13, %v867_v13 }
 0x393   :  { %1102 = vmatmul.mubr.msk.bf16.vlgmr.msra.gmra.mrb[8].mxu1 %vm912_vm6, %v872_v14 }
 0x466   :  { %v950_v16 = vpop.f32.mrb[8].mxu1 }
 0x467   :  { %v951_v17 = vadd.f32 %v1060_v15, %v950_v16  ;;  %v1103_v18 = vpop.f32.mrb[9].mxu1 }
 0x468   :  { %v953_v19 = vpop.f32.mrb[10].mxu1 }
 0x469   :  { %v1104_v20 = vpop.f32.mrb[11].mxu1  ;;  %957 = vst.msk [vmem:[#allocation2] sm:$0x3] %vm956_vm7, %v951_v17 }
 0x46a   :  { %1254 = shalt.err (!%p1251_p4)
}
 0x46b   :  { %s1255_s9 = scalar_lea.hbm %s1646_s10, 32 }
 0x46c   :  { %p1256_p5 = scmp.ne.s32.totalorder %s1646_s10, %s1255_s9  ;;  %p1259_p6 = scmp.lt.u32.totalorder %s1255_s9, %s1646_s10 }
 0x46e   :  { %p1261_p7 = pnand %p1259_p6, %p1256_p5 }
 0x470   :  { %1264 = shalt.err (!%p1261_p7)
}
 0x471   :  { %967 = dma.vmem_to_hbm [thread:$0]  %s965_s19, 32, %s1646_s10, [#allocation3]  }
 0x472   :  { %1265 = dma.done.wait [#allocation3], 32  }
 0x473   :  { %1266 = vsyncadd [#allocation3], 4294967264 }
 0x474   :  { %971 = vsyncpa [#allocation3], 1 }

// kernel: eeg_progress_forward.2
= control target key start
LH: loop header
LB: loop body
LE: loop exit
PB: predicated region body
PF: predicated region fallthrough
CT: control target
= control target key end

     0   :  { %s7805_s30 = smov 0   ;;  %s9482_s0 = inlined_call_operand.vmem [shape: bf16[8,55,344], index: 0, kind: input, shape index: {}]   ;;  %s9483_s1 = inlined_call_operand.vmem [shape: bf16[25,16,55], index: 1, kind: input, shape index: {}]   ;;  %s9484_s2 = inlined_call_operand.vmem [shape: f32[16,1], index: 2, kind: input, shape index: {}]   ;;  %s9485_s3 = inlined_call_operand.vmem [shape: bf16[320,64], index: 3, kind: input, shape index: {}]   ;;  %s9486_s4 = inlined_call_operand.vmem [shape: bf16[10,64,64], index: 4, kind: input, shape index: {}]   ;;  %s9487_s5 = inlined_call_operand.vmem [shape: f32[64,1], index: 5, kind: input, shape index: {}]   ;;  %s9488_s6 = inlined_call_operand.vmem [shape: bf16[55,176], index: 6, kind: input, shape index: {}]   ;;  %s9489_s7 = inlined_call_operand.vmem [shape: f32[64,176], index: 7, kind: input, shape index: {}]   ;;  %s9490_s8 = inlined_call_operand.vmem [shape: f32[4,64], index: 8, kind: input, shape index: {}]   ;;  %s9491_s9 = inlined_call_operand.vmem [shape: f32[2,4,176], index: 9, kind: output, shape index: {}]  }
   0x1 LB: > { %s6213_s10 = sadd.s32 4294967295, %s7710_s30   ;;  %p6217_p0 = scmp.ge.s32.totalorder %s7710_s30, 1  ;;  %s7710_s30 = sphi %s7805_s30, %s19_s30  }
   0x2   : > { %p289_p1 = scmp.lt.s32.totalorder %s7710_s30, 3 }
   0x4   : > { %p290_p2 = pnand %p6217_p0, %p289_p1 }
   0x5   : > { %s6218_s11 = sshll.u32 (!%p290_p2), %s6213_s10, 2  ;;  %p333_p3 = scmp.lt.s32.totalorder (!%p290_p2), %s6213_s10, 1  ;;  %v7816_v0 = vld [vmem:[%s9484_s2] sm:$0xff] (!%p290_p2)  ;;  %v7821_v1 = vld [vmem:[%s9484_s2 + $0x8] sm:$0xff] (!%p290_p2) }
   0x6   : > { %293 = sbr.rel (%p290_p2) target bundleno = 2159 (0x86f), region = 56  ;;  %p327_p4 = scmp.lt.s32.totalorder (!%p290_p2), %s6218_s11, 7 }
   0x7   : > { %s7833_s24 = smov (!%p290_p2), 0  }
   0xd   : > { %s9493_s10 = smov (!%p333_p3, %s6213_s10), 1  ;;  %s9495_s11 = smov (!%p327_p4, %s6218_s11), 7 }
   0xe   : > { %s6565_s16 = sshll.u32 %s9493_s10, 3  ;;  %s7481_s17 = smul.u32 84, %s9495_s11 }
   0xf   : > { %s7826_s20 = scalar_lea.vmem %s9491_s9, %s6565_s16 }
  0x10   : > { %s7831_s23 = scalar_lea.vmem %s9482_s0, %s7481_s17 }
  0x11 LB: >> { %v7716_v2 = vmov 0.0   ;;  %s6566_s25 = smul.u32 84, %s7714_s24  ;;  %s7717_s27 = smov 127   ;;  %vm7718_vm0 = vmmov 0   ;;  %v7719_v14 = vmov 0   ;;  %vm445_vm1 = vcmask 1039360   ;;  %s7714_s24 = sphi %s7833_s24, %s346_s24  }
  0x12   : >> { %6821 = vmatprep.subr.bf16.mxu1 %v7716_v2  ;;  %6829 = vmatprep.mubr.msk.bf16.mxu1 %vm7718_vm0, %v7716_v2  ;;  %s7720_s28 = smov 126   ;;  %s7721_s29 = smov 125   ;;  %vm467_vm2 = vcmask 1042432   ;;  %vm468_vm3 = vcmask 1043456   ;;  %v7725_v30 = vmov 65535   ;;  %v7554_v42 = vld [vmem:[%s9483_s1 + $0x8] sm:$0xff]  }
  0x13   : >> { %s7841_s26 = scalar_lea.vmem %s7831_s23, %s6566_s25  ;;  %512 = vmatprep.mubr.bf16.mxu0 %v7719_v14  ;;  %7537 = vset.pattern.permute.xlu0 %v7719_v14  ;;  %s7722_s10 = smov 124   ;;  %v469_v31 = vsel %vm467_vm2, 4294967295, %v7725_v30  ;;  %vm463_vm4 = vcmask 449536   ;;  %vm706_vm5 = vcmask 1031168   ;;  %v7555_v55 = vld [vmem:[%s9483_s1] sm:$0xff]   ;;  %vm858_vm6 = vcmask 1022976  }
  0x14   : >> { %v7844_v3 = vld [vmem:[%s7841_s26 + $0x4] ss:$12 sps:$4 sm:$0xff]   ;;  %v7847_v4 = vld [vmem:[%s7841_s26] ss:$12 sps:$4 sm:$0xff]   ;;  %v7851_v5 = vld [vmem:[%s7841_s26 + $0x8] ss:$12 sps:$4 sm:$0xff]   ;;  %7538 = vset.pattern.permute.xlu1 %v7719_v14 }
  0x15   : >> { %423 = vrot.lane.b32.xlu0 %v7844_v3, %s7717_s27  ;;  %421 = vrot.lane.b32.xlu1 %v7847_v4, %s7717_s27  ;;  %v7855_v6 = vld [vmem:[%s7841_s26 + $0x1c] ss:$12 sps:$4 sm:$0xff]   ;;  %v7859_v7 = vld [vmem:[%s7841_s26 + $0x20] ss:$12 sps:$4 sm:$0xff]   ;;  %s7723_s11 = smov 123   ;;  %s7724_s12 = smov 122  }
  0x16   : >> { %v7863_v8 = vld [vmem:[%s7841_s26 + $0x18] ss:$12 sps:$4 sm:$0xff]   ;;  %v7866_v9 = vld [vmem:[%s7841_s26 + $0x34] ss:$12 sps:$4 sm:$0xff]   ;;  %v362_v11 = vld [vmem:[%s7841_s26 + $0x48] sm:$0xff]  ;;  %v7967_v35 = vsel %vm468_vm3, %v469_v31, 0 }
  0x17   : >> { %v7869_v10 = vld [vmem:[%s7841_s26 + $0x38] ss:$12 sps:$4 sm:$0xff]   ;;  %v7876_v12 = vld [vmem:[%s7841_s26 + $0x30] ss:$12 sps:$4 sm:$0xff]   ;;  %v7881_v13 = vcombine.high %v362_v11, %v362_v11  ;;  %v7891_v16 = vcombine.low %v362_v11, %v362_v11  ;;  %s7726_s15 = smov 121   ;;  %s7727_s18 = smov 120  }
  0x18   : >> { %v7886_v15 = vld [vmem:[%s7841_s26 + $0x50] ss:$0 sps:$4 sm:$0xff]   ;;  %vm1010_vm7 = vcmask 1014784   ;;  %vm1162_vm8 = vcmask 1006592   ;;  %vm1314_vm9 = vcmask 998400   ;;  %s7730_s13 = smov 117  }
  0x19   : >> { %425 = vrot.lane.b32.xlu0 %v7851_v5, %s7717_s27  ;;  %429 = vrot.lane.b32.xlu1 %v7855_v6, %s7717_s27  ;;  %v585_v50 = vand.u32 %v7881_v13, %v7967_v35  ;;  %v588_v51 = vand.u32 %v7886_v15, %v7967_v35  ;;  %v582_v54 = vand.u32 %v7891_v16, %v7967_v35  ;;  %vm1466_vm10 = vcmask 990208   ;;  %s7731_s16 = smov 116   ;;  %s7732_s19 = smov 115  }
  0x1a   : >> { %vm1618_vm11 = vcmask 982016   ;;  %vm1770_vm12 = vcmask 973824   ;;  %s7733_s25 = smov 114   ;;  %vm1922_vm13 = vcmask 965632   ;;  %vm2074_vm14 = vcmask 957440   ;;  %s7738_s22 = smov 109  }
  0x1b   : >> { %vm2226_vm15 = vcmask 949248   ;;  %vm2530_vm2 = vcmask 932864   ;;  %s7741_s14 = smov 106  }
  0x1d   : >> { %431 = vrot.lane.b32.xlu0 %v7859_v7, %s7717_s27  ;;  %427 = vrot.lane.b32.xlu1 %v7863_v8, %s7717_s27 }
  0x21   : >> { %435 = vrot.lane.b32.xlu0 %v7866_v9, %s7717_s27  ;;  %437 = vrot.lane.b32.xlu1 %v7869_v10, %s7717_s27 }
  0x25   : >> { %433 = vrot.lane.b32.xlu0 %v7876_v12, %s7717_s27  ;;  %441 = vrot.lane.b32.xlu1 %v7881_v13, %s7717_s27 }
  0x29   : >> { %443 = vrot.lane.b32.xlu0 %v7886_v15, %s7717_s27  ;;  %439 = vrot.lane.b32.xlu1 %v7891_v16, %s7717_s27  ;;  %s7728_s27 = smov 119  }
  0x2d   : >> { %684 = vrot.lane.b32.xlu0 %v7844_v3, %s7720_s28  ;;  %686 = vrot.lane.b32.xlu1 %v7851_v5, %s7720_s28 }
  0x31   : >> { %682 = vrot.lane.b32.xlu0 %v7847_v4, %s7720_s28  ;;  %690 = vrot.lane.b32.xlu1 %v7855_v6, %s7720_s28 }
  0x35   : >> { %692 = vrot.lane.b32.xlu0 %v7859_v7, %s7720_s28  ;;  %688 = vrot.lane.b32.xlu1 %v7863_v8, %s7720_s28 }
  0x39   : >> { %696 = vrot.lane.b32.xlu0 %v7866_v9, %s7720_s28  ;;  %698 = vrot.lane.b32.xlu1 %v7869_v10, %s7720_s28 }
  0x3d   : >> { %694 = vrot.lane.b32.xlu0 %v7876_v12, %s7720_s28  ;;  %702 = vrot.lane.b32.xlu1 %v7881_v13, %s7720_s28 }
  0x41   : >> { %704 = vrot.lane.b32.xlu0 %v7886_v15, %s7720_s28  ;;  %700 = vrot.lane.b32.xlu1 %v7891_v16, %s7720_s28  ;;  %s7739_s28 = smov 108  }
  0x45   : >> { %836 = vrot.lane.b32.xlu0 %v7844_v3, %s7721_s29  ;;  %838 = vrot.lane.b32.xlu1 %v7851_v5, %s7721_s29 }
  0x49   : >> { %834 = vrot.lane.b32.xlu0 %v7847_v4, %s7721_s29  ;;  %842 = vrot.lane.b32.xlu1 %v7855_v6, %s7721_s29 }
  0x4d   : >> { %844 = vrot.lane.b32.xlu0 %v7859_v7, %s7721_s29  ;;  %840 = vrot.lane.b32.xlu1 %v7863_v8, %s7721_s29 }
  0x51   : >> { %848 = vrot.lane.b32.xlu0 %v7866_v9, %s7721_s29  ;;  %850 = vrot.lane.b32.xlu1 %v7869_v10, %s7721_s29 }
  0x55   : >> { %846 = vrot.lane.b32.xlu0 %v7876_v12, %s7721_s29  ;;  %854 = vrot.lane.b32.xlu1 %v7881_v13, %s7721_s29 }
  0x59   : >> { %856 = vrot.lane.b32.xlu0 %v7886_v15, %s7721_s29  ;;  %852 = vrot.lane.b32.xlu1 %v7891_v16, %s7721_s29  ;;  %s7734_s29 = smov 113  }
  0x5d   : >> { %988 = vrot.lane.b32.xlu0 %v7844_v3, %s7722_s10  ;;  %990 = vrot.lane.b32.xlu1 %v7851_v5, %s7722_s10 }
  0x61   : >> { %986 = vrot.lane.b32.xlu0 %v7847_v4, %s7722_s10  ;;  %994 = vrot.lane.b32.xlu1 %v7855_v6, %s7722_s10 }
  0x65   : >> { %996 = vrot.lane.b32.xlu0 %v7859_v7, %s7722_s10  ;;  %992 = vrot.lane.b32.xlu1 %v7863_v8, %s7722_s10 }
  0x69   : >> { %1000 = vrot.lane.b32.xlu0 %v7866_v9, %s7722_s10  ;;  %1002 = vrot.lane.b32.xlu1 %v7869_v10, %s7722_s10 }
  0x6d   : >> { %998 = vrot.lane.b32.xlu0 %v7876_v12, %s7722_s10  ;;  %1006 = vrot.lane.b32.xlu1 %v7881_v13, %s7722_s10 }
  0x71   : >> { %1008 = vrot.lane.b32.xlu0 %v7886_v15, %s7722_s10  ;;  %1004 = vrot.lane.b32.xlu1 %v7891_v16, %s7722_s10  ;;  %s7729_s10 = smov 118  }
  0x75   : >> { %1140 = vrot.lane.b32.xlu0 %v7844_v3, %s7723_s11  ;;  %1142 = vrot.lane.b32.xlu1 %v7851_v5, %s7723_s11 }
  0x79   : >> { %1138 = vrot.lane.b32.xlu0 %v7847_v4, %s7723_s11  ;;  %1146 = vrot.lane.b32.xlu1 %v7855_v6, %s7723_s11 }
  0x7d   : >> { %1148 = vrot.lane.b32.xlu0 %v7859_v7, %s7723_s11  ;;  %1144 = vrot.lane.b32.xlu1 %v7863_v8, %s7723_s11 }
  0x81   : >> { %1152 = vrot.lane.b32.xlu0 %v7866_v9, %s7723_s11  ;;  %1154 = vrot.lane.b32.xlu1 %v7869_v10, %s7723_s11 }
  0x85   : >> { %1150 = vrot.lane.b32.xlu0 %v7876_v12, %s7723_s11  ;;  %1158 = vrot.lane.b32.xlu1 %v7881_v13, %s7723_s11 }
  0x87   : >> { %v424_v17 = vpop.permute.xlu0 %423  ;;  %v422_v18 = vpop.permute.xlu1 %421 }
  0x88   : >> { %v446_v22 = vsel %vm445_vm1, %v422_v18, %v424_v17 }
  0x89   : >> { %1160 = vrot.lane.b32.xlu0 %v7886_v15, %s7723_s11  ;;  %1156 = vrot.lane.b32.xlu1 %v7891_v16, %s7723_s11  ;;  %s7740_s11 = smov 107  }
  0x8b   : >> { %v426_v19 = vpop.permute.xlu0 %425  ;;  %v430_v20 = vpop.permute.xlu1 %429 }
  0x8c   : >> { %6822 = vmatpush3.bf16.msra.mxu1 %v426_v19  ;;  %v447_v21 = vsel %vm445_vm1, %v424_v17, %v426_v19 }
  0x8d   : >> { %480 = vmatprep.subr.bf16.mxu0 %v447_v21  ;;  %1292 = vrot.lane.b32.xlu0 %v7844_v3, %s7724_s12 }
  0x8e   : >> { %1294 = vrot.lane.b32.xlu1 %v7851_v5, %s7724_s12  ;;  %481 = vmatpush1.bf16.msra.mxu0 %v446_v22 }
  0x8f   : >> { %6823 = vmatprep.subr.bf16.mxu1 %v7716_v2  ;;  %v432_v23 = vpop.permute.xlu0 %431  ;;  %v428_v24 = vpop.permute.xlu1 %427 }
  0x90   : >> { %6824 = vmatpush3.bf16.msra.mxu1 %v432_v23  ;;  %v449_v25 = vsel %vm445_vm1, %v430_v20, %v432_v23  ;;  %v448_v26 = vsel %vm445_vm1, %v428_v24, %v430_v20 }
  0x91   : >> { %1290 = vrot.lane.b32.xlu0 %v7847_v4, %s7724_s12  ;;  %482 = vmatprep.subr.bf16.mxu0 %v449_v25 }
  0x92   : >> { %1298 = vrot.lane.b32.xlu1 %v7855_v6, %s7724_s12  ;;  %483 = vmatpush1.bf16.msra.mxu0 %v448_v26 }
  0x93   : >> { %v436_v27 = vpop.permute.xlu0 %435  ;;  %6825 = vmatprep.subr.bf16.mxu1 %v7716_v2  ;;  %v438_v28 = vpop.permute.xlu1 %437 }
  0x94   : >> { %v451_v29 = vsel %vm445_vm1, %v436_v27, %v438_v28  ;;  %6826 = vmatpush3.bf16.msra.mxu1 %v438_v28 }
  0x95   : >> { %1300 = vrot.lane.b32.xlu0 %v7859_v7, %s7724_s12  ;;  %484 = vmatprep.subr.bf16.mxu0 %v451_v29 }
  0x96   : >> { %1296 = vrot.lane.b32.xlu1 %v7863_v8, %s7724_s12  ;;  %6827 = vmatprep.subr.bf16.mxu1 %v7716_v2 }
  0x97   : >> { %v434_v32 = vpop.permute.xlu0 %433  ;;  %v442_v33 = vpop.permute.xlu1 %441 }
  0x98   : >> { %v450_v34 = vsel %vm445_vm1, %v434_v32, %v436_v27  ;;  %v7556_v27 = vld [vmem:[%s9483_s1 + $0x10] sm:$0xff]  }
  0x99   : >> { %1304 = vrot.lane.b32.xlu0 %v7866_v9, %s7724_s12  ;;  %485 = vmatpush1.bf16.msra.mxu0 %v450_v34 }
  0x9a   : >> { %1306 = vrot.lane.b32.xlu1 %v7869_v10, %s7724_s12 }
  0x9b   : >> { %v444_v36 = vpop.permute.xlu0 %443  ;;  %v440_v39 = vpop.permute.xlu1 %439 }
  0x9c   : >> { %v453_v37 = vsel %vm445_vm1, %v442_v33, %v444_v36  ;;  %v478_v38 = vand.u32 %v7967_v35, %v444_v36  ;;  %v452_v40 = vsel %vm445_vm1, %v440_v39, %v442_v33  ;;  %vm2378_vm1 = vcmask 941056  }
  0x9d   : >> { %1302 = vrot.lane.b32.xlu0 %v7876_v12, %s7724_s12  ;;  %v475_v41 = vand.u32 %v7967_v35, %v453_v37  ;;  %v472_v43 = vand.u32 %v7967_v35, %v452_v40 }
  0x9e   : >> { %1310 = vrot.lane.b32.xlu1 %v7881_v13, %s7724_s12  ;;  %6828 = vmatpush3.bf16.msra.mxu1 %v478_v38 }
  0x9f   : >> { %v685_v44 = vpop.permute.xlu0 %684  ;;  %486 = vmatprep.subr.bf16.mxu0 %v475_v41  ;;  %6833 = vmatprep.subr.bf16.mxu1 %v7716_v2  ;;  %v687_v45 = vpop.permute.xlu1 %686 }
  0xa0   : >> { %487 = vmatpush1.bf16.msra.mxu0 %v472_v43  ;;  %v708_v58 = vsel %vm706_vm5, %v685_v44, %v687_v45 }
  0xa1   : >> { %1312 = vrot.lane.b32.xlu0 %v7886_v15, %s7724_s12  ;;  %6830 = vmatmul.mubr.msk.bf16.vlgmr.msra.gmra.mrb[0].mxu1 %vm463_vm4, %v7554_v42 }
  0xa2   : >> { %1308 = vrot.lane.b32.xlu1 %v7891_v16, %s7724_s12  ;;  %6834 = vmatpush3.bf16.msra.mxu1 %v7851_v5  ;;  %s7735_s12 = smov 112  }
  0xa3   : >> { %v683_v46 = vpop.permute.xlu0 %682  ;;  %590 = vmatprep.subr.bf16.mxu0 %v7844_v3  ;;  %6238 = vmatmul.mubr.msk.bf16.vlgmr.msra.gmra.mrb[0].mxu0 %vm463_vm4, %v7554_v42  ;;  %v691_v47 = vpop.permute.xlu1 %690 }
  0xa4   : >> { %591 = vmatpush1.bf16.msra.mxu0 %v7847_v4  ;;  %6835 = vmatprep.subr.bf16.mxu1 %v7716_v2  ;;  %v707_v59 = vsel %vm706_vm5, %v683_v46, %v685_v44 }
  0xa5   : >> { %1444 = vrot.lane.b32.xlu0 %v7844_v3, %s7726_s15  ;;  %592 = vmatprep.subr.bf16.mxu0 %v7855_v6 }
  0xa6   : >> { %1446 = vrot.lane.b32.xlu1 %v7851_v5, %s7726_s15  ;;  %6836 = vmatpush3.bf16.msra.mxu1 %v7859_v7 }
  0xa7   : >> { %v693_v48 = vpop.permute.xlu0 %692  ;;  %6837 = vmatprep.subr.bf16.mxu1 %v7716_v2  ;;  %6841 = vmatprep.mubr.msk.bf16.mxu1 %vm7718_vm0, %v7716_v2  ;;  %v689_v49 = vpop.permute.xlu1 %688 }
  0xa8   : >> { %593 = vmatpush1.bf16.msra.mxu0 %v7863_v8  ;;  %622 = vmatprep.mubr.bf16.mxu0 %v7719_v14  ;;  %v710_v62 = vsel %vm706_vm5, %v691_v47, %v693_v48  ;;  %v709_v63 = vsel %vm706_vm5, %v689_v49, %v691_v47  ;;  %v7557_v49 = vld [vmem:[%s9483_s1 + $0x18] sm:$0xff]  }
  0xa9   : >> { %1442 = vrot.lane.b32.xlu0 %v7847_v4, %s7726_s15  ;;  %594 = vmatprep.subr.bf16.mxu0 %v7866_v9 }
  0xaa   : >> { %1450 = vrot.lane.b32.xlu1 %v7855_v6, %s7726_s15  ;;  %6838 = vmatpush3.bf16.msra.mxu1 %v7869_v10 }
  0xab   : >> { %v697_v52 = vpop.permute.xlu0 %696  ;;  %6839 = vmatprep.subr.bf16.mxu1 %v7716_v2  ;;  %v699_v53 = vpop.permute.xlu1 %698 }
  0xac   : >> { %595 = vmatpush1.bf16.msra.mxu0 %v7876_v12  ;;  %v712_v19 = vsel %vm706_vm5, %v697_v52, %v699_v53 }
  0xad   : >> { %1452 = vrot.lane.b32.xlu0 %v7859_v7, %s7726_s15  ;;  %596 = vmatprep.subr.bf16.mxu0 %v585_v50 }
  0xae   : >> { %1448 = vrot.lane.b32.xlu1 %v7863_v8, %s7726_s15  ;;  %6840 = vmatpush3.bf16.msra.mxu1 %v588_v51 }
  0xaf   : >> { %v695_v56 = vpop.permute.xlu0 %694  ;;  %6845 = vmatprep.subr.bf16.mxu1 %v7716_v2  ;;  %v703_v57 = vpop.permute.xlu1 %702 }
  0xb0   : >> { %597 = vmatpush1.bf16.msra.mxu0 %v582_v54  ;;  %v711_v20 = vsel %vm706_vm5, %v695_v56, %v697_v52 }
  0xb1   : >> { %1456 = vrot.lane.b32.xlu0 %v7866_v9, %s7726_s15  ;;  %736 = vmatprep.subr.bf16.mxu0 %v708_v58 }
  0xb2   : >> { %1458 = vrot.lane.b32.xlu1 %v7869_v10, %s7726_s15  ;;  %6842 = vmatmul.mubr.msk.bf16.vlgmr.msra.gmra.mrb[4].mxu1 %vm463_vm4, %v7555_v55 }
  0xb3   : >> { %6846 = vmatpush3.bf16.msra.mxu1 %v687_v45  ;;  %v705_v60 = vpop.permute.xlu0 %704  ;;  %6241 = vmatmul.mubr.msk.bf16.vlgmr.msra.gmra.mrb[0].mxu0 %vm463_vm4, %v7555_v55  ;;  %v701_v61 = vpop.permute.xlu1 %700 }
  0xb4   : >> { %737 = vmatpush1.bf16.msra.mxu0 %v707_v59  ;;  %6847 = vmatprep.subr.bf16.mxu1 %v7716_v2  ;;  %v714_v17 = vsel %vm706_vm5, %v703_v57, %v705_v60  ;;  %v713_v21 = vsel %vm706_vm5, %v701_v61, %v703_v57  ;;  %v734_v25 = vand.u32 %v705_v60, %v7967_v35  ;;  %vm2682_vm5 = vcmask 924672  }
  0xb5   : >> { %1454 = vrot.lane.b32.xlu0 %v7876_v12, %s7726_s15  ;;  %738 = vmatprep.subr.bf16.mxu0 %v710_v62  ;;  %v731_v23 = vand.u32 %v714_v17, %v7967_v35  ;;  %v728_v26 = vand.u32 %v713_v21, %v7967_v35 }
  0xb6   : >> { %1462 = vrot.lane.b32.xlu1 %v7881_v13, %s7726_s15  ;;  %6853 = vmatprep.mubr.msk.bf16.mxu1 %vm7718_vm0, %v7716_v2 }
  0xb7   : >> { %6848 = vmatpush3.bf16.msra.mxu1 %v693_v48  ;;  %v837_v11 = vpop.permute.xlu0 %836  ;;  %768 = vmatprep.mubr.bf16.mxu0 %v7719_v14  ;;  %v839_v18 = vpop.permute.xlu1 %838 }
  0xb8   : >> { %739 = vmatpush1.bf16.msra.mxu0 %v709_v63  ;;  %6849 = vmatprep.subr.bf16.mxu1 %v7716_v2  ;;  %v860_v30 = vsel %vm858_vm6, %v837_v11, %v839_v18 }
  0xb9   : >> { %1464 = vrot.lane.b32.xlu0 %v7886_v15, %s7726_s15  ;;  %740 = vmatprep.subr.bf16.mxu0 %v712_v19 }
  0xba   : >> { %1460 = vrot.lane.b32.xlu1 %v7891_v16, %s7726_s15  ;;  %s7736_s15 = smov 111  }
  0xbb   : >> { %6850 = vmatpush3.bf16.msra.mxu1 %v699_v53  ;;  %v835_v22 = vpop.permute.xlu0 %834  ;;  %v843_v24 = vpop.permute.xlu1 %842 }
  0xbc   : >> { %741 = vmatpush1.bf16.msra.mxu0 %v711_v20  ;;  %6851 = vmatprep.subr.bf16.mxu1 %v7716_v2  ;;  %v859_v31 = vsel %vm858_vm6, %v835_v22, %v837_v11 }
  0xbd   : >> { %1596 = vrot.lane.b32.xlu0 %v7844_v3, %s7727_s18  ;;  %742 = vmatprep.subr.bf16.mxu0 %v731_v23  ;;  %v7558_v23 = vld [vmem:[%s9483_s1 + $0x20] sm:$0xff]  }
  0xbe   : >> { %1598 = vrot.lane.b32.xlu1 %v7851_v5, %s7727_s18 }
  0xbf   : >> { %6852 = vmatpush3.bf16.msra.mxu1 %v734_v25  ;;  %v845_v28 = vpop.permute.xlu0 %844  ;;  %v841_v29 = vpop.permute.xlu1 %840 }
  0xc0   : >> { %743 = vmatpush1.bf16.msra.mxu0 %v728_v26  ;;  %6857 = vmatprep.subr.bf16.mxu1 %v7716_v2  ;;  %v862_v34 = vsel %vm858_vm6, %v843_v24, %v845_v28  ;;  %v861_v36 = vsel %vm858_vm6, %v841_v29, %v843_v24 }
  0xc1   : >> { %1594 = vrot.lane.b32.xlu0 %v7847_v4, %s7727_s18  ;;  %888 = vmatprep.subr.bf16.mxu0 %v860_v30 }
  0xc2   : >> { %1602 = vrot.lane.b32.xlu1 %v7855_v6, %s7727_s18  ;;  %6854 = vmatmul.mubr.msk.bf16.vlgmr.msra.gmra.mrb[8].mxu1 %vm463_vm4, %v7556_v27 }
  0xc3   : >> { %6858 = vmatpush3.bf16.msra.mxu1 %v839_v18  ;;  %v849_v32 = vpop.permute.xlu0 %848  ;;  %6246 = vmatmul.mubr.msk.bf16.vlgmr.msra.gmra.mrb[0].mxu0 %vm463_vm4, %v7556_v27  ;;  %v851_v33 = vpop.permute.xlu1 %850 }
  0xc4   : >> { %889 = vmatpush1.bf16.msra.mxu0 %v859_v31  ;;  %6859 = vmatprep.subr.bf16.mxu1 %v7716_v2  ;;  %v864_v39 = vsel %vm858_vm6, %v849_v32, %v851_v33 }
  0xc5   : >> { %1604 = vrot.lane.b32.xlu0 %v7859_v7, %s7727_s18  ;;  %890 = vmatprep.subr.bf16.mxu0 %v862_v34 }
  0xc6   : >> { %1600 = vrot.lane.b32.xlu1 %v7863_v8, %s7727_s18  ;;  %6865 = vmatprep.mubr.msk.bf16.mxu1 %vm7718_vm0, %v7716_v2 }
  0xc7   : >> { %6860 = vmatpush3.bf16.msra.mxu1 %v845_v28  ;;  %v847_v37 = vpop.permute.xlu0 %846  ;;  %920 = vmatprep.mubr.bf16.mxu0 %v7719_v14  ;;  %v855_v38 = vpop.permute.xlu1 %854 }
  0xc8   : >> { %891 = vmatpush1.bf16.msra.mxu0 %v861_v36  ;;  %6861 = vmatprep.subr.bf16.mxu1 %v7716_v2  ;;  %v863_v40 = vsel %vm858_vm6, %v847_v37, %v849_v32 }
  0xc9   : >> { %1608 = vrot.lane.b32.xlu0 %v7866_v9, %s7727_s18  ;;  %892 = vmatprep.subr.bf16.mxu0 %v864_v39 }
  0xca   : >> { %1610 = vrot.lane.b32.xlu1 %v7869_v10, %s7727_s18 }
  0xcb   : >> { %6862 = vmatpush3.bf16.msra.mxu1 %v851_v33  ;;  %v857_v41 = vpop.permute.xlu0 %856  ;;  %v853_v44 = vpop.permute.xlu1 %852 }
  0xcc   : >> { %v866_v42 = vsel %vm858_vm6, %v855_v38, %v857_v41  ;;  %v886_v43 = vand.u32 %v857_v41, %v7967_v35  ;;  %893 = vmatpush1.bf16.msra.mxu0 %v863_v40  ;;  %6863 = vmatprep.subr.bf16.mxu1 %v7716_v2  ;;  %v865_v45 = vsel %vm858_vm6, %v853_v44, %v855_v38  ;;  %vm2834_vm6 = vcmask 916480  }
  0xcd   : >> { %1606 = vrot.lane.b32.xlu0 %v7876_v12, %s7727_s18  ;;  %v883_v46 = vand.u32 %v866_v42, %v7967_v35  ;;  %v880_v47 = vand.u32 %v865_v45, %v7967_v35 }
  0xce   : >> { %1614 = vrot.lane.b32.xlu1 %v7881_v13, %s7727_s18 }
  0xcf   : >> { %6864 = vmatpush3.bf16.msra.mxu1 %v886_v43  ;;  %v989_v48 = vpop.permute.xlu0 %988  ;;  %894 = vmatprep.subr.bf16.mxu0 %v883_v46  ;;  %v991_v50 = vpop.permute.xlu1 %990 }
  0xd0   : >> { %895 = vmatpush1.bf16.msra.mxu0 %v880_v47  ;;  %6869 = vmatprep.subr.bf16.mxu1 %v7716_v2  ;;  %v1012_v51 = vsel %vm1010_vm7, %v989_v48, %v991_v50 }
  0xd1   : >> { %1616 = vrot.lane.b32.xlu0 %v7886_v15, %s7727_s18  ;;  %1040 = vmatprep.subr.bf16.mxu0 %v1012_v51 }
  0xd2   : >> { %1612 = vrot.lane.b32.xlu1 %v7891_v16, %s7727_s18  ;;  %6866 = vmatmul.mubr.msk.bf16.vlgmr.msra.gmra.mrb[12].mxu1 %vm463_vm4, %v7557_v49  ;;  %s7737_s18 = smov 110  }
  0xd3   : >> { %v987_v52 = vpop.permute.xlu0 %986  ;;  %6251 = vmatmul.mubr.msk.bf16.vlgmr.msra.gmra.mrb[0].mxu0 %vm463_vm4, %v7557_v49  ;;  %6870 = vmatpush3.bf16.msra.mxu1 %v991_v50  ;;  %v995_v54 = vpop.permute.xlu1 %994 }
  0xd4   : >> { %v1011_v53 = vsel %vm1010_vm7, %v987_v52, %v989_v48  ;;  %6877 = vmatprep.mubr.msk.bf16.mxu1 %vm7718_vm0, %v7716_v2  ;;  %6871 = vmatprep.subr.bf16.mxu1 %v7716_v2  ;;  %v7559_v48 = vld [vmem:[%s9483_s1 + $0x28] sm:$0xff]  }
  0xd5   : >> { %1748 = vrot.lane.b32.xlu0 %v7844_v3, %s7728_s27  ;;  %1041 = vmatpush1.bf16.msra.mxu0 %v1011_v53 }
  0xd6   : >> { %1750 = vrot.lane.b32.xlu1 %v7851_v5, %s7728_s27  ;;  %1072 = vmatprep.mubr.bf16.mxu0 %v7719_v14 }
  0xd7   : >> { %v997_v55 = vpop.permute.xlu0 %996  ;;  %v993_v56 = vpop.permute.xlu1 %992 }
  0xd8   : >> { %6872 = vmatpush3.bf16.msra.mxu1 %v997_v55  ;;  %v1014_v57 = vsel %vm1010_vm7, %v995_v54, %v997_v55  ;;  %v1013_v58 = vsel %vm1010_vm7, %v993_v56, %v995_v54 }
  0xd9   : >> { %1746 = vrot.lane.b32.xlu0 %v7847_v4, %s7728_s27  ;;  %1042 = vmatprep.subr.bf16.mxu0 %v1014_v57 }
  0xda   : >> { %1754 = vrot.lane.b32.xlu1 %v7855_v6, %s7728_s27  ;;  %1043 = vmatpush1.bf16.msra.mxu0 %v1013_v58 }
  0xdb   : >> { %v1001_v59 = vpop.permute.xlu0 %1000  ;;  %6873 = vmatprep.subr.bf16.mxu1 %v7716_v2  ;;  %v1003_v60 = vpop.permute.xlu1 %1002 }
  0xdc   : >> { %v1016_v61 = vsel %vm1010_vm7, %v1001_v59, %v1003_v60  ;;  %6874 = vmatpush3.bf16.msra.mxu1 %v1003_v60 }
  0xdd   : >> { %1756 = vrot.lane.b32.xlu0 %v7859_v7, %s7728_s27  ;;  %1044 = vmatprep.subr.bf16.mxu0 %v1016_v61 }
  0xde   : >> { %1752 = vrot.lane.b32.xlu1 %v7863_v8, %s7728_s27  ;;  %6875 = vmatprep.subr.bf16.mxu1 %v7716_v2 }
  0xdf   : >> { %v999_v62 = vpop.permute.xlu0 %998  ;;  %v1007_v11 = vpop.permute.xlu1 %1006 }
  0xe0   : >> { %v1015_v63 = vsel %vm1010_vm7, %v999_v62, %v1001_v59 }
  0xe1   : >> { %1760 = vrot.lane.b32.xlu0 %v7866_v9, %s7728_s27  ;;  %1045 = vmatpush1.bf16.msra.mxu0 %v1015_v63 }
  0xe2   : >> { %1762 = vrot.lane.b32.xlu1 %v7869_v10, %s7728_s27 }
  0xe3   : >> { %v1009_v17 = vpop.permute.xlu0 %1008  ;;  %v1005_v20 = vpop.permute.xlu1 %1004 }
  0xe4   : >> { %v1018_v18 = vsel %vm1010_vm7, %v1007_v11, %v1009_v17  ;;  %v1038_v19 = vand.u32 %v1009_v17, %v7967_v35  ;;  %v1017_v21 = vsel %vm1010_vm7, %v1005_v20, %v1007_v11  ;;  %vm2986_vm7 = vcmask 908288  }
  0xe5   : >> { %1758 = vrot.lane.b32.xlu0 %v7876_v12, %s7728_s27  ;;  %v1035_v22 = vand.u32 %v1018_v18, %v7967_v35  ;;  %v1032_v24 = vand.u32 %v1017_v21, %v7967_v35 }
  0xe6   : >> { %1766 = vrot.lane.b32.xlu1 %v7881_v13, %s7728_s27  ;;  %6876 = vmatpush3.bf16.msra.mxu1 %v1038_v19 }
  0xe7   : >> { %v1141_v25 = vpop.permute.xlu0 %1140  ;;  %1046 = vmatprep.subr.bf16.mxu0 %v1035_v22  ;;  %6881 = vmatprep.subr.bf16.mxu1 %v7716_v2  ;;  %v1143_v26 = vpop.permute.xlu1 %1142 }
  0xe8   : >> { %1047 = vmatpush1.bf16.msra.mxu0 %v1032_v24  ;;  %v1164_v27 = vsel %vm1162_vm8, %v1141_v25, %v1143_v26  ;;  %v8263_v24 = vld [vmem:[%s7841_s26 + $0x8] ss:$12 sps:$4 sm:$0xff]  }
  0xe9   : >> { %1768 = vrot.lane.b32.xlu0 %v7886_v15, %s7728_s27  ;;  %6878 = vmatmul.mubr.msk.bf16.vlgmr.msra.gmra.mrb[16].mxu1 %vm463_vm4, %v7558_v23 }
  0xea   : >> { %1764 = vrot.lane.b32.xlu1 %v7891_v16, %s7728_s27  ;;  %1192 = vmatprep.subr.bf16.mxu0 %v1164_v27 }
  0xeb   : >> { %6882 = vmatpush3.bf16.msra.mxu1 %v1143_v26  ;;  %v1139_v28 = vpop.permute.xlu0 %1138  ;;  %6256 = vmatmul.mubr.msk.bf16.vlgmr.msra.gmra.mrb[0].mxu0 %vm463_vm4, %v7558_v23  ;;  %v1147_v30 = vpop.permute.xlu1 %1146  ;;  %v8258_v23 = vld [vmem:[%s7841_s26 + $0x4] ss:$12 sps:$4 sm:$0xff]  }
  0xec   : >> { %v1163_v29 = vsel %vm1162_vm8, %v1139_v28, %v1141_v25  ;;  %6883 = vmatprep.subr.bf16.mxu1 %v7716_v2  ;;  %6889 = vmatprep.mubr.msk.bf16.mxu1 %vm7718_vm0, %v7716_v2 }
  0xed   : >> { %1900 = vrot.lane.b32.xlu0 %v7844_v3, %s7729_s10  ;;  %1193 = vmatpush1.bf16.msra.mxu0 %v1163_v29  ;;  %v8271_v29 = vld [vmem:[%s7841_s26] ss:$12 sps:$4 sm:$0xff]  }
  0xee   : >> { %1902 = vrot.lane.b32.xlu1 %v7851_v5, %s7729_s10  ;;  %1224 = vmatprep.mubr.bf16.mxu0 %v7719_v14 }
  0xef   : >> { %v1149_v31 = vpop.permute.xlu0 %1148  ;;  %v1145_v32 = vpop.permute.xlu1 %1144 }
  0xf0   : >> { %6884 = vmatpush3.bf16.msra.mxu1 %v1149_v31  ;;  %v1166_v33 = vsel %vm1162_vm8, %v1147_v30, %v1149_v31  ;;  %v1165_v34 = vsel %vm1162_vm8, %v1145_v32, %v1147_v30  ;;  %v8276_v30 = vld [vmem:[%s7841_s26 + $0x1c] ss:$12 sps:$4 sm:$0xff]  }
  0xf1   : >> { %1898 = vrot.lane.b32.xlu0 %v7847_v4, %s7729_s10  ;;  %1194 = vmatprep.subr.bf16.mxu0 %v1166_v33  ;;  %v8282_v33 = vld [vmem:[%s7841_s26 + $0x20] ss:$12 sps:$4 sm:$0xff]  }
  0xf2   : >> { %1906 = vrot.lane.b32.xlu1 %v7855_v6, %s7729_s10  ;;  %1195 = vmatpush1.bf16.msra.mxu0 %v1165_v34 }
  0xf3   : >> { %v1153_v36 = vpop.permute.xlu0 %1152  ;;  %6885 = vmatprep.subr.bf16.mxu1 %v7716_v2  ;;  %v1155_v37 = vpop.permute.xlu1 %1154 }
  0xf4   : >> { %v1168_v38 = vsel %vm1162_vm8, %v1153_v36, %v1155_v37  ;;  %6886 = vmatpush3.bf16.msra.mxu1 %v1155_v37 }
  0xf5   : >> { %1908 = vrot.lane.b32.xlu0 %v7859_v7, %s7729_s10  ;;  %1196 = vmatprep.subr.bf16.mxu0 %v1168_v38 }
  0xf6   : >> { %1904 = vrot.lane.b32.xlu1 %v7863_v8, %s7729_s10  ;;  %6887 = vmatprep.subr.bf16.mxu1 %v7716_v2 }
  0xf7   : >> { %v1151_v39 = vpop.permute.xlu0 %1150  ;;  %v1159_v41 = vpop.permute.xlu1 %1158 }
  0xf8   : >> { %v1167_v40 = vsel %vm1162_vm8, %v1151_v39, %v1153_v36  ;;  %v8288_v36 = vld [vmem:[%s7841_s26 + $0x18] ss:$12 sps:$4 sm:$0xff]  }
  0xf9   : >> { %1912 = vrot.lane.b32.xlu0 %v7866_v9, %s7729_s10  ;;  %1197 = vmatpush1.bf16.msra.mxu0 %v1167_v40  ;;  %v8295_v40 = vld [vmem:[%s7841_s26 + $0x34] ss:$12 sps:$4 sm:$0xff]  }
  0xfa   : >> { %1914 = vrot.lane.b32.xlu1 %v7869_v10, %s7729_s10 }
  0xfb   : >> { %v1161_v42 = vpop.permute.xlu0 %1160  ;;  %v1157_v45 = vpop.permute.xlu1 %1156 }
  0xfc   : >> { %v1170_v43 = vsel %vm1162_vm8, %v1159_v41, %v1161_v42  ;;  %v1190_v44 = vand.u32 %v1161_v42, %v7967_v35  ;;  %v1169_v46 = vsel %vm1162_vm8, %v1157_v45, %v1159_v41  ;;  %v8300_v41 = vld [vmem:[%s7841_s26 + $0x38] ss:$12 sps:$4 sm:$0xff]   ;;  %vm3138_vm8 = vcmask 900096  }
  0xfd   : >> { %1910 = vrot.lane.b32.xlu0 %v7876_v12, %s7729_s10  ;;  %v1187_v47 = vand.u32 %v1170_v43, %v7967_v35  ;;  %v1184_v49 = vand.u32 %v1169_v46, %v7967_v35 }
  0xfe   : >> { %1918 = vrot.lane.b32.xlu1 %v7881_v13, %s7729_s10  ;;  %6888 = vmatpush3.bf16.msra.mxu1 %v1190_v44 }
  0xff   : >> { %v1293_v50 = vpop.permute.xlu0 %1292  ;;  %1198 = vmatprep.subr.bf16.mxu0 %v1187_v47  ;;  %6893 = vmatprep.subr.bf16.mxu1 %v7716_v2  ;;  %v8308_v47 = vld [vmem:[%s7841_s26 + $0x30] ss:$12 sps:$4 sm:$0xff]  }
 0x100   : >> { %v1295_v51 = vpop.permute.xlu1 %1294  ;;  %1199 = vmatpush1.bf16.msra.mxu0 %v1184_v49  ;;  %v7561_v49 = vld [vmem:[%s9483_s1 + $0x38] sm:$0xff]  }
 0x101   : >> { %1920 = vrot.lane.b32.xlu0 %v7886_v15, %s7729_s10  ;;  %v1316_v52 = vsel %vm1314_vm9, %v1293_v50, %v1295_v51  ;;  %6890 = vmatmul.mubr.msk.bf16.vlgmr.msra.gmra.mrb[20].mxu1 %vm463_vm4, %v7559_v48 }
 0x102   : >> { %1916 = vrot.lane.b32.xlu1 %v7891_v16, %s7729_s10  ;;  %1344 = vmatprep.subr.bf16.mxu0 %v1316_v52 }
 0x103   : >> { %6894 = vmatpush3.bf16.msra.mxu1 %v1295_v51  ;;  %v1291_v53 = vpop.permute.xlu0 %1290  ;;  %6261 = vmatmul.mubr.msk.bf16.vlgmr.msra.gmra.mrb[0].mxu0 %vm463_vm4, %v7559_v48 }
 0x104   : >> { %v1315_v54 = vsel %vm1314_vm9, %v1291_v53, %v1293_v50  ;;  %v1299_v55 = vpop.permute.xlu1 %1298  ;;  %6895 = vmatprep.subr.bf16.mxu1 %v7716_v2  ;;  %6901 = vmatprep.mubr.msk.bf16.mxu1 %vm7718_vm0, %v7716_v2 }
 0x105   : >> { %2052 = vrot.lane.b32.xlu0 %v7844_v3, %s7730_s13  ;;  %1345 = vmatpush1.bf16.msra.mxu0 %v1315_v54 }
 0x106   : >> { %2054 = vrot.lane.b32.xlu1 %v7851_v5, %s7730_s13  ;;  %1376 = vmatprep.mubr.bf16.mxu0 %v7719_v14 }
 0x107   : >> { %v1301_v56 = vpop.permute.xlu0 %1300 }
 0x108   : >> { %v1297_v57 = vpop.permute.xlu1 %1296  ;;  %6896 = vmatpush3.bf16.msra.mxu1 %v1301_v56  ;;  %v1318_v58 = vsel %vm1314_vm9, %v1299_v55, %v1301_v56 }
 0x109   : >> { %v1317_v59 = vsel %vm1314_vm9, %v1297_v57, %v1299_v55  ;;  %2050 = vrot.lane.b32.xlu0 %v7847_v4, %s7730_s13  ;;  %1346 = vmatprep.subr.bf16.mxu0 %v1318_v58 }
 0x10a   : >> { %2058 = vrot.lane.b32.xlu1 %v7855_v6, %s7730_s13  ;;  %1347 = vmatpush1.bf16.msra.mxu0 %v1317_v59 }
 0x10b   : >> { %v1305_v3 = vpop.permute.xlu0 %1304  ;;  %6897 = vmatprep.subr.bf16.mxu1 %v7716_v2 }
 0x10c   : >> { %v1307_v5 = vpop.permute.xlu1 %1306 }
 0x10d   : >> { %2060 = vrot.lane.b32.xlu0 %v7859_v7, %s7730_s13  ;;  %v1320_v60 = vsel %vm1314_vm9, %v1305_v3, %v1307_v5  ;;  %6898 = vmatpush3.bf16.msra.mxu1 %v1307_v5 }
 0x10e   : >> { %2056 = vrot.lane.b32.xlu1 %v7863_v8, %s7730_s13  ;;  %1348 = vmatprep.subr.bf16.mxu0 %v1320_v60 }
 0x10f   : >> { %v1303_v4 = vpop.permute.xlu0 %1302  ;;  %6899 = vmatprep.subr.bf16.mxu1 %v7716_v2 }
 0x110   : >> { %v1319_v6 = vsel %vm1314_vm9, %v1303_v4, %v1305_v3  ;;  %v1311_v61 = vpop.permute.xlu1 %1310 }
 0x111   : >> { %2064 = vrot.lane.b32.xlu0 %v7866_v9, %s7730_s13  ;;  %1349 = vmatpush1.bf16.msra.mxu0 %v1319_v6  ;;  %v7560_v9 = vld [vmem:[%s9483_s1 + $0x30] sm:$0xff]  }
 0x112   : >> { %2066 = vrot.lane.b32.xlu1 %v7869_v10, %s7730_s13 }
 0x113   : >> { %v1313_v7 = vpop.permute.xlu0 %1312 }
 0x114   : >> { %v1322_v62 = vsel %vm1314_vm9, %v1311_v61, %v1313_v7  ;;  %v1342_v63 = vand.u32 %v1313_v7, %v7967_v35  ;;  %v1309_v8 = vpop.permute.xlu1 %1308 }
 0x115   : >> { %v1321_v11 = vsel %vm1314_vm9, %v1309_v8, %v1311_v61  ;;  %2062 = vrot.lane.b32.xlu0 %v7876_v12, %s7730_s13  ;;  %v1339_v17 = vand.u32 %v1322_v62, %v7967_v35  ;;  %vm3290_vm9 = vcmask 891904  }
 0x116   : >> { %v1336_v18 = vand.u32 %v1321_v11, %v7967_v35  ;;  %2070 = vrot.lane.b32.xlu1 %v7881_v13, %s7730_s13  ;;  %6900 = vmatpush3.bf16.msra.mxu1 %v1342_v63 }
 0x117   : >> { %v1445_v10 = vpop.permute.xlu0 %1444  ;;  %1350 = vmatprep.subr.bf16.mxu0 %v1339_v17  ;;  %6905 = vmatprep.subr.bf16.mxu1 %v7716_v2 }
 0x118   : >> { %v1447_v19 = vpop.permute.xlu1 %1446  ;;  %1351 = vmatpush1.bf16.msra.mxu0 %v1336_v18 }
 0x119   : >> { %2072 = vrot.lane.b32.xlu0 %v7886_v15, %s7730_s13  ;;  %v1468_v12 = vsel %vm1466_vm10, %v1445_v10, %v1447_v19  ;;  %6902 = vmatmul.mubr.msk.bf16.vlgmr.msra.gmra.mrb[24].mxu1 %vm463_vm4, %v7560_v9 }
 0x11a   : >> { %2068 = vrot.lane.b32.xlu1 %v7891_v16, %s7730_s13  ;;  %1496 = vmatprep.subr.bf16.mxu0 %v1468_v12  ;;  %v8368_v12 = vld [vmem:[%s7841_s26 + $0x50] ss:$0 sps:$4 sm:$0xff]  }
 0x11b   : >> { %6906 = vmatpush3.bf16.msra.mxu1 %v1447_v19  ;;  %v1443_v20 = vpop.permute.xlu0 %1442  ;;  %6266 = vmatmul.mubr.msk.bf16.vlgmr.msra.gmra.mrb[0].mxu0 %vm463_vm4, %v7560_v9  ;;  %v7562_v9 = vld [vmem:[%s9483_s1 + $0x40] sm:$0xff]  }
 0x11c   : >> { %v1467_v21 = vsel %vm1466_vm10, %v1443_v20, %v1445_v10  ;;  %v1451_v22 = vpop.permute.xlu1 %1450  ;;  %6907 = vmatprep.subr.bf16.mxu1 %v7716_v2  ;;  %6913 = vmatprep.mubr.msk.bf16.mxu1 %vm7718_vm0, %v7716_v2 }
 0x11d   : >> { %2204 = vrot.lane.b32.xlu0 %v8258_v23, %s7731_s16  ;;  %1497 = vmatpush1.bf16.msra.mxu0 %v1467_v21 }
 0x11e   : >> { %2206 = vrot.lane.b32.xlu1 %v8263_v24, %s7731_s16  ;;  %1528 = vmatprep.mubr.bf16.mxu0 %v7719_v14 }
 0x11f   : >> { %v1453_v25 = vpop.permute.xlu0 %1452 }
 0x120   : >> { %v1449_v26 = vpop.permute.xlu1 %1448  ;;  %6908 = vmatpush3.bf16.msra.mxu1 %v1453_v25  ;;  %v1470_v27 = vsel %vm1466_vm10, %v1451_v22, %v1453_v25 }
 0x121   : >> { %v1469_v28 = vsel %vm1466_vm10, %v1449_v26, %v1451_v22  ;;  %2202 = vrot.lane.b32.xlu0 %v8271_v29, %s7731_s16  ;;  %1498 = vmatprep.subr.bf16.mxu0 %v1470_v27 }
 0x122   : >> { %2210 = vrot.lane.b32.xlu1 %v8276_v30, %s7731_s16  ;;  %1499 = vmatpush1.bf16.msra.mxu0 %v1469_v28 }
 0x123   : >> { %v1457_v31 = vpop.permute.xlu0 %1456  ;;  %6909 = vmatprep.subr.bf16.mxu1 %v7716_v2 }
 0x124   : >> { %v1459_v32 = vpop.permute.xlu1 %1458 }
 0x125   : >> { %2212 = vrot.lane.b32.xlu0 %v8282_v33, %s7731_s16  ;;  %v1472_v34 = vsel %vm1466_vm10, %v1457_v31, %v1459_v32  ;;  %6910 = vmatpush3.bf16.msra.mxu1 %v1459_v32 }
 0x126   : >> { %2208 = vrot.lane.b32.xlu1 %v8288_v36, %s7731_s16  ;;  %1500 = vmatprep.subr.bf16.mxu0 %v1472_v34 }
 0x127   : >> { %v1455_v37 = vpop.permute.xlu0 %1454  ;;  %6911 = vmatprep.subr.bf16.mxu1 %v7716_v2 }
 0x128   : >> { %v1471_v38 = vsel %vm1466_vm10, %v1455_v37, %v1457_v31  ;;  %v1463_v39 = vpop.permute.xlu1 %1462 }
 0x129   : >> { %2216 = vrot.lane.b32.xlu0 %v8295_v40, %s7731_s16  ;;  %1501 = vmatpush1.bf16.msra.mxu0 %v1471_v38 }
 0x12a   : >> { %2218 = vrot.lane.b32.xlu1 %v8300_v41, %s7731_s16 }
 0x12b   : >> { %v1465_v42 = vpop.permute.xlu0 %1464 }
 0x12c   : >> { %v1474_v43 = vsel %vm1466_vm10, %v1463_v39, %v1465_v42  ;;  %v1494_v44 = vand.u32 %v1465_v42, %v7967_v35  ;;  %v1461_v45 = vpop.permute.xlu1 %1460 }
 0x12d   : >> { %v1473_v46 = vsel %vm1466_vm10, %v1461_v45, %v1463_v39  ;;  %2214 = vrot.lane.b32.xlu0 %v8308_v47, %s7731_s16  ;;  %v1491_v48 = vand.u32 %v1474_v43, %v7967_v35  ;;  %vm3442_vm10 = vcmask 883712  }
 0x12e   : >> { %v1488_v50 = vand.u32 %v1473_v46, %v7967_v35  ;;  %2222 = vrot.lane.b32.xlu1 %v7881_v13, %s7731_s16  ;;  %6912 = vmatpush3.bf16.msra.mxu1 %v1494_v44 }
 0x12f   : >> { %v1597_v51 = vpop.permute.xlu0 %1596  ;;  %1502 = vmatprep.subr.bf16.mxu0 %v1491_v48  ;;  %6917 = vmatprep.subr.bf16.mxu1 %v7716_v2 }
 0x130   : >> { %v1599_v52 = vpop.permute.xlu1 %1598  ;;  %1503 = vmatpush1.bf16.msra.mxu0 %v1488_v50  ;;  %v7563_v50 = vld [vmem:[%s9483_s1 + $0x48] sm:$0xff]  }
 0x131   : >> { %2224 = vrot.lane.b32.xlu0 %v7886_v15, %s7731_s16  ;;  %v1620_v53 = vsel %vm1618_vm11, %v1597_v51, %v1599_v52  ;;  %6914 = vmatmul.mubr.msk.bf16.vlgmr.msra.gmra.mrb[28].mxu1 %vm463_vm4, %v7561_v49 }
 0x132   : >> { %2220 = vrot.lane.b32.xlu1 %v7891_v16, %s7731_s16  ;;  %1648 = vmatprep.subr.bf16.mxu0 %v1620_v53  ;;  %s6364_s16 = sshll.u32 %s7714_s24, 4  ;;  %s346_s24 = sadd.s32 1, %s7714_s24  }
 0x133   : >> { %6918 = vmatpush3.bf16.msra.mxu1 %v1599_v52  ;;  %v1595_v54 = vpop.permute.xlu0 %1594  ;;  %6271 = vmatmul.mubr.msk.bf16.vlgmr.msra.gmra.mrb[0].mxu0 %vm463_vm4, %v7561_v49  ;;  %p343_p5 = scmp.ge.s32.totalorder %s346_s24, 4  }
 0x134   : >> { %v1619_v55 = vsel %vm1618_vm11, %v1595_v54, %v1597_v51  ;;  %v1603_v56 = vpop.permute.xlu1 %1602  ;;  %6919 = vmatprep.subr.bf16.mxu1 %v7716_v2  ;;  %6925 = vmatprep.mubr.msk.bf16.mxu1 %vm7718_vm0, %v7716_v2  ;;  %s7747_s10 = smov (%p343_p5), 123   ;;  %s7748_s24 = smov (%p343_p5), 122  }
 0x135   : >> { %2356 = vrot.lane.b32.xlu0 %v8258_v23, %s7732_s19  ;;  %1649 = vmatpush1.bf16.msra.mxu0 %v1619_v55  ;;  %s7749_s23 = smov (%p343_p5), 121  }
 0x136   : >> { %2358 = vrot.lane.b32.xlu1 %v8263_v24, %s7732_s19  ;;  %1680 = vmatprep.mubr.bf16.mxu0 %v7719_v14 }
 0x137   : >> { %v1605_v15 = vpop.permute.xlu0 %1604 }
 0x138   : >> { %v1601_v57 = vpop.permute.xlu1 %1600  ;;  %6920 = vmatpush3.bf16.msra.mxu1 %v1605_v15  ;;  %v1622_v58 = vsel %vm1618_vm11, %v1603_v56, %v1605_v15 }
 0x139   : >> { %v1621_v59 = vsel %vm1618_vm11, %v1601_v57, %v1603_v56  ;;  %2354 = vrot.lane.b32.xlu0 %v8271_v29, %s7732_s19  ;;  %1650 = vmatprep.subr.bf16.mxu0 %v1622_v58 }
 0x13a   : >> { %2362 = vrot.lane.b32.xlu1 %v8276_v30, %s7732_s19  ;;  %1651 = vmatpush1.bf16.msra.mxu0 %v1621_v59 }
 0x13b   : >> { %v1609_v3 = vpop.permute.xlu0 %1608  ;;  %6921 = vmatprep.subr.bf16.mxu1 %v7716_v2 }
 0x13c   : >> { %v1611_v5 = vpop.permute.xlu1 %1610 }
 0x13d   : >> { %2364 = vrot.lane.b32.xlu0 %v8282_v33, %s7732_s19  ;;  %v1624_v60 = vsel %vm1618_vm11, %v1609_v3, %v1611_v5  ;;  %6922 = vmatpush3.bf16.msra.mxu1 %v1611_v5 }
 0x13e   : >> { %2360 = vrot.lane.b32.xlu1 %v8288_v36, %s7732_s19  ;;  %1652 = vmatprep.subr.bf16.mxu0 %v1624_v60 }
 0x13f   : >> { %v1607_v4 = vpop.permute.xlu0 %1606  ;;  %6923 = vmatprep.subr.bf16.mxu1 %v7716_v2 }
 0x140   : >> { %v1623_v6 = vsel %vm1618_vm11, %v1607_v4, %v1609_v3  ;;  %v1615_v61 = vpop.permute.xlu1 %1614 }
 0x141   : >> { %2368 = vrot.lane.b32.xlu0 %v8295_v40, %s7732_s19  ;;  %1653 = vmatpush1.bf16.msra.mxu0 %v1623_v6 }
 0x142   : >> { %2370 = vrot.lane.b32.xlu1 %v8300_v41, %s7732_s19 }
 0x143   : >> { %v1617_v7 = vpop.permute.xlu0 %1616 }
 0x144   : >> { %v1626_v62 = vsel %vm1618_vm11, %v1615_v61, %v1617_v7  ;;  %v1646_v63 = vand.u32 %v1617_v7, %v7967_v35  ;;  %v1613_v8 = vpop.permute.xlu1 %1612 }
 0x145   : >> { %v1625_v11 = vsel %vm1618_vm11, %v1613_v8, %v1615_v61  ;;  %2366 = vrot.lane.b32.xlu0 %v8308_v47, %s7732_s19  ;;  %v1643_v17 = vand.u32 %v1626_v62, %v7967_v35  ;;  %vm3594_vm11 = vcmask 875520  }
 0x146   : >> { %v1640_v18 = vand.u32 %v1625_v11, %v7967_v35  ;;  %2374 = vrot.lane.b32.xlu1 %v7881_v13, %s7732_s19  ;;  %6924 = vmatpush3.bf16.msra.mxu1 %v1646_v63 }
 0x147   : >> { %v1749_v10 = vpop.permute.xlu0 %1748  ;;  %1654 = vmatprep.subr.bf16.mxu0 %v1643_v17  ;;  %6929 = vmatprep.subr.bf16.mxu1 %v7716_v2 }
 0x148   : >> { %v1751_v19 = vpop.permute.xlu1 %1750  ;;  %1655 = vmatpush1.bf16.msra.mxu0 %v1640_v18  ;;  %v7564_v18 = vld [vmem:[%s9483_s1 + $0x50] sm:$0xff]  }
 0x149   : >> { %2376 = vrot.lane.b32.xlu0 %v8368_v12, %s7732_s19  ;;  %v1772_v20 = vsel %vm1770_vm12, %v1749_v10, %v1751_v19  ;;  %6926 = vmatmul.mubr.msk.bf16.vlgmr.msra.gmra.mrb[32].mxu1 %vm463_vm4, %v7562_v9 }
 0x14a   : >> { %2372 = vrot.lane.b32.xlu1 %v7891_v16, %s7732_s19  ;;  %1800 = vmatprep.subr.bf16.mxu0 %v1772_v20  ;;  %s7743_s19 = smov 104  }
 0x14b   : >> { %6930 = vmatpush3.bf16.msra.mxu1 %v1751_v19  ;;  %v1747_v21 = vpop.permute.xlu0 %1746  ;;  %6276 = vmatmul.mubr.msk.bf16.vlgmr.msra.gmra.mrb[0].mxu0 %vm463_vm4, %v7562_v9 }
 0x14c   : >> { %v1771_v22 = vsel %vm1770_vm12, %v1747_v21, %v1749_v10  ;;  %v1755_v25 = vpop.permute.xlu1 %1754  ;;  %6931 = vmatprep.subr.bf16.mxu1 %v7716_v2  ;;  %6937 = vmatprep.mubr.msk.bf16.mxu1 %vm7718_vm0, %v7716_v2 }
 0x14d   : >> { %2508 = vrot.lane.b32.xlu0 %v8258_v23, %s7733_s25  ;;  %1801 = vmatpush1.bf16.msra.mxu0 %v1771_v22 }
 0x14e   : >> { %2510 = vrot.lane.b32.xlu1 %v8263_v24, %s7733_s25  ;;  %1832 = vmatprep.mubr.bf16.mxu0 %v7719_v14 }
 0x14f   : >> { %v1757_v26 = vpop.permute.xlu0 %1756 }
 0x150   : >> { %v1753_v27 = vpop.permute.xlu1 %1752  ;;  %6932 = vmatpush3.bf16.msra.mxu1 %v1757_v26  ;;  %v1774_v28 = vsel %vm1770_vm12, %v1755_v25, %v1757_v26 }
 0x151   : >> { %v1773_v31 = vsel %vm1770_vm12, %v1753_v27, %v1755_v25  ;;  %2506 = vrot.lane.b32.xlu0 %v8271_v29, %s7733_s25  ;;  %1802 = vmatprep.subr.bf16.mxu0 %v1774_v28 }
 0x152   : >> { %2514 = vrot.lane.b32.xlu1 %v8276_v30, %s7733_s25  ;;  %1803 = vmatpush1.bf16.msra.mxu0 %v1773_v31 }
 0x153   : >> { %v1761_v32 = vpop.permute.xlu0 %1760  ;;  %6933 = vmatprep.subr.bf16.mxu1 %v7716_v2 }
 0x154   : >> { %v1763_v34 = vpop.permute.xlu1 %1762 }
 0x155   : >> { %2516 = vrot.lane.b32.xlu0 %v8282_v33, %s7733_s25  ;;  %v1776_v37 = vsel %vm1770_vm12, %v1761_v32, %v1763_v34  ;;  %6934 = vmatpush3.bf16.msra.mxu1 %v1763_v34 }
 0x156   : >> { %2512 = vrot.lane.b32.xlu1 %v8288_v36, %s7733_s25  ;;  %1804 = vmatprep.subr.bf16.mxu0 %v1776_v37 }
 0x157   : >> { %v1759_v38 = vpop.permute.xlu0 %1758  ;;  %6935 = vmatprep.subr.bf16.mxu1 %v7716_v2 }
 0x158   : >> { %v1775_v39 = vsel %vm1770_vm12, %v1759_v38, %v1761_v32  ;;  %v1767_v42 = vpop.permute.xlu1 %1766 }
 0x159   : >> { %2520 = vrot.lane.b32.xlu0 %v8295_v40, %s7733_s25  ;;  %1805 = vmatpush1.bf16.msra.mxu0 %v1775_v39 }
 0x15a   : >> { %2522 = vrot.lane.b32.xlu1 %v8300_v41, %s7733_s25 }
 0x15b   : >> { %v1769_v43 = vpop.permute.xlu0 %1768 }
 0x15c   : >> { %v1778_v44 = vsel %vm1770_vm12, %v1767_v42, %v1769_v43  ;;  %v1798_v45 = vand.u32 %v1769_v43, %v7967_v35  ;;  %v1765_v46 = vpop.permute.xlu1 %1764 }
 0x15d   : >> { %v1777_v48 = vsel %vm1770_vm12, %v1765_v46, %v1767_v42  ;;  %2518 = vrot.lane.b32.xlu0 %v8308_v47, %s7733_s25  ;;  %v1795_v49 = vand.u32 %v1778_v44, %v7967_v35  ;;  %vm3746_vm12 = vcmask 867328  }
 0x15e   : >> { %v1792_v51 = vand.u32 %v1777_v48, %v7967_v35  ;;  %2526 = vrot.lane.b32.xlu1 %v7881_v13, %s7733_s25  ;;  %6936 = vmatpush3.bf16.msra.mxu1 %v1798_v45 }
 0x15f   : >> { %v1901_v52 = vpop.permute.xlu0 %1900  ;;  %1806 = vmatprep.subr.bf16.mxu0 %v1795_v49  ;;  %6941 = vmatprep.subr.bf16.mxu1 %v7716_v2 }
 0x160   : >> { %v1903_v53 = vpop.permute.xlu1 %1902  ;;  %1807 = vmatpush1.bf16.msra.mxu0 %v1792_v51 }
 0x161   : >> { %2528 = vrot.lane.b32.xlu0 %v8368_v12, %s7733_s25  ;;  %6938 = vmatmul.mubr.msk.bf16.vlgmr.msra.gmra.mrb[36].mxu1 %vm463_vm4, %v7563_v50  ;;  %v1924_v54 = vsel %vm1922_vm13, %v1901_v52, %v1903_v53 }
 0x162   : >> { %2524 = vrot.lane.b32.xlu1 %v7891_v16, %s7733_s25  ;;  %1952 = vmatprep.subr.bf16.mxu0 %v1924_v54  ;;  %v7565_v54 = vld [vmem:[%s9483_s1 + $0x58] sm:$0xff]  }
 0x163   : >> { %6942 = vmatpush3.bf16.msra.mxu1 %v1903_v53  ;;  %v1899_v55 = vpop.permute.xlu0 %1898  ;;  %6281 = vmatmul.mubr.msk.bf16.vlgmr.msra.gmra.mrb[0].mxu0 %vm463_vm4, %v7563_v50 }
 0x164   : >> { %v1923_v56 = vsel %vm1922_vm13, %v1899_v55, %v1901_v52  ;;  %v1907_v15 = vpop.permute.xlu1 %1906  ;;  %6943 = vmatprep.subr.bf16.mxu1 %v7716_v2  ;;  %6949 = vmatprep.mubr.msk.bf16.mxu1 %vm7718_vm0, %v7716_v2 }
 0x165   : >> { %2660 = vrot.lane.b32.xlu0 %v8258_v23, %s7734_s29  ;;  %1953 = vmatpush1.bf16.msra.mxu0 %v1923_v56 }
 0x166   : >> { %2662 = vrot.lane.b32.xlu1 %v8263_v24, %s7734_s29  ;;  %1984 = vmatprep.mubr.bf16.mxu0 %v7719_v14 }
 0x167   : >> { %v1909_v57 = vpop.permute.xlu0 %1908 }
 0x168   : >> { %v1905_v58 = vpop.permute.xlu1 %1904  ;;  %6944 = vmatpush3.bf16.msra.mxu1 %v1909_v57  ;;  %v1926_v59 = vsel %vm1922_vm13, %v1907_v15, %v1909_v57 }
 0x169   : >> { %v1925_v3 = vsel %vm1922_vm13, %v1905_v58, %v1907_v15  ;;  %2658 = vrot.lane.b32.xlu0 %v8271_v29, %s7734_s29  ;;  %1954 = vmatprep.subr.bf16.mxu0 %v1926_v59 }
 0x16a   : >> { %2666 = vrot.lane.b32.xlu1 %v8276_v30, %s7734_s29  ;;  %1955 = vmatpush1.bf16.msra.mxu0 %v1925_v3 }
 0x16b   : >> { %v1913_v5 = vpop.permute.xlu0 %1912  ;;  %6945 = vmatprep.subr.bf16.mxu1 %v7716_v2 }
 0x16c   : >> { %v1915_v60 = vpop.permute.xlu1 %1914 }
 0x16d   : >> { %2668 = vrot.lane.b32.xlu0 %v8282_v33, %s7734_s29  ;;  %v1928_v4 = vsel %vm1922_vm13, %v1913_v5, %v1915_v60  ;;  %6946 = vmatpush3.bf16.msra.mxu1 %v1915_v60 }
 0x16e   : >> { %2664 = vrot.lane.b32.xlu1 %v8288_v36, %s7734_s29  ;;  %1956 = vmatprep.subr.bf16.mxu0 %v1928_v4 }
 0x16f   : >> { %v1911_v6 = vpop.permute.xlu0 %1910  ;;  %6947 = vmatprep.subr.bf16.mxu1 %v7716_v2 }
 0x170   : >> { %v1927_v61 = vsel %vm1922_vm13, %v1911_v6, %v1913_v5  ;;  %v1919_v7 = vpop.permute.xlu1 %1918 }
 0x171   : >> { %2672 = vrot.lane.b32.xlu0 %v8295_v40, %s7734_s29  ;;  %1957 = vmatpush1.bf16.msra.mxu0 %v1927_v61 }
 0x172   : >> { %2674 = vrot.lane.b32.xlu1 %v8300_v41, %s7734_s29 }
 0x173   : >> { %v1921_v62 = vpop.permute.xlu0 %1920 }
 0x174   : >> { %v1930_v63 = vsel %vm1922_vm13, %v1919_v7, %v1921_v62  ;;  %v1950_v8 = vand.u32 %v1921_v62, %v7967_v35  ;;  %v1917_v11 = vpop.permute.xlu1 %1916  ;;  %v557_v44 = vpop.f32.mrb[0].mxu1 }
 0x175   : >> { %v1929_v17 = vsel %vm1922_vm13, %v1917_v11, %v1919_v7  ;;  %2670 = vrot.lane.b32.xlu0 %v8308_v47, %s7734_s29  ;;  %v1947_v9 = vand.u32 %v1930_v63, %v7967_v35  ;;  %v6831_v46 = vpop.f32.mrb[1].mxu1  ;;  %vm3898_vm13 = vcmask 859136  }
 0x176   : >> { %v1944_v10 = vand.u32 %v1929_v17, %v7967_v35  ;;  %2678 = vrot.lane.b32.xlu1 %v7881_v13, %s7734_s29  ;;  %6948 = vmatpush3.bf16.msra.mxu1 %v1950_v8  ;;  %v560_v51 = vpop.f32.mrb[2].mxu1 }
 0x177   : >> { %v2053_v19 = vpop.permute.xlu0 %2052  ;;  %1958 = vmatprep.subr.bf16.mxu0 %v1947_v9  ;;  %6953 = vmatprep.subr.bf16.mxu1 %v7716_v2  ;;  %v6832_v55 = vpop.f32.mrb[3].mxu1 }
 0x178   : >> { %v2055_v20 = vpop.permute.xlu1 %2054  ;;  %1959 = vmatpush1.bf16.msra.mxu0 %v1944_v10 }
 0x179   : >> { %2680 = vrot.lane.b32.xlu0 %v8368_v12, %s7734_s29  ;;  %6950 = vmatmul.mubr.msk.bf16.vlgmr.msra.gmra.mrb[40].mxu1 %vm463_vm4, %v7564_v18  ;;  %v2076_v21 = vsel %vm2074_vm14, %v2053_v19, %v2055_v20 }
 0x17a   : >> { %2676 = vrot.lane.b32.xlu1 %v7891_v16, %s7734_s29  ;;  %2104 = vmatprep.subr.bf16.mxu0 %v2076_v21  ;;  %s7746_s29 = smov (%p343_p5), 124  }
 0x17b   : >> { %6954 = vmatpush3.bf16.msra.mxu1 %v2055_v20  ;;  %v2051_v22 = vpop.permute.xlu0 %2050  ;;  %6286 = vmatmul.mubr.msk.bf16.vlgmr.msra.gmra.mrb[0].mxu0 %vm463_vm4, %v7564_v18 }
 0x17c   : >> { %v2075_v25 = vsel %vm2074_vm14, %v2051_v22, %v2053_v19  ;;  %v2059_v26 = vpop.permute.xlu1 %2058  ;;  %6955 = vmatprep.subr.bf16.mxu1 %v7716_v2  ;;  %6961 = vmatprep.mubr.msk.bf16.mxu1 %vm7718_vm0, %v7716_v2 }
 0x17d   : >> { %2812 = vrot.lane.b32.xlu0 %v8258_v23, %s7735_s12  ;;  %2105 = vmatpush1.bf16.msra.mxu0 %v2075_v25 }
 0x17e   : >> { %2814 = vrot.lane.b32.xlu1 %v8263_v24, %s7735_s12  ;;  %2136 = vmatprep.mubr.bf16.mxu0 %v7719_v14 }
 0x17f   : >> { %v2061_v27 = vpop.permute.xlu0 %2060 }
 0x180   : >> { %v2057_v28 = vpop.permute.xlu1 %2056  ;;  %6956 = vmatpush3.bf16.msra.mxu1 %v2061_v27  ;;  %v2078_v31 = vsel %vm2074_vm14, %v2059_v26, %v2061_v27 }
 0x181   : >> { %v2077_v32 = vsel %vm2074_vm14, %v2057_v28, %v2059_v26  ;;  %2810 = vrot.lane.b32.xlu0 %v8271_v29, %s7735_s12  ;;  %2106 = vmatprep.subr.bf16.mxu0 %v2078_v31 }
 0x182   : >> { %2818 = vrot.lane.b32.xlu1 %v8276_v30, %s7735_s12  ;;  %2107 = vmatpush1.bf16.msra.mxu0 %v2077_v32 }
 0x183   : >> { %v2065_v34 = vpop.permute.xlu0 %2064  ;;  %6957 = vmatprep.subr.bf16.mxu1 %v7716_v2 }
 0x184   : >> { %v2067_v37 = vpop.permute.xlu1 %2066 }
 0x185   : >> { %2820 = vrot.lane.b32.xlu0 %v8282_v33, %s7735_s12  ;;  %v2080_v38 = vsel %vm2074_vm14, %v2065_v34, %v2067_v37  ;;  %6958 = vmatpush3.bf16.msra.mxu1 %v2067_v37  ;;  %v667_v15 = vpop.f32.mrb[4].mxu1 }
 0x186   : >> { %2816 = vrot.lane.b32.xlu1 %v8288_v36, %s7735_s12  ;;  %2108 = vmatprep.subr.bf16.mxu0 %v2080_v38  ;;  %v668_v58 = vadd.f32 %v667_v15, %v557_v44  ;;  %v6843_v59 = vpop.f32.mrb[5].mxu1 }
 0x187   : >> { %v2063_v39 = vpop.permute.xlu0 %2062  ;;  %6959 = vmatprep.subr.bf16.mxu1 %v7716_v2  ;;  %v670_v60 = vpop.f32.mrb[6].mxu1 }
 0x188   : >> { %v2079_v42 = vsel %vm2074_vm14, %v2063_v39, %v2065_v34  ;;  %v2071_v43 = vpop.permute.xlu1 %2070  ;;  %v671_v4 = vadd.f32 %v670_v60, %v560_v51  ;;  %v6844_v6 = vpop.f32.mrb[7].mxu1 }
 0x189   : >> { %2824 = vrot.lane.b32.xlu0 %v8295_v40, %s7735_s12  ;;  %2109 = vmatpush1.bf16.msra.mxu0 %v2079_v42 }
 0x18a   : >> { %2826 = vrot.lane.b32.xlu1 %v8300_v41, %s7735_s12 }
 0x18b   : >> { %v2073_v45 = vpop.permute.xlu0 %2072 }
 0x18c   : >> { %v2082_v48 = vsel %vm2074_vm14, %v2071_v43, %v2073_v45  ;;  %v2102_v49 = vand.u32 %v2073_v45, %v7967_v35  ;;  %v2069_v50 = vpop.permute.xlu1 %2068 }
 0x18d   : >> { %v2081_v52 = vsel %vm2074_vm14, %v2069_v50, %v2071_v43  ;;  %2822 = vrot.lane.b32.xlu0 %v8308_v47, %s7735_s12  ;;  %v2099_v53 = vand.u32 %v2082_v48, %v7967_v35  ;;  %v7566_v43 = vld [vmem:[%s9483_s1 + $0x60] sm:$0xff]   ;;  %vm4050_vm14 = vcmask 850944  }
 0x18e   : >> { %v2096_v56 = vand.u32 %v2081_v52, %v7967_v35  ;;  %2830 = vrot.lane.b32.xlu1 %v7881_v13, %s7735_s12  ;;  %6960 = vmatpush3.bf16.msra.mxu1 %v2102_v49 }
 0x18f   : >> { %v2205_v57 = vpop.permute.xlu0 %2204  ;;  %2110 = vmatprep.subr.bf16.mxu0 %v2099_v53  ;;  %6965 = vmatprep.subr.bf16.mxu1 %v7716_v2 }
 0x190   : >> { %v2207_v3 = vpop.permute.xlu1 %2206  ;;  %2111 = vmatpush1.bf16.msra.mxu0 %v2096_v56 }
 0x191   : >> { %2832 = vrot.lane.b32.xlu0 %v8368_v12, %s7735_s12  ;;  %6962 = vmatmul.mubr.msk.bf16.vlgmr.msra.gmra.mrb[44].mxu1 %vm463_vm4, %v7565_v54  ;;  %v2228_v5 = vsel %vm2226_vm15, %v2205_v57, %v2207_v3 }
 0x192   : >> { %2828 = vrot.lane.b32.xlu1 %v7891_v16, %s7735_s12  ;;  %2256 = vmatprep.subr.bf16.mxu0 %v2228_v5 }
 0x193   : >> { %6966 = vmatpush3.bf16.msra.mxu1 %v2207_v3  ;;  %v2203_v61 = vpop.permute.xlu0 %2202  ;;  %6291 = vmatmul.mubr.msk.bf16.vlgmr.msra.gmra.mrb[0].mxu0 %vm463_vm4, %v7565_v54 }
 0x194   : >> { %v2227_v7 = vsel %vm2226_vm15, %v2203_v61, %v2205_v57  ;;  %v2211_v62 = vpop.permute.xlu1 %2210  ;;  %6967 = vmatprep.subr.bf16.mxu1 %v7716_v2  ;;  %6973 = vmatprep.mubr.msk.bf16.mxu1 %vm7718_vm0, %v7716_v2 }
 0x195   : >> { %2964 = vrot.lane.b32.xlu0 %v8258_v23, %s7736_s15  ;;  %2257 = vmatpush1.bf16.msra.mxu0 %v2227_v7  ;;  %v813_v63 = vpop.f32.mrb[8].mxu1 }
 0x196   : >> { %2966 = vrot.lane.b32.xlu1 %v8263_v24, %s7736_s15  ;;  %2288 = vmatprep.mubr.bf16.mxu0 %v7719_v14  ;;  %v822_v8 = vadd.f32 %v813_v63, %v668_v58  ;;  %v6855_v11 = vpop.f32.mrb[9].mxu1 }
 0x197   : >> { %v2213_v17 = vpop.permute.xlu0 %2212  ;;  %v816_v9 = vpop.f32.mrb[10].mxu1 }
 0x198   : >> { %v2209_v18 = vpop.permute.xlu1 %2208  ;;  %6968 = vmatpush3.bf16.msra.mxu1 %v2213_v17  ;;  %v2230_v10 = vsel %vm2226_vm15, %v2211_v62, %v2213_v17  ;;  %v825_v19 = vadd.f32 %v816_v9, %v671_v4  ;;  %v6856_v20 = vpop.f32.mrb[11].mxu1 }
 0x199   : >> { %v2229_v21 = vsel %vm2226_vm15, %v2209_v18, %v2211_v62  ;;  %2962 = vrot.lane.b32.xlu0 %v8271_v29, %s7736_s15  ;;  %2258 = vmatprep.subr.bf16.mxu0 %v2230_v10  ;;  %v7567_v10 = vld [vmem:[%s9483_s1 + $0x68] sm:$0xff]  }
 0x19a   : >> { %2970 = vrot.lane.b32.xlu1 %v8276_v30, %s7736_s15  ;;  %2259 = vmatpush1.bf16.msra.mxu0 %v2229_v21 }
 0x19b   : >> { %v2217_v22 = vpop.permute.xlu0 %2216  ;;  %6969 = vmatprep.subr.bf16.mxu1 %v7716_v2 }
 0x19c   : >> { %v2219_v25 = vpop.permute.xlu1 %2218 }
 0x19d   : >> { %2972 = vrot.lane.b32.xlu0 %v8282_v33, %s7736_s15  ;;  %v2232_v26 = vsel %vm2226_vm15, %v2217_v22, %v2219_v25  ;;  %6970 = vmatpush3.bf16.msra.mxu1 %v2219_v25 }
 0x19e   : >> { %2968 = vrot.lane.b32.xlu1 %v8288_v36, %s7736_s15  ;;  %2260 = vmatprep.subr.bf16.mxu0 %v2232_v26 }
 0x19f   : >> { %v2215_v27 = vpop.permute.xlu0 %2214  ;;  %6971 = vmatprep.subr.bf16.mxu1 %v7716_v2 }
 0x1a0   : >> { %v2231_v28 = vsel %vm2226_vm15, %v2215_v27, %v2217_v22  ;;  %v2223_v31 = vpop.permute.xlu1 %2222 }
 0x1a1   : >> { %2976 = vrot.lane.b32.xlu0 %v8295_v40, %s7736_s15  ;;  %2261 = vmatpush1.bf16.msra.mxu0 %v2231_v28 }
 0x1a2   : >> { %2978 = vrot.lane.b32.xlu1 %v8300_v41, %s7736_s15 }
 0x1a3   : >> { %v2225_v32 = vpop.permute.xlu0 %2224 }
 0x1a4   : >> { %v2234_v34 = vsel %vm2226_vm15, %v2223_v31, %v2225_v32  ;;  %v2254_v37 = vand.u32 %v2225_v32, %v7967_v35  ;;  %v2221_v38 = vpop.permute.xlu1 %2220 }
 0x1a5   : >> { %v2233_v39 = vsel %vm2226_vm15, %v2221_v38, %v2223_v31  ;;  %2974 = vrot.lane.b32.xlu0 %v8308_v47, %s7736_s15  ;;  %v2251_v42 = vand.u32 %v2234_v34, %v7967_v35  ;;  %v965_v45 = vpop.f32.mrb[12].mxu1  ;;  %vm4233_vm15 = vcmask 523264  }
 0x1a6   : >> { %v2248_v44 = vand.u32 %v2233_v39, %v7967_v35  ;;  %2982 = vrot.lane.b32.xlu1 %v7881_v13, %s7736_s15  ;;  %6972 = vmatpush3.bf16.msra.mxu1 %v2254_v37  ;;  %v974_v48 = vadd.f32 %v965_v45, %v822_v8  ;;  %v6867_v49 = vpop.f32.mrb[13].mxu1 }
 0x1a7   : >> { %v2357_v46 = vpop.permute.xlu0 %2356  ;;  %2262 = vmatprep.subr.bf16.mxu0 %v2251_v42  ;;  %6977 = vmatprep.subr.bf16.mxu1 %v7716_v2  ;;  %v968_v51 = vpop.f32.mrb[14].mxu1 }
 0x1a8   : >> { %v2359_v50 = vpop.permute.xlu1 %2358  ;;  %2263 = vmatpush1.bf16.msra.mxu0 %v2248_v44  ;;  %v977_v53 = vadd.f32 %v968_v51, %v825_v19  ;;  %v6868_v54 = vpop.f32.mrb[15].mxu1 }
 0x1a9   : >> { %2984 = vrot.lane.b32.xlu0 %v8368_v12, %s7736_s15  ;;  %6974 = vmatmul.mubr.msk.bf16.vlgmr.msra.gmra.mrb[48].mxu1 %vm463_vm4, %v7566_v43  ;;  %v2380_v52 = vsel %vm2378_vm1, %v2357_v46, %v2359_v50 }
 0x1aa   : >> { %2980 = vrot.lane.b32.xlu1 %v7891_v16, %s7736_s15  ;;  %2408 = vmatprep.subr.bf16.mxu0 %v2380_v52  ;;  %s7752_s15 = smov (%p343_p5), 119  }
 0x1ab   : >> { %6978 = vmatpush3.bf16.msra.mxu1 %v2359_v50  ;;  %v2355_v55 = vpop.permute.xlu0 %2354  ;;  %6296 = vmatmul.mubr.msk.bf16.vlgmr.msra.gmra.mrb[0].mxu0 %vm463_vm4, %v7566_v43 }
 0x1ac   : >> { %v2379_v56 = vsel %vm2378_vm1, %v2355_v55, %v2357_v46  ;;  %v2363_v15 = vpop.permute.xlu1 %2362  ;;  %6979 = vmatprep.subr.bf16.mxu1 %v7716_v2  ;;  %6985 = vmatprep.mubr.msk.bf16.mxu1 %vm7718_vm0, %v7716_v2 }
 0x1ad   : >> { %3116 = vrot.lane.b32.xlu0 %v8258_v23, %s7737_s18  ;;  %2409 = vmatpush1.bf16.msra.mxu0 %v2379_v56 }
 0x1ae   : >> { %3118 = vrot.lane.b32.xlu1 %v8263_v24, %s7737_s18  ;;  %2440 = vmatprep.mubr.bf16.mxu0 %v7719_v14 }
 0x1af   : >> { %v2365_v57 = vpop.permute.xlu0 %2364 }
 0x1b0   : >> { %v2361_v58 = vpop.permute.xlu1 %2360  ;;  %6980 = vmatpush3.bf16.msra.mxu1 %v2365_v57  ;;  %v2382_v59 = vsel %vm2378_vm1, %v2363_v15, %v2365_v57  ;;  %v7568_v57 = vld [vmem:[%s9483_s1 + $0x70] sm:$0xff]  }
 0x1b1   : >> { %v2381_v3 = vsel %vm2378_vm1, %v2361_v58, %v2363_v15  ;;  %3114 = vrot.lane.b32.xlu0 %v8271_v29, %s7737_s18  ;;  %2410 = vmatprep.subr.bf16.mxu0 %v2382_v59 }
 0x1b2   : >> { %3122 = vrot.lane.b32.xlu1 %v8276_v30, %s7737_s18  ;;  %2411 = vmatpush1.bf16.msra.mxu0 %v2381_v3 }
 0x1b3   : >> { %v2369_v5 = vpop.permute.xlu0 %2368  ;;  %6981 = vmatprep.subr.bf16.mxu1 %v7716_v2 }
 0x1b4   : >> { %v2371_v60 = vpop.permute.xlu1 %2370 }
 0x1b5   : >> { %3124 = vrot.lane.b32.xlu0 %v8282_v33, %s7737_s18  ;;  %v2384_v4 = vsel %vm2378_vm1, %v2369_v5, %v2371_v60  ;;  %6982 = vmatpush3.bf16.msra.mxu1 %v2371_v60 }
 0x1b6   : >> { %3120 = vrot.lane.b32.xlu1 %v8288_v36, %s7737_s18  ;;  %2412 = vmatprep.subr.bf16.mxu0 %v2384_v4 }
 0x1b7   : >> { %v2367_v6 = vpop.permute.xlu0 %2366  ;;  %6983 = vmatprep.subr.bf16.mxu1 %v7716_v2 }
 0x1b8   : >> { %v2383_v61 = vsel %vm2378_vm1, %v2367_v6, %v2369_v5  ;;  %v2375_v7 = vpop.permute.xlu1 %2374 }
 0x1b9   : >> { %3128 = vrot.lane.b32.xlu0 %v8295_v40, %s7737_s18  ;;  %2413 = vmatpush1.bf16.msra.mxu0 %v2383_v61 }
 0x1ba   : >> { %3130 = vrot.lane.b32.xlu1 %v8300_v41, %s7737_s18 }
 0x1bb   : >> { %v2377_v62 = vpop.permute.xlu0 %2376 }
 0x1bc   : >> { %v2386_v63 = vsel %vm2378_vm1, %v2375_v7, %v2377_v62  ;;  %v2406_v8 = vand.u32 %v2377_v62, %v7967_v35  ;;  %v2373_v11 = vpop.permute.xlu1 %2372  ;;  %v1117_v17 = vpop.f32.mrb[16].mxu1 }
 0x1bd   : >> { %v2385_v9 = vsel %vm2378_vm1, %v2373_v11, %v2375_v7  ;;  %3126 = vrot.lane.b32.xlu0 %v8308_v47, %s7737_s18  ;;  %v2403_v18 = vand.u32 %v2386_v63, %v7967_v35  ;;  %v8601_v19 = vadd.f32 %v1117_v17, %v974_v48  ;;  %v6879_v20 = vpop.f32.mrb[17].mxu1 }
 0x1be   : >> { %v2400_v21 = vand.u32 %v2385_v9, %v7967_v35  ;;  %3134 = vrot.lane.b32.xlu1 %v7881_v13, %s7737_s18  ;;  %6984 = vmatpush3.bf16.msra.mxu1 %v2406_v8  ;;  %v1120_v22 = vpop.f32.mrb[18].mxu1 }
 0x1bf   : >> { %v2509_v25 = vpop.permute.xlu0 %2508  ;;  %2414 = vmatprep.subr.bf16.mxu0 %v2403_v18  ;;  %6989 = vmatprep.subr.bf16.mxu1 %v7716_v2  ;;  %v8607_v26 = vadd.f32 %v1120_v22, %v977_v53  ;;  %v6880_v27 = vpop.f32.mrb[19].mxu1 }
 0x1c0   : >> { %v2511_v28 = vpop.permute.xlu1 %2510  ;;  %2415 = vmatpush1.bf16.msra.mxu0 %v2400_v21 }
 0x1c1   : >> { %3136 = vrot.lane.b32.xlu0 %v8368_v12, %s7737_s18  ;;  %6986 = vmatmul.mubr.msk.bf16.vlgmr.msra.gmra.mrb[52].mxu1 %vm463_vm4, %v7567_v10  ;;  %v2532_v31 = vsel %vm2530_vm2, %v2509_v25, %v2511_v28 }
 0x1c2   : >> { %3132 = vrot.lane.b32.xlu1 %v7891_v16, %s7737_s18  ;;  %2560 = vmatprep.subr.bf16.mxu0 %v2532_v31 }
 0x1c3   : >> { %6990 = vmatpush3.bf16.msra.mxu1 %v2511_v28  ;;  %v2507_v32 = vpop.permute.xlu0 %2506  ;;  %6301 = vmatmul.mubr.msk.bf16.vlgmr.msra.gmra.mrb[0].mxu0 %vm463_vm4, %v7567_v10 }
 0x1c4   : >> { %v2531_v34 = vsel %vm2530_vm2, %v2507_v32, %v2509_v25  ;;  %v2515_v37 = vpop.permute.xlu1 %2514  ;;  %6991 = vmatprep.subr.bf16.mxu1 %v7716_v2  ;;  %6997 = vmatprep.mubr.msk.bf16.mxu1 %vm7718_vm0, %v7716_v2 }
 0x1c5   : >> { %3268 = vrot.lane.b32.xlu0 %v8258_v23, %s7738_s22  ;;  %2561 = vmatpush1.bf16.msra.mxu0 %v2531_v34 }
 0x1c6   : >> { %3270 = vrot.lane.b32.xlu1 %v8263_v24, %s7738_s22  ;;  %2592 = vmatprep.mubr.bf16.mxu0 %v7719_v14 }
 0x1c7   : >> { %v2517_v38 = vpop.permute.xlu0 %2516 }
 0x1c8   : >> { %v2513_v39 = vpop.permute.xlu1 %2512  ;;  %6992 = vmatpush3.bf16.msra.mxu1 %v2517_v38  ;;  %v2534_v42 = vsel %vm2530_vm2, %v2515_v37, %v2517_v38 }
 0x1c9   : >> { %v2533_v43 = vsel %vm2530_vm2, %v2513_v39, %v2515_v37  ;;  %3266 = vrot.lane.b32.xlu0 %v8271_v29, %s7738_s22  ;;  %2562 = vmatprep.subr.bf16.mxu0 %v2534_v42 }
 0x1ca   : >> { %3274 = vrot.lane.b32.xlu1 %v8276_v30, %s7738_s22  ;;  %2563 = vmatpush1.bf16.msra.mxu0 %v2533_v43 }
 0x1cb   : >> { %v2521_v44 = vpop.permute.xlu0 %2520  ;;  %6993 = vmatprep.subr.bf16.mxu1 %v7716_v2 }
 0x1cc   : >> { %v2523_v45 = vpop.permute.xlu1 %2522 }
 0x1cd   : >> { %3276 = vrot.lane.b32.xlu0 %v8282_v33, %s7738_s22  ;;  %v2536_v46 = vsel %vm2530_vm2, %v2521_v44, %v2523_v45  ;;  %6994 = vmatpush3.bf16.msra.mxu1 %v2523_v45  ;;  %v8732_v45 = vld [vmem:[%s7841_s26 + $0x8] ss:$12 sps:$4 sm:$0xff]  }
 0x1ce   : >> { %3272 = vrot.lane.b32.xlu1 %v8288_v36, %s7738_s22  ;;  %2564 = vmatprep.subr.bf16.mxu0 %v2536_v46 }
 0x1cf   : >> { %v2519_v48 = vpop.permute.xlu0 %2518  ;;  %6995 = vmatprep.subr.bf16.mxu1 %v7716_v2 }
 0x1d0   : >> { %v2535_v49 = vsel %vm2530_vm2, %v2519_v48, %v2521_v44  ;;  %v2527_v50 = vpop.permute.xlu1 %2526  ;;  %v8727_v44 = vld [vmem:[%s7841_s26 + $0x4] ss:$12 sps:$4 sm:$0xff]  }
 0x1d1   : >> { %3280 = vrot.lane.b32.xlu0 %v8295_v40, %s7738_s22  ;;  %2565 = vmatpush1.bf16.msra.mxu0 %v2535_v49 }
 0x1d2   : >> { %3282 = vrot.lane.b32.xlu1 %v8300_v41, %s7738_s22 }
 0x1d3   : >> { %v2529_v51 = vpop.permute.xlu0 %2528 }
 0x1d4   : >> { %v2538_v52 = vsel %vm2530_vm2, %v2527_v50, %v2529_v51  ;;  %v2558_v53 = vand.u32 %v2529_v51, %v7967_v35  ;;  %v2525_v54 = vpop.permute.xlu1 %2524  ;;  %v1269_v55 = vpop.f32.mrb[20].mxu1  ;;  %v8740_v51 = vld [vmem:[%s7841_s26] ss:$12 sps:$4 sm:$0xff]  }
 0x1d5   : >> { %v2537_v56 = vsel %vm2530_vm2, %v2525_v54, %v2527_v50  ;;  %3278 = vrot.lane.b32.xlu0 %v8308_v47, %s7738_s22  ;;  %v2555_v15 = vand.u32 %v2538_v52, %v7967_v35  ;;  %v8653_v58 = vadd.f32 %v1269_v55, %v8601_v19  ;;  %v6891_v59 = vpop.f32.mrb[21].mxu1  ;;  %v8745_v52 = vld [vmem:[%s7841_s26 + $0x1c] ss:$12 sps:$4 sm:$0xff]   ;;  %v8751_v55 = vld [vmem:[%s7841_s26 + $0x20] ss:$12 sps:$4 sm:$0xff]  }
 0x1d6   : >> { %v2552_v3 = vand.u32 %v2537_v56, %v7967_v35  ;;  %3286 = vrot.lane.b32.xlu1 %v7881_v13, %s7738_s22  ;;  %6996 = vmatpush3.bf16.msra.mxu1 %v2558_v53  ;;  %v1272_v5 = vpop.f32.mrb[22].mxu1 }
 0x1d7   : >> { %v2661_v60 = vpop.permute.xlu0 %2660  ;;  %2566 = vmatprep.subr.bf16.mxu0 %v2555_v15  ;;  %7001 = vmatprep.subr.bf16.mxu1 %v7716_v2  ;;  %v8660_v4 = vadd.f32 %v1272_v5, %v8607_v26  ;;  %v6892_v6 = vpop.f32.mrb[23].mxu1  ;;  %v8757_v15 = vld [vmem:[%s7841_s26 + $0x18] ss:$12 sps:$4 sm:$0xff]  }
 0x1d8   : >> { %v2663_v61 = vpop.permute.xlu1 %2662  ;;  %2567 = vmatpush1.bf16.msra.mxu0 %v2552_v3  ;;  %v8764_v3 = vld [vmem:[%s7841_s26 + $0x34] ss:$12 sps:$4 sm:$0xff]   ;;  %v8769_v5 = vld [vmem:[%s7841_s26 + $0x38] ss:$12 sps:$4 sm:$0xff]  }
 0x1d9   : >> { %3288 = vrot.lane.b32.xlu0 %v8368_v12, %s7738_s22  ;;  %6998 = vmatmul.mubr.msk.bf16.vlgmr.msra.gmra.mrb[56].mxu1 %vm463_vm4, %v7568_v57  ;;  %v2684_v7 = vsel %vm2682_vm5, %v2661_v60, %v2663_v61 }
 0x1da   : >> { %3284 = vrot.lane.b32.xlu1 %v7891_v16, %s7738_s22  ;;  %2712 = vmatprep.subr.bf16.mxu0 %v2684_v7  ;;  %s7744_s22 = smov (%p343_p5), 126  }
 0x1db   : >> { %7002 = vmatpush3.bf16.msra.mxu1 %v2663_v61  ;;  %v2659_v62 = vpop.permute.xlu0 %2658  ;;  %6306 = vmatmul.mubr.msk.bf16.vlgmr.msra.gmra.mrb[0].mxu0 %vm463_vm4, %v7568_v57 }
 0x1dc   : >> { %v2683_v63 = vsel %vm2682_vm5, %v2659_v62, %v2661_v60  ;;  %v2667_v8 = vpop.permute.xlu1 %2666  ;;  %7003 = vmatprep.subr.bf16.mxu1 %v7716_v2  ;;  %7009 = vmatprep.mubr.msk.bf16.mxu1 %vm7718_vm0, %v7716_v2 }
 0x1dd   : >> { %3420 = vrot.lane.b32.xlu0 %v8258_v23, %s7739_s28  ;;  %2713 = vmatpush1.bf16.msra.mxu0 %v2683_v63  ;;  %v8777_v63 = vld [vmem:[%s7841_s26 + $0x30] ss:$12 sps:$4 sm:$0xff]  }
 0x1de   : >> { %3422 = vrot.lane.b32.xlu1 %v8263_v24, %s7739_s28  ;;  %2744 = vmatprep.mubr.bf16.mxu0 %v7719_v14 }
 0x1df   : >> { %v2669_v11 = vpop.permute.xlu0 %2668 }
 0x1e0   : >> { %v2665_v17 = vpop.permute.xlu1 %2664  ;;  %7004 = vmatpush3.bf16.msra.mxu1 %v2669_v11  ;;  %v2686_v9 = vsel %vm2682_vm5, %v2667_v8, %v2669_v11  ;;  %v7570_v11 = vld [vmem:[%s9483_s1 + $0x80] sm:$0xff]  }
 0x1e1   : >> { %v2685_v18 = vsel %vm2682_vm5, %v2665_v17, %v2667_v8  ;;  %3418 = vrot.lane.b32.xlu0 %v8271_v29, %s7739_s28  ;;  %2714 = vmatprep.subr.bf16.mxu0 %v2686_v9 }
 0x1e2   : >> { %3426 = vrot.lane.b32.xlu1 %v8276_v30, %s7739_s28  ;;  %2715 = vmatpush1.bf16.msra.mxu0 %v2685_v18 }
 0x1e3   : >> { %v2673_v23 = vpop.permute.xlu0 %2672  ;;  %7005 = vmatprep.subr.bf16.mxu1 %v7716_v2 }
 0x1e4   : >> { %v2675_v24 = vpop.permute.xlu1 %2674 }
 0x1e5   : >> { %3428 = vrot.lane.b32.xlu0 %v8282_v33, %s7739_s28  ;;  %v2688_v10 = vsel %vm2682_vm5, %v2673_v23, %v2675_v24  ;;  %7006 = vmatpush3.bf16.msra.mxu1 %v2675_v24 }
 0x1e6   : >> { %3424 = vrot.lane.b32.xlu1 %v8288_v36, %s7739_s28  ;;  %2716 = vmatprep.subr.bf16.mxu0 %v2688_v10 }
 0x1e7   : >> { %v2671_v29 = vpop.permute.xlu0 %2670  ;;  %7007 = vmatprep.subr.bf16.mxu1 %v7716_v2 }
 0x1e8   : >> { %v2687_v30 = vsel %vm2682_vm5, %v2671_v29, %v2673_v23  ;;  %v2679_v19 = vpop.permute.xlu1 %2678 }
 0x1e9   : >> { %3432 = vrot.lane.b32.xlu0 %v8295_v40, %s7739_s28  ;;  %2717 = vmatpush1.bf16.msra.mxu0 %v2687_v30  ;;  %v7569_v40 = vld [vmem:[%s9483_s1 + $0x78] sm:$0xff]  }
 0x1ea   : >> { %3434 = vrot.lane.b32.xlu1 %v8300_v41, %s7739_s28 }
 0x1eb   : >> { %v2681_v33 = vpop.permute.xlu0 %2680 }
 0x1ec   : >> { %v2690_v20 = vsel %vm2682_vm5, %v2679_v19, %v2681_v33  ;;  %v2710_v21 = vand.u32 %v2681_v33, %v7967_v35  ;;  %v2677_v36 = vpop.permute.xlu1 %2676  ;;  %v1421_v22 = vpop.f32.mrb[24].mxu1 }
 0x1ed   : >> { %v2689_v25 = vsel %vm2682_vm5, %v2677_v36, %v2679_v19  ;;  %3430 = vrot.lane.b32.xlu0 %v8308_v47, %s7739_s28  ;;  %v2707_v26 = vand.u32 %v2690_v20, %v7967_v35  ;;  %v8706_v41 = vadd.f32 %v1421_v22, %v8653_v58  ;;  %v6903_v27 = vpop.f32.mrb[25].mxu1 }
 0x1ee   : >> { %v2704_v28 = vand.u32 %v2689_v25, %v7967_v35  ;;  %3438 = vrot.lane.b32.xlu1 %v7881_v13, %s7739_s28  ;;  %7008 = vmatpush3.bf16.msra.mxu1 %v2710_v21  ;;  %v1424_v31 = vpop.f32.mrb[26].mxu1 }
 0x1ef   : >> { %v2813_v32 = vpop.permute.xlu0 %2812  ;;  %2718 = vmatprep.subr.bf16.mxu0 %v2707_v26  ;;  %7013 = vmatprep.subr.bf16.mxu1 %v7716_v2  ;;  %v8713_v47 = vadd.f32 %v1424_v31, %v8660_v4  ;;  %v6904_v34 = vpop.f32.mrb[27].mxu1 }
 0x1f0   : >> { %v2815_v37 = vpop.permute.xlu1 %2814  ;;  %2719 = vmatpush1.bf16.msra.mxu0 %v2704_v28 }
 0x1f1   : >> { %3440 = vrot.lane.b32.xlu0 %v8368_v12, %s7739_s28  ;;  %7010 = vmatmul.mubr.msk.bf16.vlgmr.msra.gmra.mrb[60].mxu1 %vm463_vm4, %v7569_v40  ;;  %v2836_v38 = vsel %vm2834_vm6, %v2813_v32, %v2815_v37 }
 0x1f2   : >> { %3436 = vrot.lane.b32.xlu1 %v7891_v16, %s7739_s28  ;;  %2864 = vmatprep.subr.bf16.mxu0 %v2836_v38  ;;  %s7745_s28 = smov (%p343_p5), 125  }
 0x1f3   : >> { %7014 = vmatpush3.bf16.msra.mxu1 %v2815_v37  ;;  %v2811_v39 = vpop.permute.xlu0 %2810  ;;  %6311 = vmatmul.mubr.msk.bf16.vlgmr.msra.gmra.mrb[0].mxu0 %vm463_vm4, %v7569_v40 }
 0x1f4   : >> { %v2835_v42 = vsel %vm2834_vm6, %v2811_v39, %v2813_v32  ;;  %v2819_v43 = vpop.permute.xlu1 %2818  ;;  %7015 = vmatprep.subr.bf16.mxu1 %v7716_v2  ;;  %7021 = vmatprep.mubr.msk.bf16.mxu1 %vm7718_vm0, %v7716_v2 }
 0x1f5   : >> { %3572 = vrot.lane.b32.xlu0 %v8727_v44, %s7740_s11  ;;  %2865 = vmatpush1.bf16.msra.mxu0 %v2835_v42 }
 0x1f6   : >> { %3574 = vrot.lane.b32.xlu1 %v8732_v45, %s7740_s11  ;;  %2896 = vmatprep.mubr.bf16.mxu0 %v7719_v14 }
 0x1f7   : >> { %v2821_v46 = vpop.permute.xlu0 %2820 }
 0x1f8   : >> { %v2817_v48 = vpop.permute.xlu1 %2816  ;;  %7016 = vmatpush3.bf16.msra.mxu1 %v2821_v46  ;;  %v2838_v49 = vsel %vm2834_vm6, %v2819_v43, %v2821_v46 }
 0x1f9   : >> { %v2837_v50 = vsel %vm2834_vm6, %v2817_v48, %v2819_v43  ;;  %3570 = vrot.lane.b32.xlu0 %v8740_v51, %s7740_s11  ;;  %2866 = vmatprep.subr.bf16.mxu0 %v2838_v49  ;;  %v7571_v43 = vld [vmem:[%s9483_s1 + $0x88] sm:$0xff]  }
 0x1fa   : >> { %3578 = vrot.lane.b32.xlu1 %v8745_v52, %s7740_s11  ;;  %2867 = vmatpush1.bf16.msra.mxu0 %v2837_v50 }
 0x1fb   : >> { %v2825_v53 = vpop.permute.xlu0 %2824  ;;  %7017 = vmatprep.subr.bf16.mxu1 %v7716_v2 }
 0x1fc   : >> { %v2827_v54 = vpop.permute.xlu1 %2826 }
 0x1fd   : >> { %3580 = vrot.lane.b32.xlu0 %v8751_v55, %s7740_s11  ;;  %v2840_v56 = vsel %vm2834_vm6, %v2825_v53, %v2827_v54  ;;  %7018 = vmatpush3.bf16.msra.mxu1 %v2827_v54 }
 0x1fe   : >> { %3576 = vrot.lane.b32.xlu1 %v8757_v15, %s7740_s11  ;;  %2868 = vmatprep.subr.bf16.mxu0 %v2840_v56 }
 0x1ff   : >> { %v2823_v57 = vpop.permute.xlu0 %2822  ;;  %7019 = vmatprep.subr.bf16.mxu1 %v7716_v2 }
 0x200   : >> { %v2839_v58 = vsel %vm2834_vm6, %v2823_v57, %v2825_v53  ;;  %v2831_v59 = vpop.permute.xlu1 %2830 }
 0x201   : >> { %3584 = vrot.lane.b32.xlu0 %v8764_v3, %s7740_s11  ;;  %2869 = vmatpush1.bf16.msra.mxu0 %v2839_v58  ;;  %v8847_v58 = vld [vmem:[%s7841_s26 + $0x50] ss:$0 sps:$4 sm:$0xff]   ;;  %s7742_s26 = smov 105  }
 0x202   : >> { %3586 = vrot.lane.b32.xlu1 %v8769_v5, %s7740_s11 }
 0x203   : >> { %v2833_v60 = vpop.permute.xlu0 %2832 }
 0x204   : >> { %v2842_v4 = vsel %vm2834_vm6, %v2831_v59, %v2833_v60  ;;  %v2862_v6 = vand.u32 %v2833_v60, %v7967_v35  ;;  %v2829_v61 = vpop.permute.xlu1 %2828  ;;  %v1573_v7 = vpop.f32.mrb[28].mxu1 }
 0x205   : >> { %v2841_v62 = vsel %vm2834_vm6, %v2829_v61, %v2831_v59  ;;  %3582 = vrot.lane.b32.xlu0 %v8777_v63, %s7740_s11  ;;  %v2859_v8 = vand.u32 %v2842_v4, %v7967_v35  ;;  %v8786_v17 = vadd.f32 %v1573_v7, %v8706_v41  ;;  %v6915_v9 = vpop.f32.mrb[29].mxu1 }
 0x206   : >> { %v2856_v18 = vand.u32 %v2841_v62, %v7967_v35  ;;  %3590 = vrot.lane.b32.xlu1 %v7881_v13, %s7740_s11  ;;  %7020 = vmatpush3.bf16.msra.mxu1 %v2862_v6  ;;  %v1576_v23 = vpop.f32.mrb[30].mxu1 }
 0x207   : >> { %v2965_v24 = vpop.permute.xlu0 %2964  ;;  %2870 = vmatprep.subr.bf16.mxu0 %v2859_v8  ;;  %7025 = vmatprep.subr.bf16.mxu1 %v7716_v2  ;;  %v8793_v10 = vadd.f32 %v1576_v23, %v8713_v47  ;;  %v6916_v29 = vpop.f32.mrb[31].mxu1 }
 0x208   : >> { %v2967_v30 = vpop.permute.xlu1 %2966  ;;  %2871 = vmatpush1.bf16.msra.mxu0 %v2856_v18 }
 0x209   : >> { %3592 = vrot.lane.b32.xlu0 %v8368_v12, %s7740_s11  ;;  %7022 = vmatmul.mubr.msk.bf16.vlgmr.msra.gmra.mrb[64].mxu1 %vm463_vm4, %v7570_v11  ;;  %v2988_v19 = vsel %vm2986_vm7, %v2965_v24, %v2967_v30 }
 0x20a   : >> { %3588 = vrot.lane.b32.xlu1 %v7891_v16, %s7740_s11  ;;  %3016 = vmatprep.subr.bf16.mxu0 %v2988_v19  ;;  %s7750_s11 = smov (%p343_p5), 127  }
 0x20b   : >> { %7026 = vmatpush3.bf16.msra.mxu1 %v2967_v30  ;;  %v2963_v33 = vpop.permute.xlu0 %2962  ;;  %6316 = vmatmul.mubr.msk.bf16.vlgmr.msra.gmra.mrb[0].mxu0 %vm463_vm4, %v7570_v11 }
 0x20c   : >> { %v2987_v20 = vsel %vm2986_vm7, %v2963_v33, %v2965_v24  ;;  %v2971_v21 = vpop.permute.xlu1 %2970  ;;  %7027 = vmatprep.subr.bf16.mxu1 %v7716_v2  ;;  %7033 = vmatprep.mubr.msk.bf16.mxu1 %vm7718_vm0, %v7716_v2 }
 0x20d   : >> { %3724 = vrot.lane.b32.xlu0 %v8727_v44, %s7741_s14  ;;  %3017 = vmatpush1.bf16.msra.mxu0 %v2987_v20 }
 0x20e   : >> { %3726 = vrot.lane.b32.xlu1 %v8732_v45, %s7741_s14  ;;  %3048 = vmatprep.mubr.bf16.mxu0 %v7719_v14 }
 0x20f   : >> { %v2973_v12 = vpop.permute.xlu0 %2972 }
 0x210   : >> { %v2969_v36 = vpop.permute.xlu1 %2968  ;;  %7028 = vmatpush3.bf16.msra.mxu1 %v2973_v12  ;;  %v2990_v22 = vsel %vm2986_vm7, %v2971_v21, %v2973_v12 }
 0x211   : >> { %v2989_v25 = vsel %vm2986_vm7, %v2969_v36, %v2971_v21  ;;  %3722 = vrot.lane.b32.xlu0 %v8740_v51, %s7741_s14  ;;  %3018 = vmatprep.subr.bf16.mxu0 %v2990_v22  ;;  %v7572_v22 = vld [vmem:[%s9483_s1 + $0x90] sm:$0xff]  }
 0x212   : >> { %3730 = vrot.lane.b32.xlu1 %v8745_v52, %s7741_s14  ;;  %3019 = vmatpush1.bf16.msra.mxu0 %v2989_v25 }
 0x213   : >> { %v2977_v26 = vpop.permute.xlu0 %2976  ;;  %7029 = vmatprep.subr.bf16.mxu1 %v7716_v2 }
 0x214   : >> { %v2979_v40 = vpop.permute.xlu1 %2978 }
 0x215   : >> { %3732 = vrot.lane.b32.xlu0 %v8751_v55, %s7741_s14  ;;  %v2992_v41 = vsel %vm2986_vm7, %v2977_v26, %v2979_v40  ;;  %7030 = vmatpush3.bf16.msra.mxu1 %v2979_v40 }
 0x216   : >> { %3728 = vrot.lane.b32.xlu1 %v8757_v15, %s7741_s14  ;;  %3020 = vmatprep.subr.bf16.mxu0 %v2992_v41 }
 0x217   : >> { %v2975_v27 = vpop.permute.xlu0 %2974  ;;  %7031 = vmatprep.subr.bf16.mxu1 %v7716_v2 }
 0x218   : >> { %v2991_v28 = vsel %vm2986_vm7, %v2975_v27, %v2977_v26  ;;  %v2983_v31 = vpop.permute.xlu1 %2982 }
 0x219   : >> { %3736 = vrot.lane.b32.xlu0 %v8764_v3, %s7741_s14  ;;  %3021 = vmatpush1.bf16.msra.mxu0 %v2991_v28 }
 0x21a   : >> { %3738 = vrot.lane.b32.xlu1 %v8769_v5, %s7741_s14 }
 0x21b   : >> { %v2985_v32 = vpop.permute.xlu0 %2984 }
 0x21c   : >> { %v2994_v47 = vsel %vm2986_vm7, %v2983_v31, %v2985_v32  ;;  %v3014_v34 = vand.u32 %v2985_v32, %v7967_v35  ;;  %v2981_v37 = vpop.permute.xlu1 %2980  ;;  %v1725_v38 = vpop.f32.mrb[32].mxu1 }
 0x21d   : >> { %v3011_v39 = vand.u32 %v2994_v47, %v7967_v35  ;;  %v2993_v42 = vsel %vm2986_vm7, %v2981_v37, %v2983_v31  ;;  %3734 = vrot.lane.b32.xlu0 %v8777_v63, %s7741_s14  ;;  %v8839_v46 = vadd.f32 %v1725_v38, %v8786_v17  ;;  %v6927_v48 = vpop.f32.mrb[33].mxu1 }
 0x21e   : >> { %v3008_v49 = vand.u32 %v2993_v42, %v7967_v35  ;;  %3742 = vrot.lane.b32.xlu1 %v7881_v13, %s7741_s14  ;;  %7032 = vmatpush3.bf16.msra.mxu1 %v3014_v34  ;;  %v1728_v50 = vpop.f32.mrb[34].mxu1 }
 0x21f   : >> { %v3117_v53 = vpop.permute.xlu0 %3116  ;;  %3022 = vmatprep.subr.bf16.mxu0 %v3011_v39  ;;  %7037 = vmatprep.subr.bf16.mxu1 %v7716_v2  ;;  %v1737_v54 = vadd.f32 %v1728_v50, %v8793_v10  ;;  %v6928_v56 = vpop.f32.mrb[35].mxu1 }
 0x220   : >> { %v3119_v57 = vpop.permute.xlu1 %3118  ;;  %3023 = vmatpush1.bf16.msra.mxu0 %v3008_v49 }
 0x221   : >> { %3744 = vrot.lane.b32.xlu0 %v8847_v58, %s7741_s14  ;;  %7034 = vmatmul.mubr.msk.bf16.vlgmr.msra.gmra.mrb[68].mxu1 %vm463_vm4, %v7571_v43  ;;  %v3140_v59 = vsel %vm3138_vm8, %v3117_v53, %v3119_v57 }
 0x222   : >> { %3740 = vrot.lane.b32.xlu1 %v7891_v16, %s7741_s14  ;;  %3168 = vmatprep.subr.bf16.mxu0 %v3140_v59  ;;  %s7751_s14 = smov (%p343_p5), 120  }
 0x223   : >> { %7038 = vmatpush3.bf16.msra.mxu1 %v3119_v57  ;;  %v3115_v60 = vpop.permute.xlu0 %3114  ;;  %6321 = vmatmul.mubr.msk.bf16.vlgmr.msra.gmra.mrb[0].mxu0 %vm463_vm4, %v7571_v43 }
 0x224   : >> { %v3139_v4 = vsel %vm3138_vm8, %v3115_v60, %v3117_v53  ;;  %v3123_v6 = vpop.permute.xlu1 %3122  ;;  %7039 = vmatprep.subr.bf16.mxu1 %v7716_v2  ;;  %7045 = vmatprep.mubr.msk.bf16.mxu1 %vm7718_vm0, %v7716_v2 }
 0x225   : >> { %3876 = vrot.lane.b32.xlu0 %v8727_v44, %s7742_s26  ;;  %3169 = vmatpush1.bf16.msra.mxu0 %v3139_v4 }
 0x226   : >> { %3878 = vrot.lane.b32.xlu1 %v8732_v45, %s7742_s26  ;;  %3200 = vmatprep.mubr.bf16.mxu0 %v7719_v14 }
 0x227   : >> { %v3125_v61 = vpop.permute.xlu0 %3124 }
 0x228   : >> { %v3121_v7 = vpop.permute.xlu1 %3120  ;;  %7040 = vmatpush3.bf16.msra.mxu1 %v3125_v61  ;;  %v3142_v62 = vsel %vm3138_vm8, %v3123_v6, %v3125_v61 }
 0x229   : >> { %v3141_v8 = vsel %vm3138_vm8, %v3121_v7, %v3123_v6  ;;  %3874 = vrot.lane.b32.xlu0 %v8740_v51, %s7742_s26  ;;  %3170 = vmatprep.subr.bf16.mxu0 %v3142_v62 }
 0x22a   : >> { %3882 = vrot.lane.b32.xlu1 %v8745_v52, %s7742_s26  ;;  %3171 = vmatpush1.bf16.msra.mxu0 %v3141_v8 }
 0x22b   : >> { %v3129_v11 = vpop.permute.xlu0 %3128  ;;  %7041 = vmatprep.subr.bf16.mxu1 %v7716_v2 }
 0x22c   : >> { %v3131_v17 = vpop.permute.xlu1 %3130 }
 0x22d   : >> { %3884 = vrot.lane.b32.xlu0 %v8751_v55, %s7742_s26  ;;  %v3144_v9 = vsel %vm3138_vm8, %v3129_v11, %v3131_v17  ;;  %7042 = vmatpush3.bf16.msra.mxu1 %v3131_v17 }
 0x22e   : >> { %3880 = vrot.lane.b32.xlu1 %v8757_v15, %s7742_s26  ;;  %3172 = vmatprep.subr.bf16.mxu0 %v3144_v9 }
 0x22f   : >> { %v3127_v18 = vpop.permute.xlu0 %3126  ;;  %7043 = vmatprep.subr.bf16.mxu1 %v7716_v2 }
 0x230   : >> { %v3143_v23 = vsel %vm3138_vm8, %v3127_v18, %v3129_v11  ;;  %v3135_v24 = vpop.permute.xlu1 %3134 }
 0x231   : >> { %3888 = vrot.lane.b32.xlu0 %v8764_v3, %s7742_s26  ;;  %3173 = vmatpush1.bf16.msra.mxu0 %v3143_v23 }
 0x232   : >> { %3890 = vrot.lane.b32.xlu1 %v8769_v5, %s7742_s26 }
 0x233   : >> { %v3137_v10 = vpop.permute.xlu0 %3136 }
 0x234   : >> { %v3146_v29 = vsel %vm3138_vm8, %v3135_v24, %v3137_v10  ;;  %v3166_v30 = vand.u32 %v3137_v10, %v7967_v35  ;;  %v3133_v19 = vpop.permute.xlu1 %3132  ;;  %v1877_v33 = vpop.f32.mrb[36].mxu1 }
 0x235   : >> { %v3163_v20 = vand.u32 %v3146_v29, %v7967_v35  ;;  %v3145_v21 = vsel %vm3138_vm8, %v3133_v19, %v3135_v24  ;;  %v8888_v12 = vadd.f32 %v1877_v33, %v8839_v46  ;;  %3886 = vrot.lane.b32.xlu0 %v8777_v63, %s7742_s26  ;;  %v6939_v36 = vpop.f32.mrb[37].mxu1 }
 0x236   : >> { %v3160_v25 = vand.u32 %v3145_v21, %v7967_v35  ;;  %3894 = vrot.lane.b32.xlu1 %v7881_v13, %s7742_s26  ;;  %v1880_v26 = vpop.f32.mrb[38].mxu1  ;;  %7044 = vmatpush3.bf16.msra.mxu1 %v3166_v30 }
 0x237   : >> { %v8898_v40 = vadd.f32 %v1880_v26, %v1737_v54  ;;  %v3269_v41 = vpop.permute.xlu0 %3268  ;;  %3174 = vmatprep.subr.bf16.mxu0 %v3163_v20  ;;  %7049 = vmatprep.subr.bf16.mxu1 %v7716_v2  ;;  %v6940_v27 = vpop.f32.mrb[39].mxu1 }
 0x238   : >> { %v3271_v28 = vpop.permute.xlu1 %3270  ;;  %3175 = vmatpush1.bf16.msra.mxu0 %v3160_v25  ;;  %v7574_v25 = vld [vmem:[%s9483_s1 + $0xa0] sm:$0xff]  }
 0x239   : >> { %3896 = vrot.lane.b32.xlu0 %v8847_v58, %s7742_s26  ;;  %7046 = vmatmul.mubr.msk.bf16.vlgmr.msra.gmra.mrb[72].mxu1 %vm463_vm4, %v7572_v22  ;;  %v3292_v31 = vsel %vm3290_vm9, %v3269_v41, %v3271_v28 }
 0x23a   : >> { %3892 = vrot.lane.b32.xlu1 %v7891_v16, %s7742_s26  ;;  %3320 = vmatprep.subr.bf16.mxu0 %v3292_v31  ;;  %s9073_s26 = sshra.s32 %s6364_s16, 4 }
 0x23b   : >> { %7050 = vmatpush3.bf16.msra.mxu1 %v3271_v28  ;;  %v3267_v32 = vpop.permute.xlu0 %3266  ;;  %6326 = vmatmul.mubr.msk.bf16.vlgmr.msra.gmra.mrb[0].mxu0 %vm463_vm4, %v7572_v22  ;;  %s6567_s17 = smul.u32 24, %s9073_s26 }
 0x23c   : >> { %v3291_v47 = vsel %vm3290_vm9, %v3267_v32, %v3269_v41  ;;  %v3275_v34 = vpop.permute.xlu1 %3274  ;;  %7051 = vmatprep.subr.bf16.mxu1 %v7716_v2  ;;  %7057 = vmatprep.mubr.msk.bf16.mxu1 %vm7718_vm0, %v7716_v2 }
 0x23d   : >> { %4028 = vrot.lane.b32.xlu0 %v8727_v44, %s7743_s19  ;;  %3321 = vmatpush1.bf16.msra.mxu0 %v3291_v47  ;;  %s4230_s18 = scalar_lea.vmem [#allocation2], %s6567_s17 }
 0x23e   : >> { %4030 = vrot.lane.b32.xlu1 %v8732_v45, %s7743_s19  ;;  %3352 = vmatprep.mubr.bf16.mxu0 %v7719_v14 }
 0x23f   : >> { %v3277_v37 = vpop.permute.xlu0 %3276 }
 0x240   : >> { %v3273_v38 = vpop.permute.xlu1 %3272  ;;  %7052 = vmatpush3.bf16.msra.mxu1 %v3277_v37  ;;  %v3294_v39 = vsel %vm3290_vm9, %v3275_v34, %v3277_v37 }
 0x241   : >> { %v3293_v42 = vsel %vm3290_vm9, %v3273_v38, %v3275_v34  ;;  %4026 = vrot.lane.b32.xlu0 %v8740_v51, %s7743_s19  ;;  %3322 = vmatprep.subr.bf16.mxu0 %v3294_v39 }
 0x242   : >> { %4034 = vrot.lane.b32.xlu1 %v8745_v52, %s7743_s19  ;;  %3323 = vmatpush1.bf16.msra.mxu0 %v3293_v42 }
 0x243   : >> { %v3281_v44 = vpop.permute.xlu0 %3280  ;;  %7053 = vmatprep.subr.bf16.mxu1 %v7716_v2 }
 0x244   : >> { %v3283_v45 = vpop.permute.xlu1 %3282 }
 0x245   : >> { %4036 = vrot.lane.b32.xlu0 %v8751_v55, %s7743_s19  ;;  %v3296_v43 = vsel %vm3290_vm9, %v3281_v44, %v3283_v45  ;;  %7054 = vmatpush3.bf16.msra.mxu1 %v3283_v45 }
 0x246   : >> { %4032 = vrot.lane.b32.xlu1 %v8757_v15, %s7743_s19  ;;  %3324 = vmatprep.subr.bf16.mxu0 %v3296_v43 }
 0x247   : >> { %v3279_v51 = vpop.permute.xlu0 %3278  ;;  %7055 = vmatprep.subr.bf16.mxu1 %v7716_v2 }
 0x248   : >> { %v3295_v52 = vsel %vm3290_vm9, %v3279_v51, %v3281_v44  ;;  %v3287_v46 = vpop.permute.xlu1 %3286 }
 0x249   : >> { %4040 = vrot.lane.b32.xlu0 %v8764_v3, %s7743_s19  ;;  %3325 = vmatpush1.bf16.msra.mxu0 %v3295_v52 }
 0x24a   : >> { %4042 = vrot.lane.b32.xlu1 %v8769_v5, %s7743_s19  ;;  %v7573_v5 = vld [vmem:[%s9483_s1 + $0x98] sm:$0xff]  }
 0x24b   : >> { %v3289_v55 = vpop.permute.xlu0 %3288 }
 0x24c   : >> { %v3298_v48 = vsel %vm3290_vm9, %v3287_v46, %v3289_v55  ;;  %v3318_v49 = vand.u32 %v3289_v55, %v7967_v35  ;;  %v3285_v15 = vpop.permute.xlu1 %3284  ;;  %v2029_v50 = vpop.f32.mrb[40].mxu1 }
 0x24d   : >> { %v3315_v53 = vand.u32 %v3298_v48, %v7967_v35  ;;  %v3297_v54 = vsel %vm3290_vm9, %v3285_v15, %v3287_v46  ;;  %v2038_v56 = vadd.f32 %v2029_v50, %v8888_v12  ;;  %4038 = vrot.lane.b32.xlu0 %v8777_v63, %s7743_s19  ;;  %v6951_v3 = vpop.f32.mrb[41].mxu1 }
 0x24e   : >> { %v3312_v57 = vand.u32 %v3297_v54, %v7967_v35  ;;  %4046 = vrot.lane.b32.xlu1 %v7881_v13, %s7743_s19  ;;  %v2032_v59 = vpop.f32.mrb[42].mxu1  ;;  %7056 = vmatpush3.bf16.msra.mxu1 %v3318_v49 }
 0x24f   : >> { %v2041_v60 = vadd.f32 %v2032_v59, %v8898_v40  ;;  %v3421_v4 = vpop.permute.xlu0 %3420  ;;  %3326 = vmatprep.subr.bf16.mxu0 %v3315_v53  ;;  %7061 = vmatprep.subr.bf16.mxu1 %v7716_v2  ;;  %v6952_v63 = vpop.f32.mrb[43].mxu1 }
 0x250   : >> { %v3423_v6 = vpop.permute.xlu1 %3422  ;;  %3327 = vmatpush1.bf16.msra.mxu0 %v3312_v57  ;;  %v7575_v57 = vld [vmem:[%s9483_s1 + $0xa8] sm:$0xff]  }
 0x251   : >> { %4048 = vrot.lane.b32.xlu0 %v8847_v58, %s7743_s19  ;;  %7058 = vmatmul.mubr.msk.bf16.vlgmr.msra.gmra.mrb[76].mxu1 %vm463_vm4, %v7573_v5  ;;  %v3444_v61 = vsel %vm3442_vm10, %v3421_v4, %v3423_v6 }
 0x252   : >> { %4044 = vrot.lane.b32.xlu1 %v7891_v16, %s7743_s19  ;;  %3472 = vmatprep.subr.bf16.mxu0 %v3444_v61 }
 0x253   : >> { %7062 = vmatpush3.bf16.msra.mxu1 %v3423_v6  ;;  %v3419_v13 = vpop.permute.xlu0 %3418  ;;  %6331 = vmatmul.mubr.msk.bf16.vlgmr.msra.gmra.mrb[0].mxu0 %vm463_vm4, %v7573_v5 }
 0x254   : >> { %v3443_v7 = vsel %vm3442_vm10, %v3419_v13, %v3421_v4  ;;  %v3427_v62 = vpop.permute.xlu1 %3426  ;;  %7063 = vmatprep.subr.bf16.mxu1 %v7716_v2  ;;  %7069 = vmatprep.mubr.msk.bf16.mxu1 %vm7718_vm0, %v7716_v2 }
 0x255   : >> { %3473 = vmatpush1.bf16.msra.mxu0 %v3443_v7  ;;  %3504 = vmatprep.mubr.bf16.mxu0 %v7719_v14 }
 0x256   : >> { %4172 = vperm.xlu0 %7537, %v7816_v0   ;;  %4177 = vperm.xlu1 %7538, %v7821_v1   ;;  %v7617_v0 = vld [vmem:[%s9485_s3 + $0x50] sm:$0xff] (%p343_p5)  }
 0x257   : >> { %v3429_v16 = vpop.permute.xlu0 %3428  ;;  %v7618_v1 = vld [vmem:[%s9485_s3 + $0x10] sm:$0xff] (%p343_p5)  }
 0x258   : >> { %v3425_v58 = vpop.permute.xlu1 %3424  ;;  %7064 = vmatpush3.bf16.msra.mxu1 %v3429_v16  ;;  %v3446_v8 = vsel %vm3442_vm10, %v3427_v62, %v3429_v16 }
 0x259   : >> { %v3445_v11 = vsel %vm3442_vm10, %v3425_v58, %v3427_v62  ;;  %3474 = vmatprep.subr.bf16.mxu0 %v3446_v8  ;;  %7065 = vmatprep.subr.bf16.mxu1 %v7716_v2 }
 0x25a   : >> { %3475 = vmatpush1.bf16.msra.mxu0 %v3445_v11 }
 0x25b   : >> { %v3433_v17 = vpop.permute.xlu0 %3432 }
 0x25c   : >> { %v3435_v9 = vpop.permute.xlu1 %3434 }
 0x25d   : >> { %v3448_v18 = vsel %vm3442_vm10, %v3433_v17, %v3435_v9  ;;  %7066 = vmatpush3.bf16.msra.mxu1 %v3435_v9 }
 0x25e   : >> { %3476 = vmatprep.subr.bf16.mxu0 %v3448_v18  ;;  %7067 = vmatprep.subr.bf16.mxu1 %v7716_v2 }
 0x25f   : >> { %v3431_v23 = vpop.permute.xlu0 %3430 }
 0x260   : >> { %v3447_v24 = vsel %vm3442_vm10, %v3431_v23, %v3433_v17  ;;  %v3439_v10 = vpop.permute.xlu1 %3438 }
 0x261   : >> { %3477 = vmatpush1.bf16.msra.mxu0 %v3447_v24 }
 0x263   : >> { %v3441_v29 = vpop.permute.xlu0 %3440 }
 0x264   : >> { %v3450_v30 = vsel %vm3442_vm10, %v3439_v10, %v3441_v29  ;;  %v3470_v19 = vand.u32 %v3441_v29, %v7967_v35  ;;  %v3437_v33 = vpop.permute.xlu1 %3436  ;;  %v2181_v20 = vpop.f32.mrb[44].mxu1 }
 0x265   : >> { %v3467_v21 = vand.u32 %v3450_v30, %v7967_v35  ;;  %v3449_v12 = vsel %vm3442_vm10, %v3437_v33, %v3439_v10  ;;  %v2190_v36 = vadd.f32 %v2181_v20, %v2038_v56  ;;  %v6963_v22 = vpop.f32.mrb[45].mxu1 }
 0x266   : >> { %v3464_v26 = vand.u32 %v3449_v12, %v7967_v35  ;;  %v2184_v40 = vpop.f32.mrb[46].mxu1  ;;  %7068 = vmatpush3.bf16.msra.mxu1 %v3470_v19 }
 0x267   : >> { %v2193_v41 = vadd.f32 %v2184_v40, %v2041_v60  ;;  %v3573_v27 = vpop.permute.xlu0 %3572  ;;  %3478 = vmatprep.subr.bf16.mxu0 %v3467_v21  ;;  %7073 = vmatprep.subr.bf16.mxu1 %v7716_v2  ;;  %v6964_v28 = vpop.f32.mrb[47].mxu1 }
 0x268   : >> { %v3575_v31 = vpop.permute.xlu1 %3574  ;;  %3479 = vmatpush1.bf16.msra.mxu0 %v3464_v26  ;;  %v7576_v26 = vld [vmem:[%s9483_s1 + $0xb0] sm:$0xff]  }
 0x269   : >> { %7070 = vmatmul.mubr.msk.bf16.vlgmr.msra.gmra.mrb[80].mxu1 %vm463_vm4, %v7574_v25  ;;  %v3596_v32 = vsel %vm3594_vm11, %v3573_v27, %v3575_v31 }
 0x26a   : >> { %3624 = vmatprep.subr.bf16.mxu0 %v3596_v32  ;;  %7074 = vmatpush3.bf16.msra.mxu1 %v3575_v31 }
 0x26b   : >> { %v3571_v47 = vpop.permute.xlu0 %3570  ;;  %6336 = vmatmul.mubr.msk.bf16.vlgmr.msra.gmra.mrb[0].mxu0 %vm463_vm4, %v7574_v25  ;;  %7075 = vmatprep.subr.bf16.mxu1 %v7716_v2 }
 0x26c   : >> { %v3595_v34 = vsel %vm3594_vm11, %v3571_v47, %v3573_v27  ;;  %v3579_v37 = vpop.permute.xlu1 %3578  ;;  %7081 = vmatprep.mubr.msk.bf16.mxu1 %vm7718_vm0, %v7716_v2  ;;  %3656 = vmatprep.mubr.bf16.mxu0 %v7719_v14 }
 0x26d   : >> { %3625 = vmatpush1.bf16.msra.mxu0 %v3595_v34 }
 0x26f   : >> { %v3581_v38 = vpop.permute.xlu0 %3580 }
 0x270   : >> { %v3577_v39 = vpop.permute.xlu1 %3576  ;;  %7076 = vmatpush3.bf16.msra.mxu1 %v3581_v38  ;;  %v3598_v42 = vsel %vm3594_vm11, %v3579_v37, %v3581_v38 }
 0x271   : >> { %v3597_v44 = vsel %vm3594_vm11, %v3577_v39, %v3579_v37  ;;  %3626 = vmatprep.subr.bf16.mxu0 %v3598_v42  ;;  %7077 = vmatprep.subr.bf16.mxu1 %v7716_v2 }
 0x272   : >> { %3627 = vmatpush1.bf16.msra.mxu0 %v3597_v44 }
 0x273   : >> { %v3585_v45 = vpop.permute.xlu0 %3584 }
 0x274   : >> { %v3587_v43 = vpop.permute.xlu1 %3586 }
 0x275   : >> { %v3600_v51 = vsel %vm3594_vm11, %v3585_v45, %v3587_v43  ;;  %7078 = vmatpush3.bf16.msra.mxu1 %v3587_v43 }
 0x276   : >> { %3628 = vmatprep.subr.bf16.mxu0 %v3600_v51  ;;  %7079 = vmatprep.subr.bf16.mxu1 %v7716_v2 }
 0x277   : >> { %v3583_v52 = vpop.permute.xlu0 %3582 }
 0x278   : >> { %v3599_v46 = vsel %vm3594_vm11, %v3583_v52, %v3585_v45  ;;  %v3591_v55 = vpop.permute.xlu1 %3590 }
 0x279   : >> { %3629 = vmatpush1.bf16.msra.mxu0 %v3599_v46 }
 0x27b   : >> { %v3593_v48 = vpop.permute.xlu0 %3592 }
 0x27c   : >> { %v3602_v49 = vsel %vm3594_vm11, %v3591_v55, %v3593_v48  ;;  %v3622_v15 = vand.u32 %v3593_v48, %v7967_v35  ;;  %v3589_v50 = vpop.permute.xlu1 %3588  ;;  %v2333_v53 = vpop.f32.mrb[48].mxu1 }
 0x27d   : >> { %v3619_v54 = vand.u32 %v3602_v49, %v7967_v35  ;;  %v3601_v56 = vsel %vm3594_vm11, %v3589_v50, %v3591_v55  ;;  %v2342_v3 = vadd.f32 %v2333_v53, %v2190_v36  ;;  %v6975_v5 = vpop.f32.mrb[49].mxu1 }
 0x27e   : >> { %v3616_v59 = vand.u32 %v3601_v56, %v7967_v35  ;;  %v2336_v60 = vpop.f32.mrb[50].mxu1  ;;  %7080 = vmatpush3.bf16.msra.mxu1 %v3622_v15 }
 0x27f   : >> { %v2345_v4 = vadd.f32 %v2336_v60, %v2193_v41  ;;  %v3725_v63 = vpop.permute.xlu0 %3724  ;;  %3630 = vmatprep.subr.bf16.mxu0 %v3619_v54  ;;  %7085 = vmatprep.subr.bf16.mxu1 %v7716_v2  ;;  %v6976_v6 = vpop.f32.mrb[51].mxu1 }
 0x280   : >> { %v3727_v61 = vpop.permute.xlu1 %3726  ;;  %3631 = vmatpush1.bf16.msra.mxu0 %v3616_v59  ;;  %v7577_v59 = vld [vmem:[%s9483_s1 + $0xb8] sm:$0xff]  }
 0x281   : >> { %7082 = vmatmul.mubr.msk.bf16.vlgmr.msra.gmra.mrb[84].mxu1 %vm463_vm4, %v7575_v57  ;;  %v3748_v13 = vsel %vm3746_vm12, %v3725_v63, %v3727_v61 }
 0x282   : >> { %3776 = vmatprep.subr.bf16.mxu0 %v3748_v13  ;;  %7086 = vmatpush3.bf16.msra.mxu1 %v3727_v61 }
 0x283   : >> { %v3723_v7 = vpop.permute.xlu0 %3722  ;;  %6341 = vmatmul.mubr.msk.bf16.vlgmr.msra.gmra.mrb[0].mxu0 %vm463_vm4, %v7575_v57  ;;  %7087 = vmatprep.subr.bf16.mxu1 %v7716_v2 }
 0x284   : >> { %v3747_v62 = vsel %vm3746_vm12, %v3723_v7, %v3725_v63  ;;  %v3731_v16 = vpop.permute.xlu1 %3730  ;;  %7093 = vmatprep.mubr.msk.bf16.mxu1 %vm7718_vm0, %v7716_v2  ;;  %3808 = vmatprep.mubr.bf16.mxu0 %v7719_v14 }
 0x285   : >> { %3777 = vmatpush1.bf16.msra.mxu0 %v3747_v62 }
 0x287   : >> { %v3733_v58 = vpop.permute.xlu0 %3732 }
 0x288   : >> { %v3729_v8 = vpop.permute.xlu1 %3728  ;;  %7088 = vmatpush3.bf16.msra.mxu1 %v3733_v58  ;;  %v3750_v11 = vsel %vm3746_vm12, %v3731_v16, %v3733_v58 }
 0x289   : >> { %v3749_v17 = vsel %vm3746_vm12, %v3729_v8, %v3731_v16  ;;  %3778 = vmatprep.subr.bf16.mxu0 %v3750_v11  ;;  %7089 = vmatprep.subr.bf16.mxu1 %v7716_v2 }
 0x28a   : >> { %3779 = vmatpush1.bf16.msra.mxu0 %v3749_v17 }
 0x28b   : >> { %v3737_v9 = vpop.permute.xlu0 %3736 }
 0x28c   : >> { %v3739_v18 = vpop.permute.xlu1 %3738 }
 0x28d   : >> { %v3752_v23 = vsel %vm3746_vm12, %v3737_v9, %v3739_v18  ;;  %7090 = vmatpush3.bf16.msra.mxu1 %v3739_v18 }
 0x28e   : >> { %3780 = vmatprep.subr.bf16.mxu0 %v3752_v23  ;;  %7091 = vmatprep.subr.bf16.mxu1 %v7716_v2 }
 0x28f   : >> { %v3735_v24 = vpop.permute.xlu0 %3734 }
 0x290   : >> { %v3751_v10 = vsel %vm3746_vm12, %v3735_v24, %v3737_v9  ;;  %v3743_v29 = vpop.permute.xlu1 %3742 }
 0x291   : >> { %3781 = vmatpush1.bf16.msra.mxu0 %v3751_v10 }
 0x293   : >> { %v3745_v30 = vpop.permute.xlu0 %3744 }
 0x294   : >> { %v3754_v19 = vsel %vm3746_vm12, %v3743_v29, %v3745_v30  ;;  %v3774_v33 = vand.u32 %v3745_v30, %v7967_v35  ;;  %v3741_v20 = vpop.permute.xlu1 %3740  ;;  %v2485_v21 = vpop.f32.mrb[52].mxu1 }
 0x295   : >> { %v3771_v12 = vand.u32 %v3754_v19, %v7967_v35  ;;  %v3753_v36 = vsel %vm3746_vm12, %v3741_v20, %v3743_v29  ;;  %v2494_v22 = vadd.f32 %v2485_v21, %v2342_v3  ;;  %v6987_v25 = vpop.f32.mrb[53].mxu1 }
 0x296   : >> { %v3768_v40 = vand.u32 %v3753_v36, %v7967_v35  ;;  %v2488_v41 = vpop.f32.mrb[54].mxu1  ;;  %7092 = vmatpush3.bf16.msra.mxu1 %v3774_v33 }
 0x297   : >> { %v2497_v27 = vadd.f32 %v2488_v41, %v2345_v4  ;;  %v3877_v28 = vpop.permute.xlu0 %3876  ;;  %3782 = vmatprep.subr.bf16.mxu0 %v3771_v12  ;;  %7097 = vmatprep.subr.bf16.mxu1 %v7716_v2  ;;  %v6988_v31 = vpop.f32.mrb[55].mxu1 }
 0x298   : >> { %v3879_v32 = vpop.permute.xlu1 %3878  ;;  %3783 = vmatpush1.bf16.msra.mxu0 %v3768_v40 }
 0x299   : >> { %7094 = vmatmul.mubr.msk.bf16.vlgmr.msra.gmra.mrb[88].mxu1 %vm463_vm4, %v7576_v26  ;;  %v3900_v47 = vsel %vm3898_vm13, %v3877_v28, %v3879_v32 }
 0x29a   : >> { %3928 = vmatprep.subr.bf16.mxu0 %v3900_v47  ;;  %7098 = vmatpush3.bf16.msra.mxu1 %v3879_v32 }
 0x29b   : >> { %v3875_v34 = vpop.permute.xlu0 %3874  ;;  %6346 = vmatmul.mubr.msk.bf16.vlgmr.msra.gmra.mrb[0].mxu0 %vm463_vm4, %v7576_v26  ;;  %7099 = vmatprep.subr.bf16.mxu1 %v7716_v2 }
 0x29c   : >> { %v3899_v37 = vsel %vm3898_vm13, %v3875_v34, %v3877_v28  ;;  %v3883_v38 = vpop.permute.xlu1 %3882  ;;  %7105 = vmatprep.mubr.msk.bf16.mxu1 %vm7718_vm0, %v7716_v2  ;;  %3960 = vmatprep.mubr.bf16.mxu0 %v7719_v14 }
 0x29d   : >> { %3929 = vmatpush1.bf16.msra.mxu0 %v3899_v37 }
 0x29f   : >> { %v3885_v39 = vpop.permute.xlu0 %3884 }
 0x2a0   : >> { %v3881_v42 = vpop.permute.xlu1 %3880  ;;  %7100 = vmatpush3.bf16.msra.mxu1 %v3885_v39  ;;  %v3902_v44 = vsel %vm3898_vm13, %v3883_v38, %v3885_v39 }
 0x2a1   : >> { %v3901_v45 = vsel %vm3898_vm13, %v3881_v42, %v3883_v38  ;;  %3930 = vmatprep.subr.bf16.mxu0 %v3902_v44  ;;  %7101 = vmatprep.subr.bf16.mxu1 %v7716_v2 }
 0x2a2   : >> { %3931 = vmatpush1.bf16.msra.mxu0 %v3901_v45 }
 0x2a3   : >> { %v3889_v43 = vpop.permute.xlu0 %3888 }
 0x2a4   : >> { %v3891_v51 = vpop.permute.xlu1 %3890 }
 0x2a5   : >> { %v3904_v52 = vsel %vm3898_vm13, %v3889_v43, %v3891_v51  ;;  %7102 = vmatpush3.bf16.msra.mxu1 %v3891_v51 }
 0x2a6   : >> { %3932 = vmatprep.subr.bf16.mxu0 %v3904_v52  ;;  %7103 = vmatprep.subr.bf16.mxu1 %v7716_v2 }
 0x2a7   : >> { %v3887_v46 = vpop.permute.xlu0 %3886 }
 0x2a8   : >> { %v3903_v55 = vsel %vm3898_vm13, %v3887_v46, %v3889_v43  ;;  %v3895_v48 = vpop.permute.xlu1 %3894 }
 0x2a9   : >> { %3933 = vmatpush1.bf16.msra.mxu0 %v3903_v55 }
 0x2ab   : >> { %v3897_v49 = vpop.permute.xlu0 %3896 }
 0x2ac   : >> { %v3906_v15 = vsel %vm3898_vm13, %v3895_v48, %v3897_v49  ;;  %v3926_v50 = vand.u32 %v3897_v49, %v7967_v35  ;;  %v3893_v53 = vpop.permute.xlu1 %3892  ;;  %v2637_v54 = vpop.f32.mrb[56].mxu1 }
 0x2ad   : >> { %v3923_v56 = vand.u32 %v3906_v15, %v7967_v35  ;;  %v3905_v3 = vsel %vm3898_vm13, %v3893_v53, %v3895_v48  ;;  %v2646_v5 = vadd.f32 %v2637_v54, %v2494_v22  ;;  %v6999_v57 = vpop.f32.mrb[57].mxu1 }
 0x2ae   : >> { %v3920_v60 = vand.u32 %v3905_v3, %v7967_v35  ;;  %v2640_v4 = vpop.f32.mrb[58].mxu1  ;;  %7104 = vmatpush3.bf16.msra.mxu1 %v3926_v50 }
 0x2af   : >> { %v2649_v63 = vadd.f32 %v2640_v4, %v2497_v27  ;;  %v4029_v6 = vpop.permute.xlu0 %4028  ;;  %3934 = vmatprep.subr.bf16.mxu0 %v3923_v56  ;;  %7109 = vmatprep.subr.bf16.mxu1 %v7716_v2  ;;  %v7000_v61 = vpop.f32.mrb[59].mxu1 }
 0x2b0   : >> { %v4031_v13 = vpop.permute.xlu1 %4030  ;;  %3935 = vmatpush1.bf16.msra.mxu0 %v3920_v60 }
 0x2b1   : >> { %7106 = vmatmul.mubr.msk.bf16.vlgmr.msra.gmra.mrb[92].mxu1 %vm463_vm4, %v7577_v59  ;;  %v4052_v7 = vsel %vm4050_vm14, %v4029_v6, %v4031_v13 }
 0x2b2   : >> { %4080 = vmatprep.subr.bf16.mxu0 %v4052_v7  ;;  %7110 = vmatpush3.bf16.msra.mxu1 %v4031_v13 }
 0x2b3   : >> { %v4027_v62 = vpop.permute.xlu0 %4026  ;;  %6351 = vmatmul.mubr.msk.bf16.vlgmr.msra.gmra.mrb[0].mxu0 %vm463_vm4, %v7577_v59  ;;  %7111 = vmatprep.subr.bf16.mxu1 %v7716_v2 }
 0x2b4   : >> { %v4051_v16 = vsel %vm4050_vm14, %v4027_v62, %v4029_v6  ;;  %v4035_v58 = vpop.permute.xlu1 %4034  ;;  %7117 = vmatprep.mubr.msk.bf16.mxu1 %vm7718_vm0, %v7716_v2  ;;  %4112 = vmatprep.mubr.bf16.mxu0 %v7719_v14 }
 0x2b5   : >> { %4081 = vmatpush1.bf16.msra.mxu0 %v4051_v16 }
 0x2b7   : >> { %v4037_v8 = vpop.permute.xlu0 %4036 }
 0x2b8   : >> { %v4033_v11 = vpop.permute.xlu1 %4032  ;;  %7112 = vmatpush3.bf16.msra.mxu1 %v4037_v8  ;;  %v4054_v17 = vsel %vm4050_vm14, %v4035_v58, %v4037_v8 }
 0x2b9   : >> { %v4053_v9 = vsel %vm4050_vm14, %v4033_v11, %v4035_v58  ;;  %4082 = vmatprep.subr.bf16.mxu0 %v4054_v17  ;;  %7113 = vmatprep.subr.bf16.mxu1 %v7716_v2 }
 0x2ba   : >> { %4083 = vmatpush1.bf16.msra.mxu0 %v4053_v9 }
 0x2bb   : >> { %v4041_v18 = vpop.permute.xlu0 %4040 }
 0x2bc   : >> { %v4043_v23 = vpop.permute.xlu1 %4042 }
 0x2bd   : >> { %v4056_v24 = vsel %vm4050_vm14, %v4041_v18, %v4043_v23  ;;  %7114 = vmatpush3.bf16.msra.mxu1 %v4043_v23 }
 0x2be   : >> { %4084 = vmatprep.subr.bf16.mxu0 %v4056_v24  ;;  %7115 = vmatprep.subr.bf16.mxu1 %v7716_v2  ;;  %v7578_v2 = vld [vmem:[%s9483_s1 + $0xc0] sm:$0xff]  }
 0x2bf   : >> { %v4039_v14 = vpop.permute.xlu0 %4038 }
 0x2c0   : >> { %v4055_v10 = vsel %vm4050_vm14, %v4039_v14, %v4041_v18  ;;  %v4047_v29 = vpop.permute.xlu1 %4046 }
 0x2c1   : >> { %4085 = vmatpush1.bf16.msra.mxu0 %v4055_v10 }
 0x2c3   : >> { %v4049_v30 = vpop.permute.xlu0 %4048 }
 0x2c4   : >> { %v4058_v19 = vsel %vm4050_vm14, %v4047_v29, %v4049_v30  ;;  %v4078_v33 = vand.u32 %v4049_v30, %v7967_v35  ;;  %v4045_v20 = vpop.permute.xlu1 %4044  ;;  %v2789_v21 = vpop.f32.mrb[60].mxu1 }
 0x2c5   : >> { %v4075_v12 = vand.u32 %v4058_v19, %v7967_v35  ;;  %v4057_v36 = vsel %vm4050_vm14, %v4045_v20, %v4047_v29  ;;  %v2798_v22 = vadd.f32 %v2789_v21, %v2646_v5  ;;  %v7011_v25 = vpop.f32.mrb[61].mxu1 }
 0x2c6   : >> { %v4072_v26 = vand.u32 %v4057_v36, %v7967_v35  ;;  %v2792_v40 = vpop.f32.mrb[62].mxu1  ;;  %7116 = vmatpush3.bf16.msra.mxu1 %v4078_v33 }
 0x2c7   : >> { %v2801_v41 = vadd.f32 %v2792_v40, %v2649_v63  ;;  %4086 = vmatprep.subr.bf16.mxu0 %v4075_v12  ;;  %v7012_v27 = vpop.f32.mrb[63].mxu1 }
 0x2c8   : >> { %4087 = vmatpush1.bf16.msra.mxu0 %v4072_v26 }
 0x2c9   : >> { %7118 = vmatmul.mubr.msk.bf16.vlgmr.msra.gmra.mrb[96].mxu1 %vm463_vm4, %v7578_v2 }
 0x2cb   : >> { %6356 = vmatmul.mubr.msk.bf16.vlgmr.msra.gmra.mrb[0].mxu0 %vm463_vm4, %v7578_v2 }
 0x2d5   : >> { %v4173_v33 = vpop.permute.xlu0 %4172  ;;  %v4178_v12 = vpop.permute.xlu1 %4177 }
 0x2dc   : >> { %v2941_v28 = vpop.f32.mrb[64].mxu1 }
 0x2dd   : >> { %v2950_v31 = vadd.f32 %v2941_v28, %v2798_v22  ;;  %v7023_v32 = vpop.f32.mrb[65].mxu1 }
 0x2de   : >> { %v2944_v47 = vpop.f32.mrb[66].mxu1 }
 0x2df   : >> { %v2953_v34 = vadd.f32 %v2944_v47, %v2801_v41  ;;  %v7024_v37 = vpop.f32.mrb[67].mxu1 }
 0x2f4   : >> { %v3093_v38 = vpop.f32.mrb[68].mxu1 }
 0x2f5   : >> { %v3102_v39 = vadd.f32 %v3093_v38, %v2950_v31  ;;  %v7035_v42 = vpop.f32.mrb[69].mxu1 }
 0x2f6   : >> { %v3096_v44 = vpop.f32.mrb[70].mxu1 }
 0x2f7   : >> { %v3105_v45 = vadd.f32 %v3096_v44, %v2953_v34  ;;  %v7036_v43 = vpop.f32.mrb[71].mxu1 }
 0x30c   : >> { %v3245_v51 = vpop.f32.mrb[72].mxu1 }
 0x30d   : >> { %v3254_v52 = vadd.f32 %v3245_v51, %v3102_v39  ;;  %v7047_v46 = vpop.f32.mrb[73].mxu1 }
 0x30e   : >> { %v3248_v55 = vpop.f32.mrb[74].mxu1 }
 0x30f   : >> { %v3257_v48 = vadd.f32 %v3248_v55, %v3105_v45  ;;  %v7048_v49 = vpop.f32.mrb[75].mxu1 }
 0x324   : >> { %v3397_v15 = vpop.f32.mrb[76].mxu1 }
 0x325   : >> { %v3406_v50 = vadd.f32 %v3397_v15, %v3254_v52  ;;  %v7059_v53 = vpop.f32.mrb[77].mxu1 }
 0x326   : >> { %v3400_v54 = vpop.f32.mrb[78].mxu1 }
 0x327   : >> { %v3409_v56 = vadd.f32 %v3400_v54, %v3257_v48  ;;  %v7060_v3 = vpop.f32.mrb[79].mxu1 }
 0x33c   : >> { %v3549_v5 = vpop.f32.mrb[80].mxu1 }
 0x33d   : >> { %v3558_v57 = vadd.f32 %v3549_v5, %v3406_v50  ;;  %v7071_v59 = vpop.f32.mrb[81].mxu1 }
 0x33e   : >> { %v3552_v60 = vpop.f32.mrb[82].mxu1 }
 0x33f   : >> { %v3561_v4 = vadd.f32 %v3552_v60, %v3409_v56  ;;  %v7072_v63 = vpop.f32.mrb[83].mxu1 }
 0x354   : >> { %v3701_v6 = vpop.f32.mrb[84].mxu1 }
 0x355   : >> { %v3710_v61 = vadd.f32 %v3701_v6, %v3558_v57  ;;  %v7083_v13 = vpop.f32.mrb[85].mxu1 }
 0x356   : >> { %v3704_v7 = vpop.f32.mrb[86].mxu1 }
 0x357   : >> { %v3713_v62 = vadd.f32 %v3704_v7, %v3561_v4  ;;  %v7084_v16 = vpop.f32.mrb[87].mxu1 }
 0x36c   : >> { %v3853_v58 = vpop.f32.mrb[88].mxu1 }
 0x36d   : >> { %v3862_v8 = vadd.f32 %v3853_v58, %v3710_v61  ;;  %v7095_v11 = vpop.f32.mrb[89].mxu1 }
 0x36e   : >> { %v3856_v17 = vpop.f32.mrb[90].mxu1  ;;  %v7613_v11 = vld [vmem:[%s9485_s3 + $0x40] sm:$0xff] (%p343_p5)  }
 0x36f   : >> { %v3865_v9 = vadd.f32 %v3856_v17, %v3713_v62  ;;  %v7096_v18 = vpop.f32.mrb[91].mxu1  ;;  %v7614_v17 = vld [vmem:[%s9485_s3] sm:$0xff] (%p343_p5)   ;;  %6693 = vmatprep.subr.bf16.mxu0 (%p343_p5), %v7613_v11 }
 0x370   : > { %6694 = vmatpush3.bf16.msra.mxu0 (%p343_p5), %v7614_v17  ;;  %v7616_v18 = vld [vmem:[%s9485_s3 + $0x8] sm:$0xff] (%p343_p5)  }
 0x384   : >> { %v4005_v23 = vpop.f32.mrb[92].mxu1 }
 0x385   : >> { %v4014_v24 = vadd.f32 %v4005_v23, %v3862_v8  ;;  %v7107_v14 = vpop.f32.mrb[93].mxu1  ;;  %v7619_v23 = vld [vmem:[%s9485_s3 + $0x58] sm:$0xff] (%p343_p5)  }
 0x386   : >> { %v4008_v10 = vpop.f32.mrb[94].mxu1  ;;  %v7621_v14 = vld [vmem:[%s9485_s3 + $0x60] sm:$0xff] (%p343_p5)  }
 0x387   : >> { %v4017_v29 = vadd.f32 %v4008_v10, %v3865_v9  ;;  %v7108_v30 = vpop.f32.mrb[95].mxu1  ;;  %v7615_v9 = vld [vmem:[%s9485_s3 + $0x48] sm:$0xff] (%p343_p5)   ;;  %v7622_v10 = vld [vmem:[%s9485_s3 + $0x20] sm:$0xff] (%p343_p5)  }
 0x388   : > { %6695 = vmatprep.subr.bf16.mxu0 (%p343_p5), %v7615_v9 }
 0x389   : > { %6696 = vmatpush3.bf16.msra.mxu0 (%p343_p5), %v7616_v18 }
 0x38a   : > { %6697 = vmatprep.subr.bf16.mxu0 (%p343_p5), %v7617_v0  ;;  %v7633_v0 = vld [vmem:[%s9486_s4 + $0x40] sm:$0xff] (%p343_p5)  }
 0x38b   : > { %7177 = vmatprep.mubr.msk.bf16.mxu1 (%p343_p5), %vm4233_vm15, %v7633_v0  ;;  %v7650_v0 = vld [vmem:[%s9486_s4 + $0xb8] sm:$0xff] (%p343_p5)  }
 0x38d   : > { %6698 = vmatpush3.bf16.msra.mxu0 (%p343_p5), %v7618_v1 }
 0x38e   : > { %6699 = vmatprep.subr.bf16.mxu0 (%p343_p5), %v7619_v23 }
 0x39c   : >> { %v4157_v19 = vpop.f32.mrb[96].mxu1 }
 0x39d   : >> { %v4166_v20 = vadd.f32 %v4157_v19, %v4014_v24  ;;  %v7119_v21 = vpop.f32.mrb[97].mxu1  ;;  %v7620_v24 = vld [vmem:[%s9485_s3 + $0x18] sm:$0xff] (%p343_p5)   ;;  %v7624_v19 = vld [vmem:[%s9485_s3 + $0x28] sm:$0xff] (%p343_p5)  }
 0x39e   : >> { %v4114_v36 = vpop.f32.mrb[0].mxu0  ;;  %v4160_v22 = vpop.f32.mrb[98].mxu1  ;;  %6700 = vmatpush3.bf16.msra.mxu0 (%p343_p5), %v7620_v24  ;;  %v7627_v21 = vld [vmem:[%s9485_s3 + $0x78] sm:$0xff] (%p343_p5)  }
 0x39f   : >> { %v4182_v25 = vadd.f32 %v4173_v33, %v4166_v20  ;;  %v4180_v2 = vadd.f32 %v4173_v33, %v4114_v36  ;;  %v4169_v26 = vadd.f32 %v4160_v22, %v4017_v29  ;;  %v4116_v40 = vpop.f32.mrb[1].mxu0  ;;  %v7120_v41 = vpop.f32.mrb[99].mxu1  ;;  %6701 = vmatprep.subr.bf16.mxu0 (%p343_p5), %v7621_v14  ;;  %v7623_v29 = vld [vmem:[%s9485_s3 + $0x68] sm:$0xff] (%p343_p5)   ;;  %v7626_v20 = vld [vmem:[%s9485_s3 + $0x30] sm:$0xff] (%p343_p5)   ;;  %v7629_v36 = vld [vmem:[%s9485_s3 + $0x80] sm:$0xff] (%p343_p5)  }
 0x3a0   : >> { %v4181_v27 = vadd.f32 %v4173_v33, %v4116_v40  ;;  %v4118_v28 = vpop.f32.mrb[2].mxu0  ;;  %v7625_v33 = vld [vmem:[%s9485_s3 + $0x70] sm:$0xff] (%p343_p5)  }
 0x3a1   : >> { %v4194_v31 = vmin.f32 %v4182_v25, 0.0  ;;  %v4192_v32 = vmin.f32 %v4180_v2, 0.0  ;;  %v4120_v47 = vpop.f32.mrb[3].mxu0  ;;  %v4183_v37 = vadd.f32 %v4178_v12, %v4118_v28  ;;  %v4185_v38 = vadd.f32 %v4178_v12, %v4169_v26  ;;  %v7631_v26 = vld [vmem:[%s9485_s3 + $0x90] sm:$0xff] (%p343_p5)  }
 0x3a2   : >> { %v4193_v34 = vmin.f32 %v4181_v27, 0.0  ;;  %v4184_v44 = vadd.f32 %v4178_v12, %v4120_v47  ;;  %vm4188_vm0 = vcmp.gt.f32.partialorder %v4182_v25, 0.0  ;;  %vm4186_vm1 = vcmp.gt.f32.partialorder %v4180_v2, 0.0  ;;  %6702 = vmatpush3.bf16.msra.mxu0 (%p343_p5), %v7622_v10  ;;  %v7628_v12 = vld [vmem:[%s9485_s3 + $0x38] sm:$0xff] (%p343_p5)  }
 0x3a3   : >> { %v4202_v39 = vmul.f32 1.442695, %v4194_v31  ;;  %v4198_v42 = vmul.f32 1.442695, %v4192_v32  ;;  %v4195_v43 = vmin.f32 %v4183_v37, 0.0  ;;  %v4197_v51 = vmin.f32 %v4185_v38, 0.0  ;;  %6703 = vmatprep.subr.bf16.mxu0 (%p343_p5), %v7623_v29 }
 0x3a4   : >> { %v4200_v45 = vmul.f32 1.442695, %v4193_v34  ;;  %v4196_v52 = vmin.f32 %v4184_v44, 0.0  ;;  %vm4187_vm2 = vcmp.gt.f32.partialorder %v4181_v27, 0.0  ;;  %vm4189_vm5 = vcmp.gt.f32.partialorder %v4183_v37, 0.0 }
 0x3a5   : >> { %7579 = vpow2.f32 %v4202_v39  ;;  %v4204_v46 = vmul.f32 1.442695, %v4195_v43  ;;  %v4208_v55 = vmul.f32 1.442695, %v4197_v51  ;;  %vm4191_vm6 = vcmp.gt.f32.partialorder %v4185_v38, 0.0 }
 0x3a6   : >> { %7581 = vpow2.f32 %v4198_v42  ;;  %v4206_v48 = vmul.f32 1.442695, %v4196_v52  ;;  %vm4190_vm7 = vcmp.gt.f32.partialorder %v4184_v44, 0.0  ;;  %6704 = vmatpush3.bf16.msra.mxu0 (%p343_p5), %v7624_v19 }
 0x3a7   : >> { %7583 = vpow2.f32 %v4200_v45  ;;  %6705 = vmatprep.subr.bf16.mxu0 (%p343_p5), %v7625_v33 }
 0x3a8   : >> { %7585 = vpow2.f32 %v4204_v46 }
 0x3a9   : >> { %7587 = vpow2.f32 %v4208_v55 }
 0x3aa   : >> { %7589 = vpow2.f32 %v4206_v48  ;;  %6706 = vmatpush3.bf16.msra.mxu0 (%p343_p5), %v7626_v20  ;;  %v7646_v20 = vld [vmem:[%s9486_s4 + $0x20] sm:$0xff] (%p343_p5)  }
 0x3ab   : > { %6707 = vmatprep.subr.bf16.mxu0 (%p343_p5), %v7627_v21 }
 0x3ae   : > { %6708 = vmatpush3.bf16.msra.mxu0 (%p343_p5), %v7628_v12 }
 0x3af   : >> { %v7580_v49 = vpop.eup %7579  ;;  %7121 = vmatprep.subr.bf16.mxu0 (%p343_p5), %v7629_v36 }
 0x3b0   : >> { %v7582_v15 = vpop.eup %7581  ;;  %v6360_v56 = vadd.f32 -1.0, %v7580_v49 }
 0x3b1   : >> { %v7584_v50 = vpop.eup %7583  ;;  %v6358_v53 = vadd.f32 -1.0, %v7582_v15 }
 0x3b2   : >> { %v7586_v54 = vpop.eup %7585  ;;  %v6359_v5 = vadd.f32 -1.0, %v7584_v50  ;;  %v4218_v61 = vsel %vm4188_vm0, %v4182_v25, %v6360_v56 }
 0x3b3   : >> { %v7588_v3 = vpop.eup %7587  ;;  %v6361_v57 = vadd.f32 -1.0, %v7586_v54  ;;  %v4216_v4 = vsel %vm4186_vm1, %v4180_v2, %v6358_v53  ;;  %v7630_v2 = vld [vmem:[%s9485_s3 + $0x88] sm:$0xff] (%p343_p5)  }
 0x3b4   : >> { %v7590_v59 = vpop.eup %7589  ;;  %v6363_v60 = vadd.f32 -1.0, %v7588_v3  ;;  %v4217_v62 = vsel %vm4187_vm2, %v4181_v27, %v6359_v5  ;;  %345 = sbr.rel (!%p343_p5) target bundleno = 17 (0x11), region = 128  ;;  %v7632_v27 = vld [vmem:[%s9485_s3 + $0x98] sm:$0xff] (%p343_p5)  }
 0x3b5   : >> { %v4219_v63 = vsel %vm4189_vm5, %v4183_v37, %v6361_v57  ;;  %v6362_v6 = vadd.f32 -1.0, %v7590_v59 }
 0x3b6   : >> { %v4221_v13 = vsel %vm4191_vm6, %v4185_v38, %v6363_v60  ;;  %v4223_v7 = vpack.c.bf16 %v4219_v63, %v4216_v4 }
 0x3b7   : >> { %v4225_v16 = vpack.c.bf16 %v4221_v13, %v4218_v61  ;;  %v4220_v58 = vsel %vm4190_vm7, %v4184_v44, %v6362_v6 }
 0x3b8   : >> { %4231 = vst [vmem:[%s4230_s18] sm:$0xff] %v4223_v7  ;;  %v4224_v8 = vpack.c.bf16 %v4220_v58, %v4217_v62 }
 0x3b9   : >> { %4234 = vst.msk [vmem:[%s4230_s18 + $0x10] sm:$0xff] %vm4233_vm15, %v4225_v16 }
 0x3ba   : >> { %4232 = vst [vmem:[%s4230_s18 + $0x8] sm:$0xff] %v4224_v8 }
 0x3c1   : > { %v4236_v30 = vld [vmem:[#allocation2 + $0x8] sm:$0xff]  ;;  %v4235_v22 = vld [vmem:[#allocation2] sm:$0xff]  ;;  %v4238_v40 = vld [vmem:[#allocation2 + $0x18] sm:$0xff] }
 0x3c2   : > { %4452 = vmatprep.mubr.bf16.mxu0 %v4236_v30  ;;  %v4239_v25 = vld [vmem:[#allocation2 + $0x20] sm:$0xff]  ;;  %v4242_v41 = vld [vmem:[#allocation2 + $0x38] sm:$0xff]  ;;  %v4241_v28 = vld [vmem:[#allocation2 + $0x30] sm:$0xff] }
 0x3c3   : > { %4453 = vmatmul.mubr.bf16.vlgmr.msra.gmra.mrb[0].mxu0 %v4235_v22  ;;  %v4245_v31 = vld [vmem:[#allocation2 + $0x50] sm:$0xff]  ;;  %v4244_v32 = vld [vmem:[#allocation2 + $0x48] sm:$0xff]  ;;  %v4243_v37 = vld [vmem:[#allocation2 + $0x40] sm:$0xff] }
 0x3c4   : > { %7122 = vmatpush3.bf16.msra.mxu0 %v7629_v36  ;;  %4460 = vmatprep.mubr.bf16.mxu0 %v4239_v25  ;;  %v4237_v47 = vld [vmem:[#allocation2 + $0x10] sm:$0xff]  ;;  %v4240_v34 = vld [vmem:[#allocation2 + $0x28] sm:$0xff]  ;;  %v4246_v38 = vld [vmem:[#allocation2 + $0x58] sm:$0xff] }
 0x3c5   : > { %7123 = vmatprep.subr.bf16.mxu0 %v7630_v2  ;;  %v5790_v25 = vld [vmem:[%s9487_s5 + $0x8] sm:$0xff] }
 0x3c8   : > { %7124 = vmatpush3.bf16.msra.mxu0 %v7630_v2  ;;  %v5789_v2 = vld [vmem:[%s9487_s5] sm:$0xff] }
 0x3c9   : > { %7125 = vmatprep.subr.bf16.mxu0 %v7631_v26 }
 0x3cb   : > { %4461 = vmatmul.mubr.bf16.gmra.mrb[4].mxu0 %v4238_v40 }
 0x3cc   : > { %4468 = vmatprep.mubr.bf16.mxu0 %v4242_v41  ;;  %7126 = vmatpush3.bf16.msra.mxu0 %v7631_v26  ;;  %v7753_v26 = vmov 0  }
 0x3cd   : > { %7127 = vmatprep.subr.bf16.mxu0 %v7632_v27  ;;  %7612 = vset.pattern.permute.xlu1 %v7753_v26 }
 0x3ce   : > { %7611 = vset.pattern.permute.xlu0 %v7753_v26 }
 0x3d0   : > { %7128 = vmatpush3.bf16.msra.mxu0 %v7632_v27  ;;  %v5791_v27 = vld [vmem:[%s9487_s5 + $0x10] sm:$0xff] }
 0x3d3   : > { %4469 = vmatmul.mubr.bf16.gmra.mrb[8].mxu0 %v4241_v28  ;;  %v7634_v28 = vld [vmem:[%s9486_s4 + $0x48] sm:$0xff]  }
 0x3d4   : > { %4476 = vmatprep.mubr.bf16.mxu0 %v4245_v31  ;;  %v5792_v31 = vld [vmem:[%s9487_s5 + $0x18] sm:$0xff] }
 0x3db   : > { %4477 = vmatmul.mubr.bf16.gmra.mrb[12].mxu0 %v4244_v32  ;;  %v7635_v32 = vld [vmem:[%s9486_s4 + $0x50] sm:$0xff]  }
 0x3dc   : > { %7129 = vmatprep.mubr.msk.bf16.mxu0 %vm4233_vm15, %v4237_v47 }
 0x3e3   : > { %7130 = vmatmul.mubr.msk.bf16.vlgmr.msra.gmra.mrb[16].mxu0 %vm4233_vm15, %v4240_v34  ;;  %v5793_v34 = vld [vmem:[%s9487_s5 + $0x20] sm:$0xff] }
 0x3e4   : > { %7133 = vmatprep.mubr.msk.bf16.mxu0 %vm4233_vm15, %v4243_v37  ;;  %v5794_v37 = vld [vmem:[%s9487_s5 + $0x28] sm:$0xff] }
 0x3eb   : > { %7134 = vmatmul.mubr.msk.bf16.gmra.mrb[20].mxu0 %vm4233_vm15, %v4246_v38 }
 0x3ec   : > { %7145 = vmatprep.mubr.msk.bf16.mxu0 %vm4233_vm15, %v7646_v20  ;;  %v7666_v20 = vld [vmem:[%s9486_s4 + $0x18] sm:$0xff]  }
 0x496   : > { %v6709_v39 = vpop.f32.mrb[0].mxu0 }
 0x497   : > { %v6710_v42 = vpop.f32.mrb[1].mxu0 }
 0x498   : > { %v6711_v44 = vadd.f32 %v6710_v42, %v6709_v39  ;;  %v6712_v45 = vpop.f32.mrb[2].mxu0  ;;  %v5795_v42 = vld [vmem:[%s9487_s5 + $0x30] sm:$0xff] }
 0x499   : > { %v6713_v43 = vpop.f32.mrb[3].mxu0 }
 0x49a   : > { %v6714_v51 = vadd.f32 %v6713_v43, %v6712_v45  ;;  %v5796_v45 = vld [vmem:[%s9487_s5 + $0x38] sm:$0xff]  ;;  %v7637_v43 = vld [vmem:[%s9486_s4 + $0x60] sm:$0xff]  }
 0x49e   : > { %v6715_v52 = vpop.f32.mrb[4].mxu0 }
 0x49f   : > { %v6716_v46 = vpop.f32.mrb[5].mxu0 }
 0x4a0   : > { %v6717_v55 = vadd.f32 %v6716_v46, %v6715_v52  ;;  %v6718_v48 = vpop.f32.mrb[6].mxu0 }
 0x4a1   : > { %v6719_v49 = vpop.f32.mrb[7].mxu0 }
 0x4a2   : > { %v6720_v15 = vadd.f32 %v6719_v49, %v6718_v48  ;;  %v7639_v48 = vld [vmem:[%s9486_s4 + $0x70] sm:$0xff]  }
 0x4a6   : > { %v6721_v50 = vpop.f32.mrb[8].mxu0 }
 0x4a7   : > { %v6722_v53 = vpop.f32.mrb[9].mxu0 }
 0x4a8   : > { %v6723_v54 = vadd.f32 %v6722_v53, %v6721_v50  ;;  %v6724_v56 = vpop.f32.mrb[10].mxu0  ;;  %v7640_v53 = vld [vmem:[%s9486_s4 + $0x78] sm:$0xff]  }
 0x4a9   : > { %v6725_v3 = vpop.f32.mrb[11].mxu0 }
 0x4aa   : > { %v6726_v5 = vadd.f32 %v6725_v3, %v6724_v56 }
 0x4ae   : > { %v6727_v57 = vpop.f32.mrb[12].mxu0 }
 0x4af   : > { %v6728_v59 = vpop.f32.mrb[13].mxu0 }
 0x4b0   : > { %v6729_v60 = vadd.f32 %v6728_v59, %v6727_v57  ;;  %v6730_v4 = vpop.f32.mrb[14].mxu0  ;;  %v7642_v57 = vld [vmem:[%s9486_s4 + $0x88] sm:$0xff]   ;;  %v7643_v59 = vld [vmem:[%s9486_s4 + $0x90] sm:$0xff]  }
 0x4b1   : > { %v6731_v63 = vpop.f32.mrb[15].mxu0 }
 0x4b2   : > { %v6732_v6 = vadd.f32 %v6731_v63, %v6730_v4 }
 0x4b6   : > { %v7131_v61 = vpop.f32.mrb[16].mxu0 }
 0x4b7   : > { %v4528_v13 = vadd.f32 %v7131_v61, %v6717_v55  ;;  %v4519_v7 = vpop.f32.mrb[17].mxu0  ;;  %v7638_v55 = vld [vmem:[%s9486_s4 + $0x68] sm:$0xff]   ;;  %v7645_v61 = vld [vmem:[%s9486_s4 + $0xa0] sm:$0xff]  }
 0x4b8   : > { %v4520_v62 = vadd.f32 %v6711_v44, %v4519_v7  ;;  %v7132_v16 = vpop.f32.mrb[18].mxu0  ;;  %v7636_v44 = vld [vmem:[%s9486_s4 + $0x58] sm:$0xff]  }
 0x4b9   : > { %v4531_v58 = vadd.f32 %v7132_v16, %v6720_v15  ;;  %v4522_v8 = vpop.f32.mrb[19].mxu0  ;;  %v7647_v16 = vld [vmem:[%s9486_s4 + $0xa8] sm:$0xff]  }
 0x4ba   : > { %v4523_v11 = vadd.f32 %v6714_v51, %v4522_v8 }
 0x4bb   : > { %v9144_v17 = vpack.c.bf16 %v4531_v58, %v4528_v13  ;;  %v7648_v58 = vld [vmem:[%s9486_s4 + $0x28] sm:$0xff]  }
 0x4bc   : > { %v9146_v9 = vpack.c.bf16 %v4523_v11, %v4520_v62  ;;  %v7649_v11 = vld [vmem:[%s9486_s4 + $0xb0] sm:$0xff]  }
 0x4be   : > { %v7135_v18 = vpop.f32.mrb[20].mxu0  ;;  %4810 = vrot.lane.b32.xlu0 %v9146_v9, %s7744_s22 }
 0x4bf   : > { %v4544_v1 = vadd.f32 %v7135_v18, %v6729_v60  ;;  %v4535_v23 = vpop.f32.mrb[21].mxu0  ;;  %v7657_v18 = vld [vmem:[%s9486_s4 + $0x30] sm:$0xff]  }
 0x4c0   : > { %v4536_v24 = vadd.f32 %v6723_v54, %v4535_v23  ;;  %v7136_v14 = vpop.f32.mrb[22].mxu0  ;;  %v7641_v54 = vld [vmem:[%s9486_s4 + $0x80] sm:$0xff]  }
 0x4c1   : > { %v4547_v10 = vadd.f32 %v7136_v14, %v6732_v6  ;;  %v4538_v29 = vpop.f32.mrb[23].mxu0  ;;  %v7644_v6 = vld [vmem:[%s9486_s4 + $0x98] sm:$0xff]   ;;  %v7652_v14 = vld [vmem:[%s9486_s4 + $0xc8] sm:$0xff]  }
 0x4c2   : > { %v4539_v30 = vadd.f32 %v6726_v5, %v4538_v29  ;;  %4812 = vrot.lane.b32.xlu0 %v9144_v17, %s7744_s22  ;;  %v7653_v29 = vld [vmem:[%s9486_s4 + $0xd0] sm:$0xff]  }
 0x4c3   : > { %v9154_v19 = vpack.c.bf16 %v4547_v10, %v4544_v1  ;;  %v7658_v1 = vld [vmem:[%s9486_s4 + $0x38] sm:$0xff]   ;;  %v7662_v10 = vld [vmem:[%s9486_s4 + $0x8] sm:$0xff]  }
 0x4c4   : > { %v9156_v33 = vpack.c.bf16 %v4539_v30, %v4536_v24  ;;  %v7661_v24 = vld [vmem:[%s9486_s4] sm:$0xff]   ;;  %v7665_v30 = vld [vmem:[%s9486_s4 + $0x10] sm:$0xff]  }
 0x4c6   : > { %4814 = vrot.lane.b32.xlu1 %v9156_v33, %s7744_s22  ;;  %4936 = vrot.lane.b32.xlu0 %v9146_v9, %s7745_s28 }
 0x4ca   : > { %4816 = vrot.lane.b32.xlu1 %v9154_v19, %s7744_s22  ;;  %4940 = vrot.lane.b32.xlu0 %v9156_v33, %s7745_s28 }
 0x4ce   : > { %4938 = vrot.lane.b32.xlu1 %v9144_v17, %s7745_s28  ;;  %5062 = vrot.lane.b32.xlu0 %v9146_v9, %s7746_s29 }
 0x4d2   : > { %4942 = vrot.lane.b32.xlu1 %v9154_v19, %s7745_s28  ;;  %5066 = vrot.lane.b32.xlu0 %v9156_v33, %s7746_s29 }
 0x4d6   : > { %5064 = vrot.lane.b32.xlu1 %v9144_v17, %s7746_s29  ;;  %5188 = vrot.lane.b32.xlu0 %v9146_v9, %s7747_s10 }
 0x4da   : > { %5068 = vrot.lane.b32.xlu1 %v9154_v19, %s7746_s29  ;;  %5192 = vrot.lane.b32.xlu0 %v9156_v33, %s7747_s10 }
 0x4de   : > { %5190 = vrot.lane.b32.xlu1 %v9144_v17, %s7747_s10  ;;  %5314 = vrot.lane.b32.xlu0 %v9146_v9, %s7748_s24 }
 0x4e2   : > { %5194 = vrot.lane.b32.xlu1 %v9154_v19, %s7747_s10  ;;  %5318 = vrot.lane.b32.xlu0 %v9156_v33, %s7748_s24 }
 0x4e6   : > { %5316 = vrot.lane.b32.xlu1 %v9144_v17, %s7748_s24  ;;  %5440 = vrot.lane.b32.xlu0 %v9146_v9, %s7749_s23 }
 0x4ea   : > { %5320 = vrot.lane.b32.xlu1 %v9154_v19, %s7748_s24  ;;  %5444 = vrot.lane.b32.xlu0 %v9156_v33, %s7749_s23 }
 0x4ee   : > { %5442 = vrot.lane.b32.xlu1 %v9144_v17, %s7749_s23  ;;  %4595 = vrot.lane.b32.xlu0 %v9146_v9, %s7750_s11 }
 0x4f2   : > { %5446 = vrot.lane.b32.xlu1 %v9154_v19, %s7749_s23  ;;  %4597 = vrot.lane.b32.xlu0 %v9144_v17, %s7750_s11 }
 0x4f6   : > { %5566 = vrot.lane.b32.xlu1 %v9146_v9, %s7751_s14  ;;  %4599 = vrot.lane.b32.xlu0 %v9156_v33, %s7750_s11 }
 0x4fa   : > { %5568 = vrot.lane.b32.xlu1 %v9144_v17, %s7751_s14  ;;  %4601 = vrot.lane.b32.xlu0 %v9154_v19, %s7750_s11 }
 0x4fe   : > { %5570 = vrot.lane.b32.xlu1 %v9156_v33, %s7751_s14  ;;  %5692 = vrot.lane.b32.xlu0 %v9146_v9, %s7752_s15 }
 0x502   : > { %5572 = vrot.lane.b32.xlu1 %v9154_v19, %s7751_s14  ;;  %5696 = vrot.lane.b32.xlu0 %v9156_v33, %s7752_s15 }
 0x506   : > { %5694 = vrot.lane.b32.xlu1 %v9144_v17, %s7752_s15  ;;  %5799 = vperm.xlu0 %7611, %v5789_v2  }
 0x50a   : > { %5698 = vrot.lane.b32.xlu1 %v9154_v19, %s7752_s15  ;;  %5814 = vperm.xlu0 %7611, %v5792_v31  }
 0x50e   : > { %5804 = vperm.xlu1 %7612, %v5790_v25   ;;  %5824 = vperm.xlu0 %7611, %v5794_v37   ;;  %v7659_v25 = vld [vmem:[%s9486_s4 + $0xf0] sm:$0xff]  }
 0x512   : > { %5809 = vperm.xlu1 %7612, %v5791_v27   ;;  %5834 = vperm.xlu0 %7611, %v5796_v45   ;;  %v7672_v45 = vld [vmem:[%s9486_s4 + $0x138] sm:$0xff]  }
 0x516   : > { %5819 = vperm.xlu1 %7612, %v5793_v34   ;;  %v7668_v34 = vld [vmem:[%s9486_s4 + $0x118] sm:$0xff]  }
 0x51a   : > { %5829 = vperm.xlu1 %7612, %v5795_v42   ;;  %v7670_v42 = vld [vmem:[%s9486_s4 + $0x128] sm:$0xff]  }
 0x530   : > { %v4811_v21 = vpop.permute.xlu0 %4810 }
 0x531   : > { %7169 = vmatprep.subr.bf16.mxu1 %v4811_v21 }
 0x532   : > { %7170 = vmatpush3.bf16.msra.mxu1 %v4811_v21  ;;  %v7655_v21 = vld [vmem:[%s9486_s4 + $0xe0] sm:$0xff]  }
 0x534   : > { %v4813_v12 = vpop.permute.xlu0 %4812 }
 0x535   : > { %7171 = vmatprep.subr.bf16.mxu1 %v4813_v12 }
 0x536   : > { %7172 = vmatpush3.bf16.msra.mxu1 %v4813_v12 }
 0x538   : > { %v4815_v36 = vpop.permute.xlu1 %4814  ;;  %v4937_v22 = vpop.permute.xlu0 %4936 }
 0x539   : > { %7173 = vmatprep.subr.bf16.mxu1 %v4815_v36 }
 0x53a   : > { %7174 = vmatpush3.bf16.msra.mxu1 %v4815_v36  ;;  %v7656_v36 = vld [vmem:[%s9486_s4 + $0xe8] sm:$0xff]  }
 0x53c   : > { %v4817_v40 = vpop.permute.xlu1 %4816  ;;  %v4941_v41 = vpop.permute.xlu0 %4940 }
 0x53d   : > { %7175 = vmatprep.subr.bf16.mxu1 %v4817_v40 }
 0x53e   : > { %7176 = vmatpush3.bf16.msra.mxu1 %v4817_v40  ;;  %v7660_v40 = vld [vmem:[%s9486_s4 + $0xf8] sm:$0xff]  }
 0x53f   : > { %7185 = vmatprep.subr.bf16.mxu1 %v4937_v22 }
 0x540   : > { %v5063_v47 = vpop.permute.xlu0 %5062  ;;  %v4939_v38 = vpop.permute.xlu1 %4938 }
 0x541   : > { %7178 = vmatmul.mubr.msk.bf16.vlgmr.msra.gmra.mrb[0].mxu1 %vm4233_vm15, %v7634_v28  ;;  %v7664_v28 = vld [vmem:[%s9486_s4 + $0x108] sm:$0xff]  }
 0x542   : > { %7186 = vmatpush3.bf16.msra.mxu1 %v4937_v22  ;;  %7181 = vmatprep.mubr.msk.bf16.mxu1 %vm4233_vm15, %v7635_v32  ;;  %v7667_v32 = vld [vmem:[%s9486_s4 + $0x110] sm:$0xff]  }
 0x543   : > { %7187 = vmatprep.subr.bf16.mxu1 %v4939_v38 }
 0x544   : > { %v5067_v39 = vpop.permute.xlu0 %5066  ;;  %v4943_v52 = vpop.permute.xlu1 %4942 }
 0x546   : > { %7188 = vmatpush3.bf16.msra.mxu1 %v4939_v38  ;;  %v7669_v38 = vld [vmem:[%s9486_s4 + $0x120] sm:$0xff]  }
 0x547   : > { %7189 = vmatprep.subr.bf16.mxu1 %v4941_v41 }
 0x548   : > { %v5189_v51 = vpop.permute.xlu0 %5188  ;;  %v5065_v15 = vpop.permute.xlu1 %5064 }
 0x549   : > { %7182 = vmatmul.mubr.msk.bf16.gmra.mrb[4].mxu1 %vm4233_vm15, %v7636_v44  ;;  %v7671_v44 = vld [vmem:[%s9486_s4 + $0x130] sm:$0xff]  }
 0x54a   : > { %7190 = vmatpush3.bf16.msra.mxu1 %v4941_v41  ;;  %7193 = vmatprep.mubr.msk.bf16.mxu1 %vm4233_vm15, %v7637_v43  ;;  %v7663_v41 = vld [vmem:[%s9486_s4 + $0x100] sm:$0xff]  }
 0x54b   : > { %7191 = vmatprep.subr.bf16.mxu1 %v4943_v52  ;;  %v7675_v43 = vld [vmem:[%s9488_s6 + $0x4] ss:$8 sps:$4 sm:$0xff]  }
 0x54c   : > { %v5193_v46 = vpop.permute.xlu0 %5192  ;;  %v5069_v3 = vpop.permute.xlu1 %5068 }
 0x54e   : > { %7192 = vmatpush3.bf16.msra.mxu1 %v4943_v52  ;;  %v7678_v52 = vld [vmem:[%s9488_s6 + $0x14] ss:$8 sps:$4 sm:$0xff]  }
 0x54f   : > { %7201 = vmatprep.subr.bf16.mxu1 %v5063_v47 }
 0x550   : > { %v5315_v49 = vpop.permute.xlu0 %5314  ;;  %v5191_v4 = vpop.permute.xlu1 %5190 }
 0x551   : > { %7194 = vmatmul.mubr.msk.bf16.vlgmr.msra.gmra.mrb[0].mxu1 %vm4233_vm15, %v7638_v55  ;;  %v7681_v55 = vld [vmem:[%s9488_s6 + $0x24] ss:$8 sps:$4 sm:$0xff]  }
 0x552   : > { %7202 = vmatpush3.bf16.msra.mxu1 %v5063_v47  ;;  %7197 = vmatprep.mubr.msk.bf16.mxu1 %vm4233_vm15, %v7639_v48  ;;  %v7679_v48 = vld [vmem:[%s9488_s6 + $0x20] ss:$8 sps:$4 sm:$0xff]  }
 0x553   : > { %7203 = vmatprep.subr.bf16.mxu1 %v5065_v15 }
 0x554   : > { %v9246_v50 = vpop.permute.xlu0 %5318  ;;  %v5195_v7 = vpop.permute.xlu1 %5194 }
 0x556   : > { %7204 = vmatpush3.bf16.msra.mxu1 %v5065_v15 }
 0x557   : > { %7205 = vmatprep.subr.bf16.mxu1 %v5067_v39 }
 0x558   : > { %v9254_v56 = vpop.permute.xlu0 %5440  ;;  %v5317_v8 = vpop.permute.xlu1 %5316 }
 0x559   : > { %7198 = vmatmul.mubr.msk.bf16.gmra.mrb[4].mxu1 %vm4233_vm15, %v7640_v53 }
 0x55a   : > { %7206 = vmatpush3.bf16.msra.mxu1 %v5067_v39  ;;  %7209 = vmatprep.mubr.msk.bf16.mxu1 %vm4233_vm15, %v7641_v54 }
 0x55b   : > { %7207 = vmatprep.subr.bf16.mxu1 %v5069_v3 }
 0x55c   : > { %v9258_v5 = vpop.permute.xlu0 %5444  ;;  %v5321_v23 = vpop.permute.xlu1 %5320 }
 0x55e   : > { %7208 = vmatpush3.bf16.msra.mxu1 %v5069_v3 }
 0x55f   : > { %7217 = vmatprep.subr.bf16.mxu1 %v5189_v51 }
 0x560   : > { %v4596_v60 = vpop.permute.xlu0 %4595 }
 0x561   : > { %7137 = vmatprep.subr.bf16.mxu0 %v4596_v60  ;;  %7210 = vmatmul.mubr.msk.bf16.vlgmr.msra.gmra.mrb[0].mxu1 %vm4233_vm15, %v7642_v57 }
 0x562   : > { %7138 = vmatpush3.bf16.msra.mxu0 %v4596_v60  ;;  %7218 = vmatpush3.bf16.msra.mxu1 %v5189_v51  ;;  %v7673_v51 = vld [vmem:[%s9488_s6] ss:$8 sps:$4 sm:$0xff]  }
 0x563   : > { %7219 = vmatprep.subr.bf16.mxu1 %v5191_v4  ;;  %7213 = vmatprep.mubr.msk.bf16.mxu1 %vm4233_vm15, %v7643_v59 }
 0x564   : > { %v4598_v63 = vpop.permute.xlu0 %4597 }
 0x565   : > { %7139 = vmatprep.subr.bf16.mxu0 %v4598_v63 }
 0x566   : > { %7140 = vmatpush3.bf16.msra.mxu0 %v4598_v63  ;;  %7220 = vmatpush3.bf16.msra.mxu1 %v5191_v4 }
 0x567   : > { %7221 = vmatprep.subr.bf16.mxu1 %v5193_v46 }
 0x568   : > { %v4600_v13 = vpop.permute.xlu0 %4599 }
 0x569   : > { %7141 = vmatprep.subr.bf16.mxu0 %v4600_v13  ;;  %7214 = vmatmul.mubr.msk.bf16.gmra.mrb[4].mxu1 %vm4233_vm15, %v7644_v6 }
 0x56a   : > { %7142 = vmatpush3.bf16.msra.mxu0 %v4600_v13  ;;  %7222 = vmatpush3.bf16.msra.mxu1 %v5193_v46  ;;  %v7676_v46 = vld [vmem:[%s9488_s6 + $0x10] ss:$8 sps:$4 sm:$0xff]  }
 0x56b   : > { %7223 = vmatprep.subr.bf16.mxu1 %v5195_v7  ;;  %7225 = vmatprep.mubr.msk.bf16.mxu1 %vm4233_vm15, %v7645_v61 }
 0x56c   : > { %v4602_v62 = vpop.permute.xlu0 %4601 }
 0x56d   : > { %7143 = vmatprep.subr.bf16.mxu0 %v4602_v62 }
 0x56e   : > { %7144 = vmatpush3.bf16.msra.mxu0 %v4602_v62  ;;  %7224 = vmatpush3.bf16.msra.mxu1 %v5195_v7 }
 0x56f   : > { %7153 = vmatprep.subr.bf16.mxu0 %v9146_v9  ;;  %7233 = vmatprep.subr.bf16.mxu1 %v5315_v49 }
 0x570   : > { %v5693_v31 = vpop.permute.xlu0 %5692 }
 0x571   : > { %7226 = vmatmul.mubr.msk.bf16.vlgmr.msra.gmra.mrb[0].mxu1 %vm4233_vm15, %v7647_v16  ;;  %7146 = vmatmul.mubr.msk.bf16.vlgmr.msra.gmra.mrb[24].mxu0 %vm4233_vm15, %v7648_v58 }
 0x572   : > { %7154 = vmatpush3.bf16.msra.mxu0 %v9146_v9  ;;  %7234 = vmatpush3.bf16.msra.mxu1 %v5315_v49  ;;  %v7651_v9 = vld [vmem:[%s9486_s4 + $0xc0] sm:$0xff]   ;;  %v5903_v49 = vld [vmem:[%s9488_s6 + $0x30] sm:$0xff] }
 0x573   : > { %7155 = vmatprep.subr.bf16.mxu0 %v9144_v17  ;;  %7235 = vmatprep.subr.bf16.mxu1 %v5317_v8  ;;  %v6557_v15 = vcombine.high %v5903_v49, %v5903_v49 }
 0x574   : > { %7229 = vmatprep.mubr.msk.bf16.mxu1 %vm4233_vm15, %v7649_v11  ;;  %7149 = vmatprep.mubr.msk.bf16.mxu0 %vm4233_vm15, %v7657_v18  ;;  %v5697_v37 = vpop.permute.xlu0 %5696 }
 0x575   : > { %v5960_v53 = vand.u32 %v6557_v15, %v7967_v35 }
 0x576   : > { %7156 = vmatpush3.bf16.msra.mxu0 %v9144_v17  ;;  %7236 = vmatpush3.bf16.msra.mxu1 %v5317_v8  ;;  %v5443_v17 = vpop.permute.xlu1 %5442 }
 0x577   : > { %7157 = vmatprep.subr.bf16.mxu0 %v9156_v33  ;;  %7237 = vmatprep.subr.bf16.mxu1 %v9246_v50 }
 0x579   : > { %7230 = vmatmul.mubr.msk.bf16.gmra.mrb[4].mxu1 %vm4233_vm15, %v7650_v0  ;;  %7150 = vmatmul.mubr.msk.bf16.gmra.mrb[28].mxu0 %vm4233_vm15, %v7658_v1 }
 0x57a   : > { %7158 = vmatpush3.bf16.msra.mxu0 %v9156_v33  ;;  %7238 = vmatpush3.bf16.msra.mxu1 %v9246_v50  ;;  %v5447_v33 = vpop.permute.xlu1 %5446  ;;  %v6556_v50 = vcombine.low %v5903_v49, %v5903_v49 }
 0x57b   : > { %7159 = vmatprep.subr.bf16.mxu0 %v9154_v19  ;;  %7239 = vmatprep.subr.bf16.mxu1 %v5321_v23 }
 0x57c   : > { %7241 = vmatprep.mubr.msk.bf16.mxu1 %vm4233_vm15, %v7651_v9  ;;  %7161 = vmatprep.mubr.msk.bf16.mxu0 %vm4233_vm15, %v7661_v24  ;;  %v5957_v54 = vand.u32 %v6556_v50, %v7967_v35 }
 0x57e   : > { %7160 = vmatpush3.bf16.msra.mxu0 %v9154_v19  ;;  %7240 = vmatpush3.bf16.msra.mxu1 %v5321_v23  ;;  %v7654_v19 = vld [vmem:[%s9486_s4 + $0xd8] sm:$0xff]   ;;  %v5567_v12 = vpop.permute.xlu1 %5566 }
 0x57f   : > { %7249 = vmatprep.subr.bf16.mxu1 %v9254_v56  ;;  %5962 = vmatprep.subr.bf16.mxu0 %v7675_v43 }
 0x581   : > { %7242 = vmatmul.mubr.msk.bf16.vlgmr.msra.gmra.mrb[0].mxu1 %vm4233_vm15, %v7652_v14  ;;  %7162 = vmatmul.mubr.msk.bf16.vlgmr.msra.gmra.mrb[24].mxu0 %vm4233_vm15, %v7662_v10 }
 0x582   : > { %7250 = vmatpush3.bf16.msra.mxu1 %v9254_v56  ;;  %7245 = vmatprep.mubr.msk.bf16.mxu1 %vm4233_vm15, %v7653_v29  ;;  %v5569_v22 = vpop.permute.xlu1 %5568 }
 0x583   : > { %7251 = vmatprep.subr.bf16.mxu1 %v5443_v17  ;;  %7165 = vmatprep.mubr.msk.bf16.mxu0 %vm4233_vm15, %v7665_v30 }
 0x584   : > { %5963 = vmatpush1.bf16.msra.mxu0 %v7673_v51 }
 0x585   : > { %5964 = vmatprep.subr.bf16.mxu0 %v7678_v52  ;;  %v5800_v61 = vpop.permute.xlu0 %5799 }
 0x586   : > { %7252 = vmatpush3.bf16.msra.mxu1 %v5443_v17  ;;  %v5571_v2 = vpop.permute.xlu1 %5570 }
 0x587   : > { %7253 = vmatprep.subr.bf16.mxu1 %v9258_v5 }
 0x588   : > { %5965 = vmatpush1.bf16.msra.mxu0 %v7676_v46 }
 0x589   : > { %7246 = vmatmul.mubr.msk.bf16.gmra.mrb[4].mxu1 %vm4233_vm15, %v7654_v19  ;;  %7166 = vmatmul.mubr.msk.bf16.gmra.mrb[28].mxu0 %vm4233_vm15, %v7666_v20  ;;  %v5815_v7 = vpop.permute.xlu0 %5814 }
 0x58a   : > { %7254 = vmatpush3.bf16.msra.mxu1 %v9258_v5  ;;  %7257 = vmatprep.mubr.msk.bf16.mxu1 %vm4233_vm15, %v7655_v21  ;;  %v5573_v27 = vpop.permute.xlu1 %5572 }
 0x58b   : > { %7255 = vmatprep.subr.bf16.mxu1 %v5447_v33  ;;  %5994 = vmatprep.mubr.bf16.mxu0 %v7753_v26 }
 0x58c   : > { %5966 = vmatprep.subr.bf16.mxu0 %v7681_v55 }
 0x58d   : > { %5967 = vmatpush1.bf16.msra.mxu0 %v7679_v48  ;;  %v5825_v10 = vpop.permute.xlu0 %5824 }
 0x58e   : > { %7256 = vmatpush3.bf16.msra.mxu1 %v5447_v33  ;;  %v5695_v47 = vpop.permute.xlu1 %5694  ;;  %5968 = vmatprep.subr.bf16.mxu0 %v5960_v53 }
 0x58f   : > { %7265 = vmatprep.subr.bf16.mxu1 %v5567_v12 }
 0x591   : > { %7258 = vmatmul.mubr.msk.bf16.vlgmr.msra.gmra.mrb[0].mxu1 %vm4233_vm15, %v7656_v36  ;;  %5969 = vmatpush1.bf16.msra.mxu0 %v5957_v54 }
 0x592   : > { %7266 = vmatpush3.bf16.msra.mxu1 %v5567_v12  ;;  %7261 = vmatprep.mubr.msk.bf16.mxu1 %vm4233_vm15, %v7659_v25  ;;  %v5699_v39 = vpop.permute.xlu1 %5698 }
 0x593   : > { %7267 = vmatprep.subr.bf16.mxu1 %v5569_v22 }
 0x596   : > { %7268 = vmatpush3.bf16.msra.mxu1 %v5569_v22  ;;  %v5805_v6 = vpop.permute.xlu1 %5804 }
 0x597   : > { %7269 = vmatprep.subr.bf16.mxu1 %v5571_v2 }
 0x599   : > { %7262 = vmatmul.mubr.msk.bf16.gmra.mrb[4].mxu1 %vm4233_vm15, %v7660_v40 }
 0x59a   : > { %7270 = vmatpush3.bf16.msra.mxu1 %v5571_v2  ;;  %7273 = vmatprep.mubr.msk.bf16.mxu1 %vm4233_vm15, %v7663_v41  ;;  %v5810_v13 = vpop.permute.xlu1 %5809 }
 0x59b   : > { %7271 = vmatprep.subr.bf16.mxu1 %v5573_v27 }
 0x59e   : > { %7272 = vmatpush3.bf16.msra.mxu1 %v5573_v27  ;;  %v5820_v1 = vpop.permute.xlu1 %5819 }
 0x59f   : > { %7281 = vmatprep.subr.bf16.mxu1 %v5693_v31 }
 0x5a1   : > { %7274 = vmatmul.mubr.msk.bf16.vlgmr.msra.gmra.mrb[0].mxu1 %vm4233_vm15, %v7664_v28 }
 0x5a2   : > { %7282 = vmatpush3.bf16.msra.mxu1 %v5693_v31  ;;  %7277 = vmatprep.mubr.msk.bf16.mxu1 %vm4233_vm15, %v7667_v32  ;;  %v5830_v2 = vpop.permute.xlu1 %5829  ;;  %v5835_v32 = vpop.permute.xlu0 %5834 }
 0x5a3   : > { %7283 = vmatprep.subr.bf16.mxu1 %v5695_v47 }
 0x5a6   : > { %7284 = vmatpush3.bf16.msra.mxu1 %v5695_v47 }
 0x5a7   : > { %7285 = vmatprep.subr.bf16.mxu1 %v5697_v37 }
 0x5a9   : > { %7278 = vmatmul.mubr.msk.bf16.gmra.mrb[4].mxu1 %vm4233_vm15, %v7668_v34 }
 0x5aa   : > { %7286 = vmatpush3.bf16.msra.mxu1 %v5697_v37  ;;  %7289 = vmatprep.mubr.msk.bf16.mxu1 %vm4233_vm15, %v7669_v38 }
 0x5ab   : > { %7287 = vmatprep.subr.bf16.mxu1 %v5699_v39 }
 0x5ae   : > { %7288 = vmatpush3.bf16.msra.mxu1 %v5699_v39 }
 0x5b1   : > { %7290 = vmatmul.mubr.msk.bf16.vlgmr.msra.gmra.mrb[0].mxu1 %vm4233_vm15, %v7670_v42 }
 0x5b2   : > { %7293 = vmatprep.mubr.msk.bf16.mxu1 %vm4233_vm15, %v7671_v44 }
 0x5b9   : > { %7294 = vmatmul.mubr.msk.bf16.gmra.mrb[4].mxu1 %vm4233_vm15, %v7672_v45 }
 0x654   : > { %v7163_v56 = vpop.f32.mrb[24].mxu0 }
 0x655   : > { %v4750_v3 = vpop.f32.mrb[25].mxu0 }
 0x656   : > { %v7164_v5 = vpop.f32.mrb[26].mxu0 }
 0x657   : > { %v4753_v57 = vpop.f32.mrb[27].mxu0 }
 0x65c   : > { %v7167_v59 = vpop.f32.mrb[28].mxu0 }
 0x65d   : > { %v4766_v60 = vpop.f32.mrb[29].mxu0 }
 0x65e   : > { %v7168_v4 = vpop.f32.mrb[30].mxu0 }
 0x65f   : > { %v4769_v63 = vpop.f32.mrb[31].mxu0 }
 0x684   : > { %v7291_v62 = vpop.f32.mrb[0].mxu1 }
 0x685   : > { %v7409_v16 = vadd.f32 %v7291_v62, %v7163_v56  ;;  %v5750_v58 = vpop.f32.mrb[1].mxu1 }
 0x686   : > { %v7410_v8 = vadd.f32 %v5750_v58, %v4750_v3  ;;  %v7292_v11 = vpop.f32.mrb[2].mxu1 }
 0x687   : > { %v5839_v35 = vadd.f32 %v7409_v16, %v5810_v13  ;;  %v7411_v18 = vadd.f32 %v7292_v11, %v7164_v5  ;;  %v5753_v0 = vpop.f32.mrb[3].mxu1 }
 0x688   : > { %v5837_v23 = vadd.f32 %v7410_v8, %v5800_v61  ;;  %v7412_v9 = vadd.f32 %v5753_v0, %v4753_v57 }
 0x689   : > { %v5855_v24 = vmin.f32 %v5839_v35, 0.0  ;;  %v5840_v17 = vadd.f32 %v7411_v18, %v5815_v7  ;;  %vm5847_vm8 = vcmp.gt.f32.partialorder %v5839_v35, 0.0 }
 0x68a   : > { %v5853_v14 = vmin.f32 %v5837_v23, 0.0  ;;  %v5838_v29 = vadd.f32 %v7412_v9, %v5805_v6  ;;  %vm5845_vm10 = vcmp.gt.f32.partialorder %v5837_v23, 0.0 }
 0x68b   : > { %v5865_v30 = vmul.f32 1.442695, %v5855_v24  ;;  %v5856_v33 = vmin.f32 %v5840_v17, 0.0  ;;  %vm5848_vm9 = vcmp.gt.f32.partialorder %v5840_v17, 0.0  ;;  %v6035_v24 = vld [vmem:[%s9489_s7] sm:$0xff] }
 0x68c   : > { %v5861_v19 = vmul.f32 1.442695, %v5853_v14  ;;  %v5854_v20 = vmin.f32 %v5838_v29, 0.0  ;;  %v7295_v21 = vpop.f32.mrb[4].mxu1  ;;  %vm5846_vm11 = vcmp.gt.f32.partialorder %v5838_v29, 0.0 }
 0x68d   : > { %7684 = vpow2.f32 %v5865_v30  ;;  %v5867_v12 = vmul.f32 1.442695, %v5856_v33  ;;  %v7413_v36 = vadd.f32 %v7295_v21, %v7167_v59  ;;  %v5766_v22 = vpop.f32.mrb[5].mxu1 }
 0x68e   : > { %7686 = vpow2.f32 %v5861_v19  ;;  %v5863_v25 = vmul.f32 1.442695, %v5854_v20  ;;  %v7414_v40 = vadd.f32 %v5766_v22, %v4766_v60  ;;  %v7296_v41 = vpop.f32.mrb[6].mxu1 }
 0x68f   : > { %7688 = vpow2.f32 %v5867_v12  ;;  %v5843_v27 = vadd.f32 %v7413_v36, %v5830_v2  ;;  %v7415_v28 = vadd.f32 %v7296_v41, %v7168_v4  ;;  %v5769_v31 = vpop.f32.mrb[7].mxu1  ;;  %v6041_v2 = vld [vmem:[%s9489_s7 + $0x30] sm:$0xff]  ;;  %v6040_v41 = vld [vmem:[%s9489_s7 + $0x28] sm:$0xff] }
 0x690   : > { %7690 = vpow2.f32 %v5863_v25  ;;  %v5841_v47 = vadd.f32 %v7414_v40, %v5820_v1  ;;  %v7416_v34 = vadd.f32 %v5769_v31, %v4769_v63  ;;  %v6039_v25 = vld [vmem:[%s9489_s7 + $0x20] sm:$0xff] }
 0x691   : > { %v5859_v37 = vmin.f32 %v5843_v27, 0.0  ;;  %v5844_v38 = vadd.f32 %v7415_v28, %v5835_v32  ;;  %vm5851_vm12 = vcmp.gt.f32.partialorder %v5843_v27, 0.0 }
 0x692   : > { %v5857_v39 = vmin.f32 %v5841_v47, 0.0  ;;  %v5842_v42 = vadd.f32 %v7416_v34, %v5825_v10  ;;  %vm5849_vm14 = vcmp.gt.f32.partialorder %v5841_v47, 0.0  ;;  %v6036_v10 = vld [vmem:[%s9489_s7 + $0x8] sm:$0xff] }
 0x693   : > { %v5873_v44 = vmul.f32 1.442695, %v5859_v37  ;;  %v5860_v45 = vmin.f32 %v5844_v38, 0.0  ;;  %vm5852_vm13 = vcmp.gt.f32.partialorder %v5844_v38, 0.0 }
 0x694   : > { %v5869_v43 = vmul.f32 1.442695, %v5857_v39  ;;  %v5858_v51 = vmin.f32 %v5842_v42, 0.0  ;;  %vm5850_vm0 = vcmp.gt.f32.partialorder %v5842_v42, 0.0 }
 0x695   : > { %7692 = vpow2.f32 %v5873_v44  ;;  %v5875_v52 = vmul.f32 1.442695, %v5860_v45  ;;  %v6043_v44 = vld [vmem:[%s9489_s7 + $0x40] sm:$0xff]  ;;  %v6045_v45 = vld [vmem:[%s9489_s7 + $0x50] sm:$0xff] }
 0x696   : > { %7694 = vpow2.f32 %v5869_v43  ;;  %v5871_v46 = vmul.f32 1.442695, %v5858_v51  ;;  %v6044_v51 = vld [vmem:[%s9489_s7 + $0x48] sm:$0xff] }
 0x697   : > { %v7685_v55 = vpop.eup %7684  ;;  %7696 = vpow2.f32 %v5875_v52  ;;  %v6046_v52 = vld [vmem:[%s9489_s7 + $0x58] sm:$0xff] }
 0x698   : > { %v7687_v48 = vpop.eup %7686  ;;  %7698 = vpow2.f32 %v5871_v46  ;;  %v6544_v49 = vadd.f32 -1.0, %v7685_v55 }
 0x699   : > { %v7689_v15 = vpop.eup %7688  ;;  %v6542_v50 = vadd.f32 -1.0, %v7687_v48 }
 0x69a   : > { %v7691_v53 = vpop.eup %7690  ;;  %v6545_v54 = vadd.f32 -1.0, %v7689_v15  ;;  %v5887_v3 = vsel %vm5847_vm8, %v5839_v35, %v6544_v49 }
 0x69b   : > { %v6543_v56 = vadd.f32 -1.0, %v7691_v53  ;;  %v5885_v57 = vsel %vm5845_vm10, %v5837_v23, %v6542_v50  ;;  %v7754_v23 = vmov 0.0  }
 0x69c   : > { %v5888_v5 = vsel %vm5848_vm9, %v5840_v17, %v6545_v54  ;;  %v6037_v17 = vld [vmem:[%s9489_s7 + $0x10] sm:$0xff] }
 0x69d   : > { %v5886_v59 = vsel %vm5846_vm11, %v5838_v29, %v6543_v56  ;;  %v5894_v60 = vpack.c.bf16 %v5888_v5, %v5887_v3  ;;  %v6047_v3 = vld [vmem:[%s9489_s7 + $0x60] sm:$0xff]  ;;  %v6049_v5 = vld [vmem:[%s9489_s7 + $0x70] sm:$0xff] }
 0x69e   : > { %v5893_v4 = vpack.c.bf16 %v5886_v59, %v5885_v57  ;;  %v6048_v59 = vld [vmem:[%s9489_s7 + $0x68] sm:$0xff] }
 0x69f   : > { %v7693_v63 = vpop.eup %7692 }
 0x6a0   : > { %v7695_v6 = vpop.eup %7694  ;;  %6558 = vmatmul.mubr.msk.bf16.vlgmr.msra.gmra.mrb[32].mxu0 %vm463_vm4, %v5893_v4  ;;  %v6548_v61 = vadd.f32 -1.0, %v7693_v63 }
 0x6a1   : > { %v7697_v13 = vpop.eup %7696  ;;  %6004 = vmatprep.mubr.bf16.mxu0 %v7753_v26  ;;  %v6546_v7 = vadd.f32 -1.0, %v7695_v6 }
 0x6a2   : > { %v7699_v62 = vpop.eup %7698  ;;  %v6549_v16 = vadd.f32 -1.0, %v7697_v13  ;;  %v5891_v8 = vsel %vm5851_vm12, %v5843_v27, %v6548_v61  ;;  %v6042_v27 = vld [vmem:[%s9489_s7 + $0x38] sm:$0xff] }
 0x6a3   : > { %v6547_v58 = vadd.f32 -1.0, %v7699_v62  ;;  %v5889_v35 = vsel %vm5849_vm14, %v5841_v47, %v6546_v7 }
 0x6a4   : > { %v5892_v11 = vsel %vm5852_vm13, %v5844_v38, %v6549_v16 }
 0x6a5   : > { %v5890_v18 = vsel %vm5850_vm0, %v5842_v42, %v6547_v58  ;;  %v5896_v0 = vpack.c.bf16 %v5892_v11, %v5891_v8  ;;  %v6067_v58 = vld [vmem:[%s9490_s8] sm:$0xf] }
 0x6a6   : > { %v5895_v1 = vpack.c.bf16 %v5890_v18, %v5889_v35 }
 0x6a8   : > { %6559 = vmatmul.mubr.msk.bf16.gmra.mrb[36].mxu0 %vm463_vm4, %v5894_v60  ;;  %v6050_v60 = vld [vmem:[%s9489_s7 + $0x78] sm:$0xff] }
 0x6a9   : > { %6014 = vmatprep.mubr.bf16.mxu0 %v7753_v26 }
 0x6b0   : > { %6560 = vmatmul.mubr.msk.bf16.gmra.mrb[40].mxu0 %vm463_vm4, %v5895_v1 }
 0x6b1   : > { %6024 = vmatprep.mubr.bf16.mxu0 %v7753_v26  ;;  %v6038_v26 = vld [vmem:[%s9489_s7 + $0x18] sm:$0xff] }
 0x6b8   : > { %6561 = vmatmul.mubr.msk.bf16.gmra.mrb[44].mxu0 %vm463_vm4, %v5896_v0  ;;  %vm6146_vm4 = vcmask 392196  }
 0x6b9   : > { %6135 = vmatprep.mubr.f32.mxu0 %v7754_v23  ;;  %vm6147_vm1 = vmor %vm6146_vm4, %vm468_vm3 }
 0x773   : > { %v5996_v9 = vpop.f32.mrb[32].mxu0 }
 0x774   : > { %v5998_v14 = vpop.f32.mrb[33].mxu0  ;;  %v6051_v30 = vmul.f32 %v6035_v24, %v5996_v9 }
 0x775   : > { %v6000_v29 = vpop.f32.mrb[34].mxu0  ;;  %v6052_v20 = vmul.f32 %v6036_v10, %v5998_v14 }
 0x776   : > { %v6053_v33 = vmul.f32 %v6037_v17, %v6000_v29  ;;  %v6002_v19 = vpop.f32.mrb[35].mxu0 }
 0x777   : > { %v6054_v21 = vmul.f32 %v6038_v26, %v6002_v19 }
 0x778   : > { %v7299_v12 = vpack.c.bf16 %v6053_v33, %v6051_v30 }
 0x779   : > { %v7297_v36 = vpack.c.bf16 %v6054_v21, %v6052_v20 }
 0x77b   : > { %v6006_v22 = vpop.f32.mrb[36].mxu0  ;;  %7298 = vmatprep.subr.bf16.mxu0 %v7297_v36 }
 0x77c   : > { %v6008_v40 = vpop.f32.mrb[37].mxu0  ;;  %7300 = vmatpush1.bf16.msra.mxu0 %v7299_v12  ;;  %v6055_v31 = vmul.f32 %v6039_v25, %v6006_v22 }
 0x77d   : > { %v6010_v28 = vpop.f32.mrb[38].mxu0  ;;  %v6056_v34 = vmul.f32 %v6040_v41, %v6008_v40 }
 0x77e   : > { %v6057_v32 = vmul.f32 %v6041_v2, %v6010_v28  ;;  %v6012_v47 = vpop.f32.mrb[39].mxu0 }
 0x77f   : > { %v6058_v37 = vmul.f32 %v6042_v27, %v6012_v47 }
 0x780   : > { %v7303_v38 = vpack.c.bf16 %v6057_v32, %v6055_v31 }
 0x781   : > { %v7301_v39 = vpack.c.bf16 %v6058_v37, %v6056_v34 }
 0x783   : > { %v6016_v42 = vpop.f32.mrb[40].mxu0  ;;  %7302 = vmatprep.subr.bf16.mxu0 %v7301_v39 }
 0x784   : > { %v6018_v43 = vpop.f32.mrb[41].mxu0  ;;  %7304 = vmatpush1.bf16.msra.mxu0 %v7303_v38  ;;  %v6059_v55 = vmul.f32 %v6043_v44, %v6016_v42 }
 0x785   : > { %v6020_v46 = vpop.f32.mrb[42].mxu0  ;;  %v6060_v15 = vmul.f32 %v6044_v51, %v6018_v43 }
 0x786   : > { %v6061_v48 = vmul.f32 %v6045_v45, %v6020_v46  ;;  %v6022_v49 = vpop.f32.mrb[43].mxu0 }
 0x787   : > { %v6062_v50 = vmul.f32 %v6046_v52, %v6022_v49 }
 0x788   : > { %v7307_v53 = vpack.c.bf16 %v6061_v48, %v6059_v55 }
 0x789   : > { %v7305_v54 = vpack.c.bf16 %v6062_v50, %v6060_v15 }
 0x78b   : > { %v6026_v56 = vpop.f32.mrb[44].mxu0  ;;  %7306 = vmatprep.subr.bf16.mxu0 %v7305_v54 }
 0x78c   : > { %v6028_v57 = vpop.f32.mrb[45].mxu0  ;;  %7308 = vmatpush1.bf16.msra.mxu0 %v7307_v53  ;;  %v6063_v63 = vmul.f32 %v6047_v3, %v6026_v56 }
 0x78d   : > { %v6030_v4 = vpop.f32.mrb[46].mxu0  ;;  %v6064_v13 = vmul.f32 %v6048_v59, %v6028_v57 }
 0x78e   : > { %v6065_v6 = vmul.f32 %v6049_v5, %v6030_v4  ;;  %v6032_v61 = vpop.f32.mrb[47].mxu0 }
 0x78f   : > { %v6066_v7 = vmul.f32 %v6050_v60, %v6032_v61 }
 0x790   : > { %v7311_v62 = vpack.c.bf16 %v6065_v6, %v6063_v63 }
 0x791   : > { %v7309_v16 = vpack.c.bf16 %v6066_v7, %v6064_v13 }
 0x793   : > { %7310 = vmatprep.subr.bf16.mxu0 %v7309_v16 }
 0x794   : > { %7312 = vmatpush1.bf16.msra.mxu0 %v7311_v62 }
 0x797   : > { %6562 = vmatmul.mubr.msk.f32.vlgmr.msra.gmra.mrb[48].mxu0 %vm4233_vm15, %v6067_v58 }
 0x86a   : > { %v6137_v8 = vpop.f32.mrb[48].mxu0 }
 0x86b   : > { %v6139_v11 = vpop.f32.mrb[49].mxu0 }
 0x86c   : > { %v6144_v35 = vcombine.low %v6137_v8, %v6139_v11 }
 0x86e   : > { %6148 = vst.msk [vmem:[%s7826_s20] sm:$0xff] %vm6147_vm1, %v6144_v35 }
 0x86f PF: > { %s19_s30 = sadd.s32 1, %s7710_s30  }
 0x870   : > { %p16_p6 = scmp.ge.s32.totalorder %s19_s30, 4  }
 0x872   :  { %18 = sbr.rel (!%p16_p6) target bundleno = 1 (0x1), region = 139 }

</bundles_post_ra>
